<compile_context>
chip_gen: v7x
topology: tpu7x:2x2x1
jax: 0.10.0
libtpu: 0.0.40
codegen_flags: <defaults>
</compile_context>

<pallas_src>
import math

import jax
import jax.numpy as jnp
from jax.experimental import pallas as pl
from jax.experimental.pallas import tpu as pltpu

BN_EPS = 1e-5
CONTROL_POINT = 2
DIV_ROWS = 2
DIV_COLS = 2
ACC_ELEM_BUDGET = 32768           # f32 accumulator elements per conv tile (~32 vregs)
MAX_TS = 2048                     # upper bound on lane tile
VMEM_LIMIT = 32 * 1024 * 1024     # safe scoped-VMEM budget on v5e / v6e / v7x


# ----------------------------------------------------------------------------
# helpers
# ----------------------------------------------------------------------------
def _round_up(x, m):
    return ((x + m - 1) // m) * m


def _choose_ts(s, cout_rows):
    """Lane tile: multiple of 128, Cout*TS f32 accumulator <= ACC_ELEM_BUDGET."""
    cap = (ACC_ELEM_BUDGET // max(cout_rows, 8)) // 128 * 128
    cap = max(128, min(MAX_TS, cap))
    s128 = _round_up(s, 128)
    if s128 <= cap:
        return s128
    best_ts, best_tot = cap, _round_up(s128, cap)
    ts = cap - 128
    while ts >= 128:
        tot = _round_up(s128, ts)
        if tot < best_tot:
            best_ts, best_tot = ts, tot
        ts -= 128
    return best_ts


def _cparams(sem):
    return pltpu.CompilerParams(dimension_semantics=sem,
                                vmem_limit_bytes=VMEM_LIMIT)


# ----------------------------------------------------------------------------
# Pallas kernel 1: channel-major conv matmul (bf16 MXU, f32 acc) + activation.
#   weight block : (Coutp, Kp)   bf16  (BN + bias already folded in)
#   patch  block : (1, Kp, TS)   bf16  (row K of every patch column is 1.0)
#   out    block : (1, Cout, TS)       (channel-unpadded, lane-dense stores)
# ----------------------------------------------------------------------------
def _conv_kernel_factory(act, cout):
    def kernel(w_ref, x_ref, o_ref):
        acc = jnp.dot(w_ref[...], x_ref[0],
                      preferred_element_type=jnp.float32)       # (Coutp, TS)
        if act == "relu":
            acc = jnp.maximum(acc, 0.0)
        elif act == "lrelu":
            acc = jnp.where(acc >= 0.0, acc, 0.2 * acc)
        elif act == "sigmoid":
            acc = jax.nn.sigmoid(acc)
        o_ref[0] = acc[:cout].astype(o_ref.dtype)                # store unpadded rows
    return kernel


def _im2col_bias(x, kh, kw, stride, pad, kp):
    """x: (B, C, H, W) bf16 -> patches (B, kp, Ho*Wo).

    K order = (kh, kw, Cin); row K (= kh*kw*C) is all-ones (folds the bias into
    the matmul); remaining rows up to kp are zero padding.
    TODO(synk): replace with a direct-conv (halo tile + 9 shifted matmuls)
    kernel to avoid materializing the 9x patch tensor in HBM.
    """
    if pad:
        x = jnp.pad(x, ((0, 0), (0, 0), (pad, pad), (pad, pad)))
    B, C, Hp, Wp = x.shape
    Ho = (Hp - kh) // stride + 1
    Wo = (Wp - kw) // stride + 1
    S = Ho * Wo
    slabs = []
    for i in range(kh):
        for j in range(kw):
            slabs.append(
                x[:, :, i:i + (Ho - 1) * stride + 1:stride,
                      j:j + (Wo - 1) * stride + 1:stride].reshape(B, C, S))
    slabs.append(jnp.ones((B, 1, S), x.dtype))                    # bias row
    K1 = kh * kw * C + 1
    if kp > K1:
        slabs.append(jnp.zeros((B, kp - K1, S), x.dtype))
    return jnp.concatenate(slabs, axis=1), Ho, Wo


def prep_conv_weight(w, b=None, bn=None):
    """Fold eval-mode BN + bias into a (Coutp, Kp) bf16 matmul weight (host side).

    Column K (= Cin*kh*kw) holds the bias (matmul'd against the ones patch row).
    """
    Cout, Cin, kh, kw = w.shape
    w = jnp.asarray(w, jnp.float32)
    b = jnp.zeros((Cout,), jnp.float32) if b is None else jnp.asarray(b, jnp.float32)
    if bn is not None:
        # eval-mode BatchNorm folded into weight/bias (training-mode stats not reproduced)
        gamma, beta, mean, var = bn
        s = gamma / jnp.sqrt(var + BN_EPS)
        w = w * s[:, None, None, None]
        b = b * s + (beta - mean * s)
    K = Cin * kh * kw
    Kp = _round_up(K + 1, 16)                  # bf16 sublane alignment only
    Coutp = _round_up(Cout, 8)
    wm = jnp.transpose(w, (0, 2, 3, 1)).reshape(Cout, K)   # (kh, kw, Cin) feature order
    wm = jnp.concatenate([wm, b[:, None]], axis=1)          # bias column at index K
    wm = jnp.pad(wm, ((0, Coutp - Cout), (0, Kp - K - 1))).astype(jnp.bfloat16)
    return wm


def pallas_conv2d(x, wm, cout, kh=3, kw=3, stride=1, padding=0,
                  act="none", out_dtype=jnp.float32):
    """NCHW conv via channel-major Pallas matmul.  wm from prep_conv_weight."""
    B = x.shape[0]
    Coutp, Kp = wm.shape
    patches, Ho, Wo = _im2col_bias(x.astype(jnp.bfloat16), kh, kw, stride, padding, Kp)
    S = Ho * Wo
    TS = _choose_ts(S, Coutp)
    Sp = _round_up(S, TS)
    if Sp != S:
        patches = jnp.pad(patches, ((0, 0), (0, 0), (0, Sp - S)))

    out = pl.pallas_call(
        _conv_kernel_factory(act, cout),
        out_shape=jax.ShapeDtypeStruct((B, cout, Sp), out_dtype),
        grid=(Sp // TS, B),                                   # spatial axis first (megacore)
        in_specs=[
            pl.BlockSpec((Coutp, Kp), lambda ss, bb: (0, 0)),
            pl.BlockSpec((1, Kp, TS), lambda ss, bb: (bb, 0, ss)),
        ],
        out_specs=pl.BlockSpec((1, cout, TS), lambda ss, bb: (bb, 0, ss)),
        compiler_params=_cparams(("parallel", "parallel")),
    )(wm, patches)
    if Sp != S:
        out = out[:, :, :S]
    return out.reshape(B, cout, Ho, Wo)


# ----------------------------------------------------------------------------
# Pallas kernel 2: fused tenMetric + softsplat source prep (lane axis = pixels)
#   frames block : (B, C+1, TS)  (last channel pre-filled with ones)
#   warped block : (B, C,   TS)
#   alpha        : SMEM scalar
#   out    block : (B, C+1, TS) = [frame * exp(m), exp(m)],
#                  m = alpha * sum_c |frame - warped|
# ----------------------------------------------------------------------------
def _splat_prep_kernel_factory(C):
    def kernel(f_ref, w_ref, alpha_ref, o_ref):
        x = f_ref[...]                                    # (B, C+1, TS)
        wv = w_ref[...]                                   # (B, C, TS)
        d = jnp.sum(jnp.abs(x[:, :C, :] - wv), axis=1, keepdims=True)   # sublane reduce
        m = alpha_ref[0] * d                              # (B, 1, TS)
        o_ref[...] = x * jnp.exp(m)                       # sublane-broadcast weight
    return kernel


def pallas_splat_prep(frames, warped, alpha):
    """frames/warped: (B, C, H, W) -> splat source (B, C+1, H, W)."""
    B, C, H, W = frames.shape
    S = H * W
    TS = _choose_ts(S, 8)
    Sp = _round_up(S, TS)
    f = jnp.concatenate([frames.reshape(B, C, S),
                         jnp.ones((B, 1, S), frames.dtype)], axis=1)
    wp = warped.reshape(B, C, S)
    if Sp != S:
        f = jnp.pad(f, ((0, 0), (0, 0), (0, Sp - S)))
        wp = jnp.pad(wp, ((0, 0), (0, 0), (0, Sp - S)))
    a = alpha.reshape(1).astype(jnp.float32)
    out = pl.pallas_call(
        _splat_prep_kernel_factory(C),
        out_shape=jax.ShapeDtypeStruct((B, C + 1, Sp), jnp.float32),
        grid=(Sp // TS,),
        in_specs=[
            pl.BlockSpec((B, C + 1, TS), lambda ss: (0, 0, ss)),
            pl.BlockSpec((B, C, TS), lambda ss: (0, 0, ss)),
            pl.BlockSpec(memory_space=pltpu.MemorySpace.SMEM),
        ],
        out_specs=pl.BlockSpec((B, C + 1, TS), lambda ss: (0, 0, ss)),
        compiler_params=_cparams(("parallel",)),
    )(f, wp, a)
    return out[:, :, :S].reshape(B, C + 1, H, W)


# ----------------------------------------------------------------------------
# Pallas kernel 3: region softmax + _compute_weighted_average (lane axis = pixels)
#   scores block : (B, R,   TS)
#   values block : (B, R*C, TS)   (region-major, channel-minor)
#   out    block : (B, C,   TS)
# ----------------------------------------------------------------------------
def _attn_avg_kernel_factory(R, C):
    def kernel(s_ref, v_ref, o_ref):
        s = s_ref[...]                                    # (B, R, TS)
        v = v_ref[...]                                    # (B, R*C, TS)
        m = jnp.max(s, axis=1, keepdims=True)             # XLU sublane max
        e = jnp.exp(s - m)                                # single EUP exp
        den = jnp.sum(e, axis=1, keepdims=True)           # XLU sublane sum
        acc = e[:, 0:1, :] * v[:, 0:C, :]
        for r in range(1, R):
            acc = acc + e[:, r:r + 1, :] * v[:, r * C:(r + 1) * C, :]
        o_ref[...] = acc * pl.reciprocal(den, approx=True)
    return kernel


def pallas_attention_average(scores, vals):
    """scores: (B, R, H, W); vals: (B, R, C, H, W) -> (B, C, H, W)."""
    B, R, H, W = scores.shape
    C = vals.shape[2]
    S = H * W
    TS = _choose_ts(S, 8)
    Sp = _round_up(S, TS)
    s = scores.reshape(B, R, S)
    v = vals.reshape(B, R * C, S)
    if Sp != S:
        s = jnp.pad(s, ((0, 0), (0, 0), (0, Sp - S)))
        v = jnp.pad(v, ((0, 0), (0, 0), (0, Sp - S)))
    out = pl.pallas_call(
        _attn_avg_kernel_factory(R, C),
        out_shape=jax.ShapeDtypeStruct((B, C, Sp), jnp.float32),
        grid=(Sp // TS,),
        in_specs=[
            pl.BlockSpec((B, R, TS), lambda ss: (0, 0, ss)),
            pl.BlockSpec((B, R * C, TS), lambda ss: (0, 0, ss)),
        ],
        out_specs=pl.BlockSpec((B, C, TS), lambda ss: (0, 0, ss)),
        compiler_params=_cparams(("parallel",)),
    )(s, v)
    return out[:, :, :S].reshape(B, C, H, W)


# ----------------------------------------------------------------------------
# plain-JAX glue (gather / scatter heavy pieces, external helper semantics)
# ----------------------------------------------------------------------------
def backwarp(source, flo):
    # TODO(synk): external `warp.backwarp`; bilinear backward warp, gather stays in XLA.
    B, C, H, W = source.shape
    ys, xs = jnp.meshgrid(jnp.arange(H, dtype=jnp.float32),
                          jnp.arange(W, dtype=jnp.float32), indexing="ij")
    x = xs[None] + flo[:, 0]
    y = ys[None] + flo[:, 1]
    x0 = jnp.floor(x)
    y0 = jnp.floor(y)
    wx = (x - x0)[:, None]
    wy = (y - y0)[:, None]

    def gather(yy, xx):
        yy = jnp.clip(yy, 0, H - 1).astype(jnp.int32)
        xx = jnp.clip(xx, 0, W - 1).astype(jnp.int32)
        idx = (yy * W + xx).reshape(B, 1, H * W)
        idx = jnp.broadcast_to(idx, (B, C, H * W))
        return jnp.take_along_axis(source.reshape(B, C, H * W), idx, axis=2).reshape(B, C, H, W)

    v00 = gather(y0, x0)
    v01 = gather(y0, x0 + 1)
    v10 = gather(y0 + 1, x0)
    v11 = gather(y0 + 1, x0 + 1)
    return (v00 * (1 - wx) * (1 - wy) + v01 * wx * (1 - wy)
            + v10 * (1 - wx) * wy + v11 * wx * wy)


def softsplat_from_src(src, flow):
    # TODO(synk): external `Softsplat`; weighting fused by pallas_splat_prep; the
    # 4 bilinear-corner scatters are one merged XLA scatter-add (not a Pallas kernel yet).
    B, Cs, H, W = src.shape
    C = Cs - 1
    ys, xs = jnp.meshgrid(jnp.arange(H, dtype=jnp.float32),
                          jnp.arange(W, dtype=jnp.float32), indexing="ij")
    x = xs[None] + flow[:, 0]
    y = ys[None] + flow[:, 1]
    x0 = jnp.floor(x)
    y0 = jnp.floor(y)
    src_flat = src.reshape(B, Cs, H * W)
    idx_list, w_list = [], []
    for dx, dy in ((0, 0), (1, 0), (0, 1), (1, 1)):
        xi = x0 + dx
        yi = y0 + dy
        w = (1.0 - jnp.abs(x - xi)) * (1.0 - jnp.abs(y - yi))
        valid = (xi >= 0) & (xi <= W - 1) & (yi >= 0) & (yi <= H - 1)
        w = jnp.where(valid, w, 0.0)
        idx = (jnp.clip(yi, 0, H - 1) * W + jnp.clip(xi, 0, W - 1)).astype(jnp.int32)
        idx_list.append(idx.reshape(B, H * W))
        w_list.append(w.reshape(B, H * W))
    idx_all = jnp.concatenate(idx_list, axis=1)                  # (B, 4HW)
    w_all = jnp.concatenate(w_list, axis=1)                      # (B, 4HW)
    contrib = jnp.tile(src_flat, (1, 1, 4)) * w_all[:, None, :]  # (B, Cs, 4HW)
    b_idx = jnp.arange(B)[:, None, None]
    c_idx = jnp.arange(Cs)[None, :, None]
    acc = jnp.zeros((B, Cs, H * W), jnp.float32)
    acc = acc.at[b_idx, c_idx, idx_all[:, None, :]].add(contrib)
    acc = acc.reshape(B, Cs, H, W)
    return acc[:, :C] / (acc[:, C:] + 1e-7)


def adaptive_avg_pool2d(x, out_size):
    B, C, H, W = x.shape
    oh, ow = out_size
    rows = []
    for i in range(oh):
        h0 = (i * H) // oh
        h1 = -(-((i + 1) * H) // oh)
        cols = []
        for j in range(ow):
            w0 = (j * W) // ow
            w1 = -(-((j + 1) * W) // ow)
            cols.append(jnp.mean(x[:, :, h0:h1, w0:w1], axis=(2, 3)))
        rows.append(jnp.stack(cols, axis=-1))
    return jnp.stack(rows, axis=-2)


def to_subregion(x, div_rows, div_cols):
    # TODO(synk): external helper; assumed half-overlapping windows -> (2r-1)*(2c-1) regions.
    b, c, h, w = x.shape
    rh, rw = h // div_rows, w // div_cols
    sr, sc = rh // 2, rw // 2
    regions = []
    for i in range(2 * div_rows - 1):
        for j in range(2 * div_cols - 1):
            regions.append(x[:, :, i * sr:i * sr + rh, j * sc:j * sc + rw])
    return regions


def subregion_pad(res_list, full_shape, div_rows, div_cols):
    b, c, h, w = full_shape
    rh, rw = h // div_rows, w // div_cols
    sr, sc = rh // 2, rw // 2
    out = []
    idx = 0
    for i in range(2 * div_rows - 1):
        for j in range(2 * div_cols - 1):
            canvas = jnp.zeros((b, c, h, w), jnp.float32)
            canvas = canvas.at[:, :, i * sr:i * sr + rh, j * sc:j * sc + rw].set(res_list[idx])
            out.append(canvas)
            idx += 1
    return out


# ----------------------------------------------------------------------------
# model pieces
# ----------------------------------------------------------------------------
def flow_guided_gate(gp, x):
    # x = relu(bn1(conv1(x))); x = relu(bn2(conv2(x))); pool; sigmoid(bn3(conv3(x)))
    # TODO(synk): fuse conv1 -> conv2 into one Pallas kernel (keep 128-ch tile in VMEM).
    x = pallas_conv2d(x, gp["c1_wm"], cout=128, stride=2, padding=0,
                      act="relu", out_dtype=jnp.bfloat16)
    x = pallas_conv2d(x, gp["c2_wm"], cout=64, stride=2, padding=0, act="relu")
    x = adaptive_avg_pool2d(x, (2 * DIV_ROWS - 1, 2 * DIV_COLS - 1))
    x = pallas_conv2d(x, gp["c3_wm"], cout=2, stride=1, padding=1, act="sigmoid")
    return x


def refine_warp_module(rp, x, gate_mask):
    # train-branch semantics of refine_warp_module.forward
    num_rows = 2 * DIV_ROWS - 1
    num_cols = 2 * DIV_COLS - 1
    nreg = num_rows * num_cols
    b, c, h, w = x.shape
    subs = to_subregion(x, DIV_ROWS, DIV_COLS)
    sub_resin = jnp.concatenate(subs, axis=0)                      # (nreg*b, c, rh, rw)
    # TODO(synk): flow_net is UNet(22, 4) (architecture not provided) -> single 3x3 conv stand-in.
    res_flows = pallas_conv2d(sub_resin, rp["flow_wm"], cout=4, padding=1)
    rh, rw = res_flows.shape[2], res_flows.shape[3]
    res_flows = res_flows.reshape(nreg, b, 4, rh, rw)
    mask = gate_mask[:, 1].reshape(b, nreg).T.reshape(nreg, b, 1, 1, 1)
    res_flows = res_flows * mask
    res_list = [res_flows[r] for r in range(nreg)]
    pad_res = subregion_pad(res_list, (b, 4, h, w), DIV_ROWS, DIV_COLS)
    pad_res_flows = jnp.concatenate(pad_res, axis=1)               # (b, 4*nreg, h, w)
    # TODO(synk): attention_net is UNet_60w(36, 9) (not provided) -> single 3x3 conv stand-in.
    scores = pallas_conv2d(pad_res_flows, rp["att_wm"], cout=nreg, padding=1)
    vals = jnp.stack(pad_res, axis=1)                              # (b, nreg, 4, h, w)
    return pallas_attention_average(scores, vals)                  # softmax + weighted average


def ido_forward(params, input_images, events_t_0, events_t_1, event_0_1, event_1_0, times):
    I0, I1 = input_images
    cp = CONTROL_POINT
    B = I0.shape[0]

    # TODO(synk): flow_model is UNet(16, 2*control_point) (not provided) -> 3x3 conv stand-in.
    # Both directions are batched into ONE conv call (shared weights).
    flow_in = jnp.concatenate([jnp.concatenate([I0, I1, event_0_1], axis=1),
                               jnp.concatenate([I1, I0, event_1_0], axis=1)], axis=0)
    ms = pallas_conv2d(flow_in, params["flow_wm"], cout=2 * cp, padding=1)
    ms01, ms10 = ms[:B], ms[B:]
    cum01x = jnp.cumsum(ms01[:, :cp], 1)
    cum01y = jnp.cumsum(ms10[:, cp:], 1)          # matches reference (y from the 1->0 spline)
    flow_0_1 = jnp.concatenate([cum01x[:, -1:], cum01y[:, -1:]], 1)
    cum10x = jnp.cumsum(ms10[:, :cp], 1)
    cum10y = jnp.cumsum(ms10[:, cp:], 1)
    flow_1_0 = jnp.concatenate([cum10x[:, -1:], cum10y[:, -1:]], 1)

    outs = []
    gate_mask = None
    I0_t = I1_t = refine_I0_t = refine_I1_t = None
    for i, t in enumerate(times):
        tp0 = math.ceil(t * cp) - 1
        flow_0_t = jnp.concatenate([cum01x[:, tp0:tp0 + 1], cum01y[:, tp0:tp0 + 1]], 1)
        tp1 = math.ceil((1 - t) * cp) - 1
        flow_1_t = jnp.concatenate([cum10x[:, tp1:tp1 + 1], cum10y[:, tp1:tp1 + 1]], 1)

        # batched backwarp for both directions
        warped = backwarp(jnp.concatenate([I1, I0], axis=0),
                          jnp.concatenate([flow_0_1, flow_1_0], axis=0))
        I1_0, I0_1 = warped[:B], warped[B:]

        # fused tenMetric + splat-source prep (Pallas), batched over both directions
        src = pallas_splat_prep(jnp.concatenate([I0, I1], axis=0),
                                jnp.concatenate([I1_0, I0_1], axis=0),
                                params["alpha"])
        splat = softsplat_from_src(src, jnp.concatenate([flow_0_t, flow_1_t], axis=0))
        I0_t, I1_t = splat[:B], splat[B:]

        sub_gatein = jnp.concatenate([flow_0_t, flow_1_t], axis=1)
        gate_out = flow_guided_gate(params["gate"], sub_gatein)
        # TODO(synk): gumbel_sigmoid not provided; deterministic relaxation sigmoid(logit/T), no noise.
        g = jnp.clip(gate_out, 1e-6, 1.0 - 1e-6)
        gate_mask = jax.nn.sigmoid(jnp.log(g / (1.0 - g)) / 0.2)

        res_input = jnp.concatenate([I0, I1, I0_t, I1_t, events_t_0[i], events_t_1[i]], axis=1)
        res_flows = refine_warp_module(params["refine"], res_input, gate_mask)
        res_flow_t_0 = res_flows[:, :2]
        res_flow_t_1 = res_flows[:, 2:]
        refined = backwarp(jnp.concatenate([I1_t, I0_t], axis=0),
                           jnp.concatenate([res_flow_t_1, res_flow_t_0], axis=0))
        refine_I1_t, refine_I0_t = refined[:B], refined[B:]

        # TODO(synk): SepSTSEncoder / f_decoder (ConvTranspose3d) / SmoothNet(ResBlock) /
        #             SynBlock (AdaCoF CUDA op) are not defined in the snippet; the
        #             synthesis branch producing `out` is omitted.
        outs.append(None)

    return outs, gate_mask, I0_t, I1_t, refine_I0_t, refine_I1_t


# ----------------------------------------------------------------------------
# parameter init + host-side weight preparation (outside jit)
# ----------------------------------------------------------------------------
def _bn(c):
    return (jnp.ones((c,), jnp.float32), jnp.zeros((c,), jnp.float32),
            jnp.zeros((c,), jnp.float32), jnp.ones((c,), jnp.float32))


def init_params(key):
    ks = jax.random.split(key, 12)

    def w(k, shape):
        return 0.05 * jax.random.normal(k, shape, jnp.float32)

    return {
        "flow_w": w(ks[0], (2 * CONTROL_POINT, 16, 3, 3)),
        "flow_b": w(ks[1], (2 * CONTROL_POINT,)),
        "gate": {
            "w1": w(ks[2], (128, 4, 3, 3)), "b1": w(ks[3], (128,)), "bn1": _bn(128),
            "w2": w(ks[4], (64, 128, 3, 3)), "b2": w(ks[5], (64,)), "bn2": _bn(64),
            "w3": w(ks[6], (2, 64, 3, 3)), "b3": w(ks[7], (2,)), "bn3": _bn(2),
        },
        "refine": {
            "flow_w": w(ks[8], (4, 22, 3, 3)), "flow_b": w(ks[9], (4,)),
            "att_w": w(ks[10], (9, 36, 3, 3)), "att_b": w(ks[11], (9,)),
        },
        "alpha": -jnp.ones((1,), jnp.float32),
    }


def prepare_params(p):
    """BN fold / transpose / bias fold / pad / bf16 cast done once, outside jit."""
    g = p["gate"]
    r = p["refine"]
    return {
        "flow_wm": prep_conv_weight(p["flow_w"], p["flow_b"]),
        "gate": {
            "c1_wm": prep_conv_weight(g["w1"], g["b1"], bn=g["bn1"]),
            "c2_wm": prep_conv_weight(g["w2"], g["b2"], bn=g["bn2"]),
            "c3_wm": prep_conv_weight(g["w3"], g["b3"], bn=g["bn3"]),
        },
        "refine": {
            "flow_wm": prep_conv_weight(r["flow_w"], r["flow_b"]),
            "att_wm": prep_conv_weight(r["att_w"], r["att_b"]),
        },
        "alpha": p["alpha"].astype(jnp.float32),
    }


# ----------------------------------------------------------------------------
if __name__ == "__main__":
    key = jax.random.PRNGKey(0)
    pkey, dkey = jax.random.split(key)
    params = prepare_params(init_params(pkey))

    B, H, W = 2, 16, 16
    dks = jax.random.split(dkey, 6)
    I0 = jax.random.normal(dks[0], (B, 3, H, W), jnp.float32)
    I1 = jax.random.normal(dks[1], (B, 3, H, W), jnp.float32)
    event_0_1 = jax.random.normal(dks[2], (B, 10, H, W), jnp.float32)
    event_1_0 = jax.random.normal(dks[3], (B, 10, H, W), jnp.float32)
    times = [0.5]
    events_t_0 = [jax.random.normal(dks[4], (B, 5, H, W), jnp.float32)]
    events_t_1 = [jax.random.normal(dks[5], (B, 5, H, W), jnp.float32)]

    fwd = jax.jit(lambda p, imgs, e0, e1, e01, e10:
                  ido_forward(p, imgs, e0, e1, e01, e10, times))
    out = fwd(params, [I0, I1], events_t_0, events_t_1, event_0_1, event_1_0)
    jax.block_until_ready(out)
    print("KERNEL_OK")
</pallas_src>

<mosaic_0001>
module attributes {stable_mosaic.version = 11 : i64} {
  func.func private @main(%arg0: i32) attributes {dimension_semantics = [#tpu.dimension_semantics<core_parallel>], iteration_bounds = array<i64: 2>, tpu.core_type = #tpu.core_type<sc_scalar_subcore>, window_params = []} {
    return
  }
}

module attributes {stable_mosaic.version = 11 : i64} {
  func.func private @main(%arg0: i32) attributes {dimension_semantics = [#tpu.dimension_semantics<core_parallel>], iteration_bounds = array<i64: 2>, tpu.core_type = #tpu.core_type<sc_scalar_subcore>, window_params = []} {
    return
  }
}

module attributes {stable_mosaic.version = 11 : i64} {
  func.func @kernel(%arg0: i32, %arg1: i32, %arg2: memref<8x160xbf16, #tpu.memory_space<vmem>>, %arg3: memref<1x160x256xbf16, #tpu.memory_space<vmem>>, %arg4: memref<1x4x256xf32, #tpu.memory_space<vmem>>) attributes {dimension_semantics = [#tpu.dimension_semantics<parallel>, #tpu.dimension_semantics<parallel>], iteration_bounds = array<i64: 1, 4>, scalar_prefetch = 0 : i64, scratch_operands = 0 : i64, tpu.core_type = #tpu.core_type<tc>, window_params = [{pipeline_mode = #tpu.pipeline_mode<synchronous>, transform_indices = @transform_0, window_bounds = array<i64: 8, 160>}, {transform_indices = @transform_1, window_bounds = array<i64: 1, 160, 256>}, {transform_indices = @transform_2, window_bounds = array<i64: 1, 4, 256>}]} {
    %c0 = arith.constant 0 : index
    %c0_0 = arith.constant 0 : index
    %0 = vector.load %arg2[%c0, %c0_0] : memref<8x160xbf16, #tpu.memory_space<vmem>>, vector<8x160xbf16>
    %c0_1 = arith.constant 0 : index
    %c0_2 = arith.constant 0 : index
    %c0_3 = arith.constant 0 : index
    %1 = vector.load %arg3[%c0_1, %c0_2, %c0_3] : memref<1x160x256xbf16, #tpu.memory_space<vmem>>, vector<1x160x256xbf16>
    %2 = vector.shape_cast %1 : vector<1x160x256xbf16> to vector<160x256xbf16>
    %cst = arith.constant dense<0.000000e+00> : vector<8x256xf32>
    %3 = tpu.matmul %0, %2, %cst {dimension_numbers = #tpu.dot_dimension_numbers<[1], [0], [0], [1], [0, 0, 1, 1], [], []>} : vector<8x160xbf16>, vector<160x256xbf16>, vector<8x256xf32> -> vector<8x256xf32>
    %4 = vector.extract_strided_slice %3 {offsets = [0, 0], sizes = [4, 256], strides = [1, 1]} : vector<8x256xf32> to vector<4x256xf32>
    %c0_4 = arith.constant 0 : index
    %c0_5 = arith.constant 0 : index
    %c0_6 = arith.constant 0 : index
    %5 = vector.load %arg4[%c0_4, %c0_5, %c0_6] : memref<1x4x256xf32, #tpu.memory_space<vmem>>, vector<1x4x256xf32>
    %6 = vector.shape_cast %5 : vector<1x4x256xf32> to vector<4x256xf32>
    %7 = vector.shape_cast %4 : vector<4x256xf32> to vector<1x4x256xf32>
    tpu.vector_store %arg4[%c0_4, %c0_5, %c0_6], %7 {strides = array<i32>} : memref<1x4x256xf32, #tpu.memory_space<vmem>>, vector<1x4x256xf32>,
    return
  }
  func.func @transform_0(%arg0: i32, %arg1: i32) -> (i32, i32) {
    %c0_i32 = arith.constant 0 : i32
    %c0_i32_0 = arith.constant 0 : i32
    %c0_i32_1 = arith.constant 0 : i32
    return %c0_i32, %c0_i32_0 : i32, i32
  }
  func.func @transform_1(%arg0: i32, %arg1: i32) -> (i32, i32, i32) {
    %c0_i32 = arith.constant 0 : i32
    %c0_i32_0 = arith.constant 0 : i32
    return %arg1, %c0_i32, %arg0 : i32, i32, i32
  }
  func.func @transform_2(%arg0: i32, %arg1: i32) -> (i32, i32, i32) {
    %c0_i32 = arith.constant 0 : i32
    %c0_i32_0 = arith.constant 0 : i32
    return %arg1, %c0_i32, %arg0 : i32, i32, i32
  }
}

module attributes {stable_mosaic.version = 11 : i64} {
  func.func @kernel(%arg0: i32, %arg1: i32, %arg2: memref<128x48xbf16, #tpu.memory_space<vmem>>, %arg3: memref<1x48x128xbf16, #tpu.memory_space<vmem>>, %arg4: memref<1x128x128xbf16, #tpu.memory_space<vmem>>) attributes {dimension_semantics = [#tpu.dimension_semantics<parallel>, #tpu.dimension_semantics<parallel>], iteration_bounds = array<i64: 1, 2>, scalar_prefetch = 0 : i64, scratch_operands = 0 : i64, tpu.core_type = #tpu.core_type<tc>, window_params = [{pipeline_mode = #tpu.pipeline_mode<synchronous>, transform_indices = @transform_0, window_bounds = array<i64: 128, 48>}, {transform_indices = @transform_1, window_bounds = array<i64: 1, 48, 128>}, {transform_indices = @transform_2, window_bounds = array<i64: 1, 128, 128>}]} {
    %c0 = arith.constant 0 : index
    %c0_0 = arith.constant 0 : index
    %0 = vector.load %arg2[%c0, %c0_0] : memref<128x48xbf16, #tpu.memory_space<vmem>>, vector<128x48xbf16>
    %c0_1 = arith.constant 0 : index
    %c0_2 = arith.constant 0 : index
    %c0_3 = arith.constant 0 : index
    %1 = vector.load %arg3[%c0_1, %c0_2, %c0_3] : memref<1x48x128xbf16, #tpu.memory_space<vmem>>, vector<1x48x128xbf16>
    %2 = vector.shape_cast %1 : vector<1x48x128xbf16> to vector<48x128xbf16>
    %cst = arith.constant dense<0.000000e+00> : vector<128x128xf32>
    %3 = tpu.matmul %0, %2, %cst {dimension_numbers = #tpu.dot_dimension_numbers<[1], [0], [0], [1], [0, 0, 1, 1], [], []>} : vector<128x48xbf16>, vector<48x128xbf16>, vector<128x128xf32> -> vector<128x128xf32>
    %cst_4 = arith.constant 0.000000e+00 : f32
    %4 = vector.broadcast %cst_4 : f32 to vector<128x128xf32>
    %5 = arith.maximumf %3, %4 : vector<128x128xf32>
    %6 = arith.truncf %5 : vector<128x128xf32> to vector<128x128xbf16>
    %c0_5 = arith.constant 0 : index
    %c0_6 = arith.constant 0 : index
    %c0_7 = arith.constant 0 : index
    %7 = vector.load %arg4[%c0_5, %c0_6, %c0_7] : memref<1x128x128xbf16, #tpu.memory_space<vmem>>, vector<1x128x128xbf16>
    %8 = vector.shape_cast %7 : vector<1x128x128xbf16> to vector<128x128xbf16>
    %9 = vector.shape_cast %6 : vector<128x128xbf16> to vector<1x128x128xbf16>
    tpu.vector_store %arg4[%c0_5, %c0_6, %c0_7], %9 {strides = array<i32>} : memref<1x128x128xbf16, #tpu.memory_space<vmem>>, vector<1x128x128xbf16>,
    return
  }
  func.func @transform_0(%arg0: i32, %arg1: i32) -> (i32, i32) {
    %c0_i32 = arith.constant 0 : i32
    %c0_i32_0 = arith.constant 0 : i32
    %c0_i32_1 = arith.constant 0 : i32
    return %c0_i32, %c0_i32_0 : i32, i32
  }
  func.func @transform_1(%arg0: i32, %arg1: i32) -> (i32, i32, i32) {
    %c0_i32 = arith.constant 0 : i32
    %c0_i32_0 = arith.constant 0 : i32
    return %arg1, %c0_i32, %arg0 : i32, i32, i32
  }
  func.func @transform_2(%arg0: i32, %arg1: i32) -> (i32, i32, i32) {
    %c0_i32 = arith.constant 0 : i32
    %c0_i32_0 = arith.constant 0 : i32
    return %arg1, %c0_i32, %arg0 : i32, i32, i32
  }
}

module attributes {stable_mosaic.version = 11 : i64} {
  func.func @kernel(%arg0: i32, %arg1: i32, %arg2: memref<64x1168xbf16, #tpu.memory_space<vmem>>, %arg3: memref<1x1168x128xbf16, #tpu.memory_space<vmem>>, %arg4: memref<1x64x128xf32, #tpu.memory_space<vmem>>) attributes {dimension_semantics = [#tpu.dimension_semantics<parallel>, #tpu.dimension_semantics<parallel>], iteration_bounds = array<i64: 1, 2>, scalar_prefetch = 0 : i64, scratch_operands = 0 : i64, tpu.core_type = #tpu.core_type<tc>, window_params = [{pipeline_mode = #tpu.pipeline_mode<synchronous>, transform_indices = @transform_0, window_bounds = array<i64: 64, 1168>}, {transform_indices = @transform_1, window_bounds = array<i64: 1, 1168, 128>}, {transform_indices = @transform_2, window_bounds = array<i64: 1, 64, 128>}]} {
    %c0 = arith.constant 0 : index
    %c0_0 = arith.constant 0 : index
    %0 = vector.load %arg2[%c0, %c0_0] : memref<64x1168xbf16, #tpu.memory_space<vmem>>, vector<64x1168xbf16>
    %c0_1 = arith.constant 0 : index
    %c0_2 = arith.constant 0 : index
    %c0_3 = arith.constant 0 : index
    %1 = vector.load %arg3[%c0_1, %c0_2, %c0_3] : memref<1x1168x128xbf16, #tpu.memory_space<vmem>>, vector<1x1168x128xbf16>
    %2 = vector.shape_cast %1 : vector<1x1168x128xbf16> to vector<1168x128xbf16>
    %cst = arith.constant dense<0.000000e+00> : vector<64x128xf32>
    %3 = tpu.matmul %0, %2, %cst {dimension_numbers = #tpu.dot_dimension_numbers<[1], [0], [0], [1], [0, 0, 1, 1], [], []>} : vector<64x1168xbf16>, vector<1168x128xbf16>, vector<64x128xf32> -> vector<64x128xf32>
    %cst_4 = arith.constant 0.000000e+00 : f32
    %4 = vector.broadcast %cst_4 : f32 to vector<64x128xf32>
    %5 = arith.maximumf %3, %4 : vector<64x128xf32>
    %c0_5 = arith.constant 0 : index
    %c0_6 = arith.constant 0 : index
    %c0_7 = arith.constant 0 : index
    %6 = vector.load %arg4[%c0_5, %c0_6, %c0_7] : memref<1x64x128xf32, #tpu.memory_space<vmem>>, vector<1x64x128xf32>
    %7 = vector.shape_cast %6 : vector<1x64x128xf32> to vector<64x128xf32>
    %8 = vector.shape_cast %5 : vector<64x128xf32> to vector<1x64x128xf32>
    tpu.vector_store %arg4[%c0_5, %c0_6, %c0_7], %8 {strides = array<i32>} : memref<1x64x128xf32, #tpu.memory_space<vmem>>, vector<1x64x128xf32>,
    return
  }
  func.func @transform_0(%arg0: i32, %arg1: i32) -> (i32, i32) {
    %c0_i32 = arith.constant 0 : i32
    %c0_i32_0 = arith.constant 0 : i32
    %c0_i32_1 = arith.constant 0 : i32
    return %c0_i32, %c0_i32_0 : i32, i32
  }
  func.func @transform_1(%arg0: i32, %arg1: i32) -> (i32, i32, i32) {
    %c0_i32 = arith.constant 0 : i32
    %c0_i32_0 = arith.constant 0 : i32
    return %arg1, %c0_i32, %arg0 : i32, i32, i32
  }
  func.func @transform_2(%arg0: i32, %arg1: i32) -> (i32, i32, i32) {
    %c0_i32 = arith.constant 0 : i32
    %c0_i32_0 = arith.constant 0 : i32
    return %arg1, %c0_i32, %arg0 : i32, i32, i32
  }
}

module attributes {stable_mosaic.version = 11 : i64} {
  func.func @kernel(%arg0: i32, %arg1: i32, %arg2: memref<8x592xbf16, #tpu.memory_space<vmem>>, %arg3: memref<1x592x128xbf16, #tpu.memory_space<vmem>>, %arg4: memref<1x2x128xf32, #tpu.memory_space<vmem>>) attributes {dimension_semantics = [#tpu.dimension_semantics<parallel>, #tpu.dimension_semantics<parallel>], iteration_bounds = array<i64: 1, 2>, scalar_prefetch = 0 : i64, scratch_operands = 0 : i64, tpu.core_type = #tpu.core_type<tc>, window_params = [{pipeline_mode = #tpu.pipeline_mode<synchronous>, transform_indices = @transform_0, window_bounds = array<i64: 8, 592>}, {transform_indices = @transform_1, window_bounds = array<i64: 1, 592, 128>}, {transform_indices = @transform_2, window_bounds = array<i64: 1, 2, 128>}]} {
    %c0 = arith.constant 0 : index
    %c0_0 = arith.constant 0 : index
    %0 = vector.load %arg2[%c0, %c0_0] : memref<8x592xbf16, #tpu.memory_space<vmem>>, vector<8x592xbf16>
    %c0_1 = arith.constant 0 : index
    %c0_2 = arith.constant 0 : index
    %c0_3 = arith.constant 0 : index
    %1 = vector.load %arg3[%c0_1, %c0_2, %c0_3] : memref<1x592x128xbf16, #tpu.memory_space<vmem>>, vector<1x592x128xbf16>
    %2 = vector.shape_cast %1 : vector<1x592x128xbf16> to vector<592x128xbf16>
    %cst = arith.constant dense<0.000000e+00> : vector<8x128xf32>
    %3 = tpu.matmul %0, %2, %cst {dimension_numbers = #tpu.dot_dimension_numbers<[1], [0], [0], [1], [0, 0, 1, 1], [], []>} : vector<8x592xbf16>, vector<592x128xbf16>, vector<8x128xf32> -> vector<8x128xf32>
    %4 = arith.negf %3 : vector<8x128xf32>
    %5 = math.exp %4 : vector<8x128xf32>
    %cst_4 = arith.constant 1.000000e+00 : f32
    %6 = vector.broadcast %cst_4 : f32 to vector<8x128xf32>
    %7 = arith.addf %6, %5 : vector<8x128xf32>
    %8 = arith.divf %6, %7 : vector<8x128xf32>
    %9 = vector.extract_strided_slice %8 {offsets = [0, 0], sizes = [2, 128], strides = [1, 1]} : vector<8x128xf32> to vector<2x128xf32>
    %c0_5 = arith.constant 0 : index
    %c0_6 = arith.constant 0 : index
    %c0_7 = arith.constant 0 : index
    %10 = vector.load %arg4[%c0_5, %c0_6, %c0_7] : memref<1x2x128xf32, #tpu.memory_space<vmem>>, vector<1x2x128xf32>
    %11 = vector.shape_cast %10 : vector<1x2x128xf32> to vector<2x128xf32>
    %12 = vector.shape_cast %9 : vector<2x128xf32> to vector<1x2x128xf32>
    tpu.vector_store %arg4[%c0_5, %c0_6, %c0_7], %12 {strides = array<i32>} : memref<1x2x128xf32, #tpu.memory_space<vmem>>, vector<1x2x128xf32>,
    return
  }
  func.func @transform_0(%arg0: i32, %arg1: i32) -> (i32, i32) {
    %c0_i32 = arith.constant 0 : i32
    %c0_i32_0 = arith.constant 0 : i32
    %c0_i32_1 = arith.constant 0 : i32
    return %c0_i32, %c0_i32_0 : i32, i32
  }
  func.func @transform_1(%arg0: i32, %arg1: i32) -> (i32, i32, i32) {
    %c0_i32 = arith.constant 0 : i32
    %c0_i32_0 = arith.constant 0 : i32
    return %arg1, %c0_i32, %arg0 : i32, i32, i32
  }
  func.func @transform_2(%arg0: i32, %arg1: i32) -> (i32, i32, i32) {
    %c0_i32 = arith.constant 0 : i32
    %c0_i32_0 = arith.constant 0 : i32
    return %arg1, %c0_i32, %arg0 : i32, i32, i32
  }
}

module attributes {stable_mosaic.version = 11 : i64} {
  func.func @kernel(%arg0: i32, %arg1: memref<4x4x256xf32, #tpu.memory_space<vmem>>, %arg2: memref<4x3x256xf32, #tpu.memory_space<vmem>>, %arg3: memref<1xf32, #tpu.memory_space<smem>>, %arg4: memref<4x4x256xf32, #tpu.memory_space<vmem>>) attributes {dimension_semantics = [#tpu.dimension_semantics<parallel>], iteration_bounds = array<i64: 1>, scalar_prefetch = 0 : i64, scratch_operands = 0 : i64, tpu.core_type = #tpu.core_type<tc>, window_params = [{transform_indices = @transform_0, window_bounds = array<i64: 4, 4, 256>}, {transform_indices = @transform_1, window_bounds = array<i64: 4, 3, 256>}, {transform_indices = @transform_2, window_bounds = array<i64: 1>}, {transform_indices = @transform_3, window_bounds = array<i64: 4, 4, 256>}]} {
    %c0 = arith.constant 0 : index
    %c0_0 = arith.constant 0 : index
    %c0_1 = arith.constant 0 : index
    %0 = vector.load %arg1[%c0, %c0_0, %c0_1] : memref<4x4x256xf32, #tpu.memory_space<vmem>>, vector<4x4x256xf32>
    %c0_2 = arith.constant 0 : index
    %c0_3 = arith.constant 0 : index
    %c0_4 = arith.constant 0 : index
    %1 = vector.load %arg2[%c0_2, %c0_3, %c0_4] : memref<4x3x256xf32, #tpu.memory_space<vmem>>, vector<4x3x256xf32>
    %2 = vector.extract_strided_slice %0 {offsets = [0, 0, 0], sizes = [4, 3, 256], strides = [1, 1, 1]} : vector<4x4x256xf32> to vector<4x3x256xf32>
    %3 = arith.subf %2, %1 : vector<4x3x256xf32>
    %4 = math.absf %3 : vector<4x3x256xf32>
    %cst = arith.constant dense<0.000000e+00> : vector<4x256xf32>
    %5 = vector.multi_reduction <add>, %4, %cst [1] : vector<4x3x256xf32> to vector<4x256xf32>
    %6 = vector.shape_cast %5 : vector<4x256xf32> to vector<4x1x256xf32>
    %c0_5 = arith.constant 0 : index
    %7 = memref.load %arg3[%c0_5] : memref<1xf32, #tpu.memory_space<smem>>
    %8 = vector.broadcast %7 : f32 to vector<4x1x256xf32>
    %9 = arith.mulf %8, %6 : vector<4x1x256xf32>
    %10 = math.exp %9 : vector<4x1x256xf32>
    %11 = vector.broadcast %10 : vector<4x1x256xf32> to vector<4x4x256xf32>
    %12 = arith.mulf %0, %11 : vector<4x4x256xf32>
    %c0_6 = arith.constant 0 : index
    %c0_7 = arith.constant 0 : index
    %c0_8 = arith.constant 0 : index
    %13 = vector.load %arg4[%c0_6, %c0_7, %c0_8] : memref<4x4x256xf32, #tpu.memory_space<vmem>>, vector<4x4x256xf32>
    tpu.vector_store %arg4[%c0_6, %c0_7, %c0_8], %12 {strides = array<i32>} : memref<4x4x256xf32, #tpu.memory_space<vmem>>, vector<4x4x256xf32>,
    return
  }
  func.func @transform_0(%arg0: i32) -> (i32, i32, i32) {
    %c0_i32 = arith.constant 0 : i32
    %c0_i32_0 = arith.constant 0 : i32
    %c0_i32_1 = arith.constant 0 : i32
    return %c0_i32, %c0_i32_0, %arg0 : i32, i32, i32
  }
  func.func @transform_1(%arg0: i32) -> (i32, i32, i32) {
    %c0_i32 = arith.constant 0 : i32
    %c0_i32_0 = arith.constant 0 : i32
    %c0_i32_1 = arith.constant 0 : i32
    return %c0_i32, %c0_i32_0, %arg0 : i32, i32, i32
  }
  func.func @transform_2(%arg0: i32) -> i32 {
    %c0_i32 = arith.constant 0 : i32
    %c0_i32_0 = arith.constant 0 : i32
    return %c0_i32 : i32
  }
  func.func @transform_3(%arg0: i32) -> (i32, i32, i32) {
    %c0_i32 = arith.constant 0 : i32
    %c0_i32_0 = arith.constant 0 : i32
    %c0_i32_1 = arith.constant 0 : i32
    return %c0_i32, %c0_i32_0, %arg0 : i32, i32, i32
  }
}

module attributes {stable_mosaic.version = 11 : i64} {
  func.func @kernel(%arg0: i32, %arg1: i32, %arg2: memref<8x208xbf16, #tpu.memory_space<vmem>>, %arg3: memref<1x208x128xbf16, #tpu.memory_space<vmem>>, %arg4: memref<1x4x128xf32, #tpu.memory_space<vmem>>) attributes {dimension_semantics = [#tpu.dimension_semantics<parallel>, #tpu.dimension_semantics<parallel>], iteration_bounds = array<i64: 1, 18>, scalar_prefetch = 0 : i64, scratch_operands = 0 : i64, tpu.core_type = #tpu.core_type<tc>, window_params = [{pipeline_mode = #tpu.pipeline_mode<synchronous>, transform_indices = @transform_0, window_bounds = array<i64: 8, 208>}, {transform_indices = @transform_1, window_bounds = array<i64: 1, 208, 128>}, {transform_indices = @transform_2, window_bounds = array<i64: 1, 4, 128>}]} {
    %c0 = arith.constant 0 : index
    %c0_0 = arith.constant 0 : index
    %0 = vector.load %arg2[%c0, %c0_0] : memref<8x208xbf16, #tpu.memory_space<vmem>>, vector<8x208xbf16>
    %c0_1 = arith.constant 0 : index
    %c0_2 = arith.constant 0 : index
    %c0_3 = arith.constant 0 : index
    %1 = vector.load %arg3[%c0_1, %c0_2, %c0_3] : memref<1x208x128xbf16, #tpu.memory_space<vmem>>, vector<1x208x128xbf16>
    %2 = vector.shape_cast %1 : vector<1x208x128xbf16> to vector<208x128xbf16>
    %cst = arith.constant dense<0.000000e+00> : vector<8x128xf32>
    %3 = tpu.matmul %0, %2, %cst {dimension_numbers = #tpu.dot_dimension_numbers<[1], [0], [0], [1], [0, 0, 1, 1], [], []>} : vector<8x208xbf16>, vector<208x128xbf16>, vector<8x128xf32> -> vector<8x128xf32>
    %4 = vector.extract_strided_slice %3 {offsets = [0, 0], sizes = [4, 128], strides = [1, 1]} : vector<8x128xf32> to vector<4x128xf32>
    %c0_4 = arith.constant 0 : index
    %c0_5 = arith.constant 0 : index
    %c0_6 = arith.constant 0 : index
    %5 = vector.load %arg4[%c0_4, %c0_5, %c0_6] : memref<1x4x128xf32, #tpu.memory_space<vmem>>, vector<1x4x128xf32>
    %6 = vector.shape_cast %5 : vector<1x4x128xf32> to vector<4x128xf32>
    %7 = vector.shape_cast %4 : vector<4x128xf32> to vector<1x4x128xf32>
    tpu.vector_store %arg4[%c0_4, %c0_5, %c0_6], %7 {strides = array<i32>} : memref<1x4x128xf32, #tpu.memory_space<vmem>>, vector<1x4x128xf32>,
    return
  }
  func.func @transform_0(%arg0: i32, %arg1: i32) -> (i32, i32) {
    %c0_i32 = arith.constant 0 : i32
    %c0_i32_0 = arith.constant 0 : i32
    %c0_i32_1 = arith.constant 0 : i32
    return %c0_i32, %c0_i32_0 : i32, i32
  }
  func.func @transform_1(%arg0: i32, %arg1: i32) -> (i32, i32, i32) {
    %c0_i32 = arith.constant 0 : i32
    %c0_i32_0 = arith.constant 0 : i32
    return %arg1, %c0_i32, %arg0 : i32, i32, i32
  }
  func.func @transform_2(%arg0: i32, %arg1: i32) -> (i32, i32, i32) {
    %c0_i32 = arith.constant 0 : i32
    %c0_i32_0 = arith.constant 0 : i32
    return %arg1, %c0_i32, %arg0 : i32, i32, i32
  }
}

module attributes {stable_mosaic.version = 11 : i64} {
  func.func @kernel(%arg0: i32, %arg1: i32, %arg2: memref<16x336xbf16, #tpu.memory_space<vmem>>, %arg3: memref<1x336x256xbf16, #tpu.memory_space<vmem>>, %arg4: memref<1x9x256xf32, #tpu.memory_space<vmem>>) attributes {dimension_semantics = [#tpu.dimension_semantics<parallel>, #tpu.dimension_semantics<parallel>], iteration_bounds = array<i64: 1, 2>, scalar_prefetch = 0 : i64, scratch_operands = 0 : i64, tpu.core_type = #tpu.core_type<tc>, window_params = [{pipeline_mode = #tpu.pipeline_mode<synchronous>, transform_indices = @transform_0, window_bounds = array<i64: 16, 336>}, {transform_indices = @transform_1, window_bounds = array<i64: 1, 336, 256>}, {transform_indices = @transform_2, window_bounds = array<i64: 1, 9, 256>}]} {
    %c0 = arith.constant 0 : index
    %c0_0 = arith.constant 0 : index
    %0 = vector.load %arg2[%c0, %c0_0] : memref<16x336xbf16, #tpu.memory_space<vmem>>, vector<16x336xbf16>
    %c0_1 = arith.constant 0 : index
    %c0_2 = arith.constant 0 : index
    %c0_3 = arith.constant 0 : index
    %1 = vector.load %arg3[%c0_1, %c0_2, %c0_3] : memref<1x336x256xbf16, #tpu.memory_space<vmem>>, vector<1x336x256xbf16>
    %2 = vector.shape_cast %1 : vector<1x336x256xbf16> to vector<336x256xbf16>
    %cst = arith.constant dense<0.000000e+00> : vector<16x256xf32>
    %3 = tpu.matmul %0, %2, %cst {dimension_numbers = #tpu.dot_dimension_numbers<[1], [0], [0], [1], [0, 0, 1, 1], [], []>} : vector<16x336xbf16>, vector<336x256xbf16>, vector<16x256xf32> -> vector<16x256xf32>
    %4 = vector.extract_strided_slice %3 {offsets = [0, 0], sizes = [9, 256], strides = [1, 1]} : vector<16x256xf32> to vector<9x256xf32>
    %c0_4 = arith.constant 0 : index
    %c0_5 = arith.constant 0 : index
    %c0_6 = arith.constant 0 : index
    %5 = vector.load %arg4[%c0_4, %c0_5, %c0_6] : memref<1x9x256xf32, #tpu.memory_space<vmem>>, vector<1x9x256xf32>
    %6 = vector.shape_cast %5 : vector<1x9x256xf32> to vector<9x256xf32>
    %7 = vector.shape_cast %4 : vector<9x256xf32> to vector<1x9x256xf32>
    tpu.vector_store %arg4[%c0_4, %c0_5, %c0_6], %7 {strides = array<i32>} : memref<1x9x256xf32, #tpu.memory_space<vmem>>, vector<1x9x256xf32>,
    return
  }
  func.func @transform_0(%arg0: i32, %arg1: i32) -> (i32, i32) {
    %c0_i32 = arith.constant 0 : i32
    %c0_i32_0 = arith.constant 0 : i32
    %c0_i32_1 = arith.constant 0 : i32
    return %c0_i32, %c0_i32_0 : i32, i32
  }
  func.func @transform_1(%arg0: i32, %arg1: i32) -> (i32, i32, i32) {
    %c0_i32 = arith.constant 0 : i32
    %c0_i32_0 = arith.constant 0 : i32
    return %arg1, %c0_i32, %arg0 : i32, i32, i32
  }
  func.func @transform_2(%arg0: i32, %arg1: i32) -> (i32, i32, i32) {
    %c0_i32 = arith.constant 0 : i32
    %c0_i32_0 = arith.constant 0 : i32
    return %arg1, %c0_i32, %arg0 : i32, i32, i32
  }
}

module attributes {stable_mosaic.version = 11 : i64} {
  func.func @kernel(%arg0: i32, %arg1: memref<2x9x256xf32, #tpu.memory_space<vmem>>, %arg2: memref<2x36x256xf32, #tpu.memory_space<vmem>>, %arg3: memref<2x4x256xf32, #tpu.memory_space<vmem>>) attributes {dimension_semantics = [#tpu.dimension_semantics<parallel>], iteration_bounds = array<i64: 1>, scalar_prefetch = 0 : i64, scratch_operands = 0 : i64, tpu.core_type = #tpu.core_type<tc>, window_params = [{transform_indices = @transform_0, window_bounds = array<i64: 2, 9, 256>}, {transform_indices = @transform_1, window_bounds = array<i64: 2, 36, 256>}, {transform_indices = @transform_2, window_bounds = array<i64: 2, 4, 256>}]} {
    %c0 = arith.constant 0 : index
    %c0_0 = arith.constant 0 : index
    %c0_1 = arith.constant 0 : index
    %0 = vector.load %arg1[%c0, %c0_0, %c0_1] : memref<2x9x256xf32, #tpu.memory_space<vmem>>, vector<2x9x256xf32>
    %c0_2 = arith.constant 0 : index
    %c0_3 = arith.constant 0 : index
    %c0_4 = arith.constant 0 : index
    %1 = vector.load %arg2[%c0_2, %c0_3, %c0_4] : memref<2x36x256xf32, #tpu.memory_space<vmem>>, vector<2x36x256xf32>
    %cst = arith.constant dense<0xFF800000> : vector<2x256xf32>
    %2 = vector.multi_reduction <maximumf>, %0, %cst [1] : vector<2x9x256xf32> to vector<2x256xf32>
    %3 = vector.shape_cast %2 : vector<2x256xf32> to vector<2x1x256xf32>
    %4 = vector.broadcast %3 : vector<2x1x256xf32> to vector<2x9x256xf32>
    %5 = arith.subf %0, %4 : vector<2x9x256xf32>
    %6 = math.exp %5 : vector<2x9x256xf32>
    %cst_5 = arith.constant dense<0.000000e+00> : vector<2x256xf32>
    %7 = vector.multi_reduction <add>, %6, %cst_5 [1] : vector<2x9x256xf32> to vector<2x256xf32>
    %8 = vector.shape_cast %7 : vector<2x256xf32> to vector<2x1x256xf32>
    %9 = vector.extract_strided_slice %6 {offsets = [0, 0, 0], sizes = [2, 1, 256], strides = [1, 1, 1]} : vector<2x9x256xf32> to vector<2x1x256xf32>
    %10 = vector.extract_strided_slice %1 {offsets = [0, 0, 0], sizes = [2, 4, 256], strides = [1, 1, 1]} : vector<2x36x256xf32> to vector<2x4x256xf32>
    %11 = vector.broadcast %9 : vector<2x1x256xf32> to vector<2x4x256xf32>
    %12 = arith.mulf %11, %10 : vector<2x4x256xf32>
    %13 = vector.extract_strided_slice %6 {offsets = [0, 1, 0], sizes = [2, 1, 256], strides = [1, 1, 1]} : vector<2x9x256xf32> to vector<2x1x256xf32>
    %14 = vector.extract_strided_slice %1 {offsets = [0, 4, 0], sizes = [2, 4, 256], strides = [1, 1, 1]} : vector<2x36x256xf32> to vector<2x4x256xf32>
    %15 = vector.broadcast %13 : vector<2x1x256xf32> to vector<2x4x256xf32>
    %16 = arith.mulf %15, %14 : vector<2x4x256xf32>
    %17 = arith.addf %12, %16 : vector<2x4x256xf32>
    %18 = vector.extract_strided_slice %6 {offsets = [0, 2, 0], sizes = [2, 1, 256], strides = [1, 1, 1]} : vector<2x9x256xf32> to vector<2x1x256xf32>
    %19 = vector.extract_strided_slice %1 {offsets = [0, 8, 0], sizes = [2, 4, 256], strides = [1, 1, 1]} : vector<2x36x256xf32> to vector<2x4x256xf32>
    %20 = vector.broadcast %18 : vector<2x1x256xf32> to vector<2x4x256xf32>
    %21 = arith.mulf %20, %19 : vector<2x4x256xf32>
    %22 = arith.addf %17, %21 : vector<2x4x256xf32>
    %23 = vector.extract_strided_slice %6 {offsets = [0, 3, 0], sizes = [2, 1, 256], strides = [1, 1, 1]} : vector<2x9x256xf32> to vector<2x1x256xf32>
    %24 = vector.extract_strided_slice %1 {offsets = [0, 12, 0], sizes = [2, 4, 256], strides = [1, 1, 1]} : vector<2x36x256xf32> to vector<2x4x256xf32>
    %25 = vector.broadcast %23 : vector<2x1x256xf32> to vector<2x4x256xf32>
    %26 = arith.mulf %25, %24 : vector<2x4x256xf32>
    %27 = arith.addf %22, %26 : vector<2x4x256xf32>
    %28 = vector.extract_strided_slice %6 {offsets = [0, 4, 0], sizes = [2, 1, 256], strides = [1, 1, 1]} : vector<2x9x256xf32> to vector<2x1x256xf32>
    %29 = vector.extract_strided_slice %1 {offsets = [0, 16, 0], sizes = [2, 4, 256], strides = [1, 1, 1]} : vector<2x36x256xf32> to vector<2x4x256xf32>
    %30 = vector.broadcast %28 : vector<2x1x256xf32> to vector<2x4x256xf32>
    %31 = arith.mulf %30, %29 : vector<2x4x256xf32>
    %32 = arith.addf %27, %31 : vector<2x4x256xf32>
    %33 = vector.extract_strided_slice %6 {offsets = [0, 5, 0], sizes = [2, 1, 256], strides = [1, 1, 1]} : vector<2x9x256xf32> to vector<2x1x256xf32>
    %34 = vector.extract_strided_slice %1 {offsets = [0, 20, 0], sizes = [2, 4, 256], strides = [1, 1, 1]} : vector<2x36x256xf32> to vector<2x4x256xf32>
    %35 = vector.broadcast %33 : vector<2x1x256xf32> to vector<2x4x256xf32>
    %36 = arith.mulf %35, %34 : vector<2x4x256xf32>
    %37 = arith.addf %32, %36 : vector<2x4x256xf32>
    %38 = vector.extract_strided_slice %6 {offsets = [0, 6, 0], sizes = [2, 1, 256], strides = [1, 1, 1]} : vector<2x9x256xf32> to vector<2x1x256xf32>
    %39 = vector.extract_strided_slice %1 {offsets = [0, 24, 0], sizes = [2, 4, 256], strides = [1, 1, 1]} : vector<2x36x256xf32> to vector<2x4x256xf32>
    %40 = vector.broadcast %38 : vector<2x1x256xf32> to vector<2x4x256xf32>
    %41 = arith.mulf %40, %39 : vector<2x4x256xf32>
    %42 = arith.addf %37, %41 : vector<2x4x256xf32>
    %43 = vector.extract_strided_slice %6 {offsets = [0, 7, 0], sizes = [2, 1, 256], strides = [1, 1, 1]} : vector<2x9x256xf32> to vector<2x1x256xf32>
    %44 = vector.extract_strided_slice %1 {offsets = [0, 28, 0], sizes = [2, 4, 256], strides = [1, 1, 1]} : vector<2x36x256xf32> to vector<2x4x256xf32>
    %45 = vector.broadcast %43 : vector<2x1x256xf32> to vector<2x4x256xf32>
    %46 = arith.mulf %45, %44 : vector<2x4x256xf32>
    %47 = arith.addf %42, %46 : vector<2x4x256xf32>
    %48 = vector.extract_strided_slice %6 {offsets = [0, 8, 0], sizes = [2, 1, 256], strides = [1, 1, 1]} : vector<2x9x256xf32> to vector<2x1x256xf32>
    %49 = vector.extract_strided_slice %1 {offsets = [0, 32, 0], sizes = [2, 4, 256], strides = [1, 1, 1]} : vector<2x36x256xf32> to vector<2x4x256xf32>
    %50 = vector.broadcast %48 : vector<2x1x256xf32> to vector<2x4x256xf32>
    %51 = arith.mulf %50, %49 : vector<2x4x256xf32>
    %52 = arith.addf %47, %51 : vector<2x4x256xf32>
    %53 = tpu.reciprocal %8 {approx = true} : vector<2x1x256xf32> -> vector<2x1x256xf32>
    %54 = vector.broadcast %53 : vector<2x1x256xf32> to vector<2x4x256xf32>
    %55 = arith.mulf %52, %54 : vector<2x4x256xf32>
    %c0_6 = arith.constant 0 : index
    %c0_7 = arith.constant 0 : index
    %c0_8 = arith.constant 0 : index
    %56 = vector.load %arg3[%c0_6, %c0_7, %c0_8] : memref<2x4x256xf32, #tpu.memory_space<vmem>>, vector<2x4x256xf32>
    tpu.vector_store %arg3[%c0_6, %c0_7, %c0_8], %55 {strides = array<i32>} : memref<2x4x256xf32, #tpu.memory_space<vmem>>, vector<2x4x256xf32>,
    return
  }
  func.func @transform_0(%arg0: i32) -> (i32, i32, i32) {
    %c0_i32 = arith.constant 0 : i32
    %c0_i32_0 = arith.constant 0 : i32
    %c0_i32_1 = arith.constant 0 : i32
    return %c0_i32, %c0_i32_0, %arg0 : i32, i32, i32
  }
  func.func @transform_1(%arg0: i32) -> (i32, i32, i32) {
    %c0_i32 = arith.constant 0 : i32
    %c0_i32_0 = arith.constant 0 : i32
    %c0_i32_1 = arith.constant 0 : i32
    return %c0_i32, %c0_i32_0, %arg0 : i32, i32, i32
  }
  func.func @transform_2(%arg0: i32) -> (i32, i32, i32) {
    %c0_i32 = arith.constant 0 : i32
    %c0_i32_0 = arith.constant 0 : i32
    %c0_i32_1 = arith.constant 0 : i32
    return %c0_i32, %c0_i32_0, %arg0 : i32, i32, i32
  }
}

</mosaic_0001>

<bundles_post_ra>
// kernel: _lambda_.8
= control target key start
LH: loop header
LB: loop body
LE: loop exit
PB: predicated region body
PF: predicated region fallthrough
CT: control target
= control target key end

     0   :  { %s578_s9 = smov 0   ;;  %s580_s10 = smov 0   ;;  %s640_s0 = inlined_call_operand.vmem [shape: bf16[8,160], index: 0, kind: input, shape index: {}]   ;;  %s641_s1 = inlined_call_operand.vmem [shape: bf16[4,160,256], index: 1, kind: input, shape index: {}]   ;;  %s642_s2 = inlined_call_operand.vmem [shape: f32[4,4,256], index: 2, kind: output, shape index: {}]  }
   0x1   :  { %s582_s11 = smov 0  }
   0x2 LB: > { %s21_s12 = sadd.s32 1, %s557_s10  ;;  %p452_p0 = scmp.ge.s32.totalorder %s561_s11, 1  ;;  %s561_s11 = sphi %s582_s11, %s12_s11   ;;  %s557_s10 = sphi %s580_s10, %s644_s10   ;;  %s553_s9 = sphi %s578_s9, %s643_s9  }
   0x3   : > { %p22_p1 = scmp.ge.s32.totalorder %s21_s12, 4  ;;  %p133_p2 = scmp.lt.s32.totalorder %s561_s11, 5 }
   0x5   : > { %s646_s12 = smov (%p22_p1, %s21_s12), 0  ;;  %p134_p3 = pnand %p452_p0, %p133_p2 }
   0x6   : > { %p164_p4 = scmp.lt.s32.totalorder (!%p134_p3), %s553_s9, 3  ;;  %v184_v0 = vld [vmem:[%s640_s0] sm:$0xff] (!%p134_p3)  ;;  %vm311_vm0 = vcmask (!%p134_p3), 261120  }
   0x7   : > { %137 = sbr.rel (%p134_p3) target bundleno = 275 (0x113), region = 28  ;;  %v457_v1 = vcombine.high (!%p134_p3), %v184_v0, %v184_v0  ;;  %v456_v22 = vcombine.low (!%p134_p3), %v184_v0, %v184_v0 }
   0x9   : > { %478 = vmatprep.mubr.msk.bf16.mxu0 (!%p134_p3), %vm311_vm0, %v457_v1 }
   0xe   : > { %s648_s9 = smov (!%p164_p4, %s553_s9), 3 }
   0xf   : > { %s482_s15 = smul.u32 160, %s648_s9  ;;  %s481_s19 = sshll.u32 %s648_s9, 3 }
  0x10   : > { %s181_s22 = scalar_lea.vmem %s642_s2, %s481_s19 }
  0x11   : > { %s605_s18 = scalar_lea.vmem %s641_s1, %s482_s15 }
  0x12   : > { %v507_v2 = vld [vmem:[%s605_s18 + $0x4] ss:$8 sps:$4 sm:$0xff]   ;;  %v509_v3 = vld [vmem:[%s605_s18] ss:$8 sps:$4 sm:$0xff]   ;;  %v510_v4 = vld [vmem:[%s605_s18 + $0x14] ss:$8 sps:$4 sm:$0xff]  }
  0x13   : > { %315 = vmatprep.subr.bf16.mxu0 %v507_v2  ;;  %v512_v5 = vld [vmem:[%s605_s18 + $0x10] ss:$8 sps:$4 sm:$0xff]   ;;  %v513_v6 = vld [vmem:[%s605_s18 + $0x24] ss:$8 sps:$4 sm:$0xff]   ;;  %v515_v7 = vld [vmem:[%s605_s18 + $0x20] ss:$8 sps:$4 sm:$0xff]  }
  0x14   : > { %316 = vmatpush1.bf16.msra.mxu0 %v509_v3  ;;  %v516_v8 = vld [vmem:[%s605_s18 + $0x34] ss:$8 sps:$4 sm:$0xff]   ;;  %v518_v9 = vld [vmem:[%s605_s18 + $0x30] ss:$8 sps:$4 sm:$0xff]   ;;  %v519_v10 = vld [vmem:[%s605_s18 + $0x44] ss:$8 sps:$4 sm:$0xff]  }
  0x15   : > { %317 = vmatprep.subr.bf16.mxu0 %v510_v4  ;;  %v521_v11 = vld [vmem:[%s605_s18 + $0x40] ss:$8 sps:$4 sm:$0xff]   ;;  %v522_v12 = vld [vmem:[%s605_s18 + $0x54] ss:$8 sps:$4 sm:$0xff]   ;;  %v524_v13 = vld [vmem:[%s605_s18 + $0x50] ss:$8 sps:$4 sm:$0xff]  }
  0x16   : > { %v525_v14 = vld [vmem:[%s605_s18 + $0x64] ss:$8 sps:$4 sm:$0xff]   ;;  %v527_v15 = vld [vmem:[%s605_s18 + $0x60] ss:$8 sps:$4 sm:$0xff]   ;;  %v528_v16 = vld [vmem:[%s605_s18 + $0x74] ss:$8 sps:$4 sm:$0xff]  }
  0x17   : > { %v530_v17 = vld [vmem:[%s605_s18 + $0x70] ss:$8 sps:$4 sm:$0xff]   ;;  %v531_v18 = vld [vmem:[%s605_s18 + $0x84] ss:$8 sps:$4 sm:$0xff]   ;;  %v533_v19 = vld [vmem:[%s605_s18 + $0x80] ss:$8 sps:$4 sm:$0xff]  }
  0x18   : > { %318 = vmatpush1.bf16.msra.mxu0 %v512_v5  ;;  %v534_v20 = vld [vmem:[%s605_s18 + $0x94] ss:$8 sps:$4 sm:$0xff]   ;;  %v536_v21 = vld [vmem:[%s605_s18 + $0x90] ss:$8 sps:$4 sm:$0xff]  }
  0x19   : > { %319 = vmatprep.subr.bf16.mxu0 %v513_v6 }
  0x1c   : > { %320 = vmatpush1.bf16.msra.mxu0 %v515_v7 }
  0x1d   : > { %321 = vmatprep.subr.bf16.mxu0 %v516_v8 }
  0x20   : > { %322 = vmatpush1.bf16.msra.mxu0 %v518_v9 }
  0x21   : > { %323 = vmatprep.subr.bf16.mxu0 %v519_v10 }
  0x24   : > { %324 = vmatpush1.bf16.msra.mxu0 %v521_v11 }
  0x25   : > { %325 = vmatprep.subr.bf16.mxu0 %v522_v12 }
  0x28   : > { %326 = vmatpush1.bf16.msra.mxu0 %v524_v13 }
  0x29   : > { %327 = vmatprep.subr.bf16.mxu0 %v525_v14 }
  0x2c   : > { %328 = vmatpush1.bf16.msra.mxu0 %v527_v15 }
  0x2d   : > { %329 = vmatprep.subr.bf16.mxu0 %v528_v16 }
  0x30   : > { %330 = vmatpush1.bf16.msra.mxu0 %v530_v17 }
  0x31   : > { %331 = vmatprep.subr.bf16.mxu0 %v531_v18 }
  0x34   : > { %332 = vmatpush1.bf16.msra.mxu0 %v533_v19 }
  0x35   : > { %333 = vmatprep.subr.bf16.mxu0 %v534_v20 }
  0x38   : > { %334 = vmatpush1.bf16.msra.mxu0 %v536_v21 }
  0x3b   : > { %348 = vmatmul.mubr.bf16.vlgmr.msra.gmra.mrb[0].mxu0 %v456_v22 }
 0x10e   : > { %v349_v23 = vpop.f32.mrb[0].mxu0 }
 0x10f   : > { %v351_v24 = vpop.f32.mrb[1].mxu0 }
 0x110   : > { %v358_v25 = vcombine.low %v349_v23, %v351_v24  ;;  %v353_v26 = vpop.f32.mrb[2].mxu0 }
 0x111   : > { %v354_v27 = vpop.f32.mrb[3].mxu0 }
 0x112   : > { %360 = vst [vmem:[%s181_s22] sm:$0xff] %v358_v25 }
 0x113 PF: > { %s12_s11 = sadd.s32 1, %s561_s11   ;;  %s643_s9 = smov %s557_s10 }
 0x114   : > { %p9_p5 = scmp.ge.s32.totalorder %s12_s11, 6   ;;  %s644_s10 = smov %s646_s12 }
 0x116   :  { %11 = sbr.rel (!%p9_p5) target bundleno = 2 (0x2), region = 58 }

// kernel: _lambda_.10
= control target key start
LH: loop header
LB: loop body
LE: loop exit
PB: predicated region body
PF: predicated region fallthrough
CT: control target
= control target key end

     0   :  { %s780_s9 = smov 0   ;;  %s782_s10 = smov 0   ;;  %s859_s0 = inlined_call_operand.vmem [shape: bf16[128,48], index: 0, kind: input, shape index: {}]   ;;  %s860_s1 = inlined_call_operand.vmem [shape: bf16[2,48,128], index: 1, kind: input, shape index: {}]   ;;  %s861_s2 = inlined_call_operand.vmem [shape: bf16[2,128,128], index: 2, kind: output, shape index: {}]  }
   0x1   :  { %s784_s11 = smov 0  }
   0x2 LB: > { %s21_s12 = sadd.s32 1, %s759_s10  ;;  %p561_p0 = scmp.ge.s32.totalorder %s763_s11, 1  ;;  %s763_s11 = sphi %s784_s11, %s12_s11   ;;  %s759_s10 = sphi %s782_s10, %s863_s10   ;;  %s755_s9 = sphi %s780_s9, %s862_s9  }
   0x3   : > { %p22_p1 = scmp.ge.s32.totalorder %s21_s12, 2  ;;  %p131_p2 = scmp.lt.s32.totalorder %s763_s11, 3 }
   0x5   : > { %s865_s12 = smov (%p22_p1, %s21_s12), 0  ;;  %p132_p3 = pnand %p561_p0, %p131_p2 }
   0x6   : > { %p159_p4 = scmp.lt.s32.totalorder (!%p132_p3), %s755_s9, 1  ;;  %v733_v0 = vld [vmem:[%s859_s0] sm:$0xff] (!%p132_p3)   ;;  %vm256_vm0 = vcmask (!%p132_p3), 392192   ;;  %v735_v5 = vld [vmem:[%s859_s0 + $0x8] sm:$0xff] (!%p132_p3)   ;;  %v737_v7 = vld [vmem:[%s859_s0 + $0x10] sm:$0xff] (!%p132_p3)  }
   0x7   : > { %135 = sbr.rel (%p132_p3) target bundleno = 259 (0x103), region = 28  ;;  %v734_v1 = vld [vmem:[%s859_s0 + $0x20] sm:$0xff] (!%p132_p3)   ;;  %683 = vmatprep.mubr.msk.bf16.mxu0 (!%p132_p3), %vm256_vm0, %v733_v0  ;;  %v736_v6 = vld [vmem:[%s859_s0 + $0x28] sm:$0xff] (!%p132_p3)   ;;  %v738_v8 = vld [vmem:[%s859_s0 + $0x30] sm:$0xff] (!%p132_p3)  }
   0x8   : > { %691 = vmatprep.mubr.msk.bf16.mxu1 (!%p132_p3), %vm256_vm0, %v734_v1  ;;  %v739_v9 = vld [vmem:[%s859_s0 + $0x18] sm:$0xff] (!%p132_p3)  }
   0x9   : > { %v740_v10 = vld [vmem:[%s859_s0 + $0x38] sm:$0xff] (!%p132_p3)  }
   0xe   : > { %s867_s9 = smov (!%p159_p4, %s755_s9), 1 }
   0xf   : > { %s705_s17 = smul.u32 24, %s867_s9  ;;  %s602_s5 = sshll.u32 %s867_s9, 6 }
  0x10   : > { %s840_s8 = scalar_lea.vmem %s861_s2, %s602_s5 }
  0x11   : > { %s166_s20 = scalar_lea.vmem %s860_s1, %s705_s17 }
  0x12   : > { %v730_v2 = vld [vmem:[%s166_s20] sm:$0xff]   ;;  %v731_v3 = vld [vmem:[%s166_s20 + $0x8] sm:$0xff]   ;;  %v732_v4 = vld [vmem:[%s166_s20 + $0x10] sm:$0xff]  }
  0x13   : > { %677 = vmatprep.subr.bf16.mxu0 %v730_v2  ;;  %699 = vmatprep.subr.bf16.mxu1 %v730_v2 }
  0x14   : > { %678 = vmatpush3.bf16.msra.mxu0 %v730_v2  ;;  %702 = vmatpush3.bf16.msra.mxu1 %v730_v2 }
  0x15   : > { %679 = vmatprep.subr.bf16.mxu0 %v731_v3  ;;  %700 = vmatprep.subr.bf16.mxu1 %v731_v3 }
  0x18   : > { %680 = vmatpush3.bf16.msra.mxu0 %v731_v3  ;;  %703 = vmatpush3.bf16.msra.mxu1 %v731_v3 }
  0x19   : > { %681 = vmatprep.subr.bf16.mxu0 %v732_v4  ;;  %701 = vmatprep.subr.bf16.mxu1 %v732_v4 }
  0x1c   : > { %682 = vmatpush3.bf16.msra.mxu0 %v732_v4  ;;  %704 = vmatpush3.bf16.msra.mxu1 %v732_v4 }
  0x1f   : > { %684 = vmatmul.mubr.msk.bf16.vlgmr.msra.gmra.mrb[0].mxu0 %vm256_vm0, %v735_v5  ;;  %692 = vmatmul.mubr.msk.bf16.vlgmr.msra.gmra.mrb[0].mxu1 %vm256_vm0, %v736_v6 }
  0x20   : > { %687 = vmatprep.mubr.msk.bf16.mxu0 %vm256_vm0, %v737_v7  ;;  %695 = vmatprep.mubr.msk.bf16.mxu1 %vm256_vm0, %v738_v8 }
  0x27   : > { %688 = vmatmul.mubr.msk.bf16.gmra.mrb[4].mxu0 %vm256_vm0, %v739_v9  ;;  %696 = vmatmul.mubr.msk.bf16.gmra.mrb[4].mxu1 %vm256_vm0, %v740_v10 }
  0xf2   : > { %v685_v11 = vpop.f32.mrb[0].mxu0  ;;  %v693_v12 = vpop.f32.mrb[0].mxu1 }
  0xf3   : > { %v315_v13 = vpop.f32.mrb[1].mxu0  ;;  %v347_v14 = vpop.f32.mrb[1].mxu1  ;;  %v380_v17 = vmax.f32 %v685_v11, 0.0  ;;  %v388_v18 = vmax.f32 %v693_v12, 0.0 }
  0xf4   : > { %v686_v15 = vpop.f32.mrb[2].mxu0  ;;  %v694_v16 = vpop.f32.mrb[2].mxu1  ;;  %v378_v23 = vmax.f32 %v315_v13, 0.0  ;;  %v386_v24 = vmax.f32 %v347_v14, 0.0 }
  0xf5   : > { %v381_v19 = vmax.f32 %v686_v15, 0.0  ;;  %v389_v20 = vmax.f32 %v694_v16, 0.0  ;;  %v318_v21 = vpop.f32.mrb[3].mxu0  ;;  %v350_v22 = vpop.f32.mrb[3].mxu1 }
  0xf6   : > { %v379_v25 = vmax.f32 %v318_v21, 0.0  ;;  %v387_v26 = vmax.f32 %v350_v22, 0.0 }
  0xf7   : > { %v627_v27 = vpack.c.bf16 %v381_v19, %v380_v17  ;;  %v647_v28 = vpack.c.bf16 %v389_v20, %v388_v18 }
  0xf8   : > { %v622_v29 = vpack.c.bf16 %v379_v25, %v378_v23  ;;  %v642_v30 = vpack.c.bf16 %v387_v26, %v386_v24 }
  0xf9   : > { %659 = vst [vmem:[%s840_s8 + $0x8] sm:$0xff] %v627_v27   ;;  %663 = vst [vmem:[%s840_s8 + $0x28] sm:$0xff] %v647_v28  }
  0xfa   : > { %623 = vst [vmem:[%s840_s8] sm:$0xff] %v622_v29   ;;  %662 = vst [vmem:[%s840_s8 + $0x20] sm:$0xff] %v642_v30   ;;  %v689_v31 = vpop.f32.mrb[4].mxu0  ;;  %v697_v32 = vpop.f32.mrb[4].mxu1 }
  0xfb   : > { %v331_v33 = vpop.f32.mrb[5].mxu0  ;;  %v363_v34 = vpop.f32.mrb[5].mxu1  ;;  %v384_v37 = vmax.f32 %v689_v31, 0.0  ;;  %v392_v38 = vmax.f32 %v697_v32, 0.0 }
  0xfc   : > { %v690_v35 = vpop.f32.mrb[6].mxu0  ;;  %v698_v36 = vpop.f32.mrb[6].mxu1  ;;  %v382_v43 = vmax.f32 %v331_v33, 0.0  ;;  %v390_v44 = vmax.f32 %v363_v34, 0.0 }
  0xfd   : > { %v385_v39 = vmax.f32 %v690_v35, 0.0  ;;  %v393_v40 = vmax.f32 %v698_v36, 0.0  ;;  %v334_v41 = vpop.f32.mrb[7].mxu0  ;;  %v366_v42 = vpop.f32.mrb[7].mxu1 }
  0xfe   : > { %v383_v45 = vmax.f32 %v334_v41, 0.0  ;;  %v391_v46 = vmax.f32 %v366_v42, 0.0 }
  0xff   : > { %v637_v47 = vpack.c.bf16 %v385_v39, %v384_v37  ;;  %v657_v48 = vpack.c.bf16 %v393_v40, %v392_v38 }
 0x100   : > { %v632_v49 = vpack.c.bf16 %v383_v45, %v382_v43  ;;  %v652_v50 = vpack.c.bf16 %v391_v46, %v390_v44 }
 0x101   : > { %661 = vst [vmem:[%s840_s8 + $0x18] sm:$0xff] %v637_v47   ;;  %665 = vst [vmem:[%s840_s8 + $0x38] sm:$0xff] %v657_v48  }
 0x102   : > { %660 = vst [vmem:[%s840_s8 + $0x10] sm:$0xff] %v632_v49   ;;  %664 = vst [vmem:[%s840_s8 + $0x30] sm:$0xff] %v652_v50  }
 0x103 PF: > { %s12_s11 = sadd.s32 1, %s763_s11   ;;  %s862_s9 = smov %s759_s10 }
 0x104   : > { %p9_p5 = scmp.ge.s32.totalorder %s12_s11, 4   ;;  %s863_s10 = smov %s865_s12 }
 0x106   :  { %11 = sbr.rel (!%p9_p5) target bundleno = 2 (0x2), region = 58 }

// kernel: _lambda_.11
= control target key start
LH: loop header
LB: loop body
LE: loop exit
PB: predicated region body
PF: predicated region fallthrough
CT: control target
= control target key end

     0   :  { %s1938_s9 = smov 0   ;;  %s1940_s10 = smov 0   ;;  %s2202_s0 = inlined_call_operand.vmem [shape: bf16[64,1168], index: 0, kind: input, shape index: {}]   ;;  %s2203_s1 = inlined_call_operand.vmem [shape: bf16[2,1168,128], index: 1, kind: input, shape index: {}]   ;;  %s2204_s2 = inlined_call_operand.vmem [shape: f32[2,64,128], index: 2, kind: output, shape index: {}]  }
   0x1   :  { %s1942_s11 = smov 0  }
   0x2 LB: > { %s21_s12 = sadd.s32 1, %s1916_s10  ;;  %p1437_p0 = scmp.ge.s32.totalorder %s1920_s11, 1  ;;  %s1920_s11 = sphi %s1942_s11, %s12_s11   ;;  %s1916_s10 = sphi %s1940_s10, %s2206_s10   ;;  %s1912_s9 = sphi %s1938_s9, %s2205_s9  }
   0x3   : > { %p22_p1 = scmp.ge.s32.totalorder %s21_s12, 2  ;;  %p131_p2 = scmp.lt.s32.totalorder %s1920_s11, 3 }
   0x5   : > { %s2208_s12 = smov (%p22_p1, %s21_s12), 0  ;;  %p132_p3 = pnand %p1437_p0, %p131_p2 }
   0x6   : > { %p159_p4 = scmp.lt.s32.totalorder (!%p132_p3), %s1912_s9, 1  ;;  %v1799_v0 = vld [vmem:[%s2202_s0 + $0x4] ss:$40 sps:$4 sm:$0xff] (!%p132_p3)   ;;  %v1797_v32 = vld [vmem:[%s2202_s0] ss:$40 sps:$4 sm:$0xff] (!%p132_p3)   ;;  %vm996_vm0 = vcmask (!%p132_p3), 130048  }
   0x7   : > { %135 = sbr.rel (%p132_p3) target bundleno = 348 (0x15c), region = 28  ;;  %v1802_v1 = vld [vmem:[%s2202_s0 + $0xc] ss:$40 sps:$4 sm:$0xff] (!%p132_p3)   ;;  %1041 = vmatprep.mubr.bf16.mxu0 (!%p132_p3), %v1799_v0  ;;  %v1800_v34 = vld [vmem:[%s2202_s0 + $0x8] ss:$40 sps:$4 sm:$0xff] (!%p132_p3)  }
   0x8   : > { %1106 = vmatprep.mubr.bf16.mxu1 (!%p132_p3), %v1802_v1  ;;  %v1811_v36 = vld [vmem:[%s2202_s0 + $0x54] ss:$40 sps:$4 sm:$0xff] (!%p132_p3)   ;;  %v1815_v44 = vld [vmem:[%s2202_s0 + $0x50] ss:$40 sps:$4 sm:$0xff] (!%p132_p3)   ;;  %v1825_v48 = vld [vmem:[%s2202_s0 + $0xa4] ss:$40 sps:$4 sm:$0xff] (!%p132_p3)  }
   0x9   : > { %v1813_v38 = vld [vmem:[%s2202_s0 + $0x5c] ss:$40 sps:$4 sm:$0xff] (!%p132_p3)   ;;  %v1816_v46 = vld [vmem:[%s2202_s0 + $0x58] ss:$40 sps:$4 sm:$0xff] (!%p132_p3)   ;;  %v1827_v57 = vld [vmem:[%s2202_s0 + $0xac] ss:$40 sps:$4 sm:$0xff] (!%p132_p3)  }
   0xa   : > { %v1829_v58 = vld [vmem:[%s2202_s0 + $0xa0] ss:$40 sps:$4 sm:$0xff] (!%p132_p3)  }
   0xb   : > { %v1830_v59 = vld [vmem:[%s2202_s0 + $0xa8] ss:$40 sps:$4 sm:$0xff] (!%p132_p3)  }
   0xe   : > { %s2210_s9 = smov (!%p159_p4, %s1912_s9), 1 }
   0xf   : > { %s1739_s17 = smul.u32 584, %s2210_s9  ;;  %s1560_s27 = sshll.u32 %s2210_s9, 6 }
  0x10   : > { %s2183_s30 = scalar_lea.vmem %s2204_s2, %s1560_s27 }
  0x11   : > { %s1968_s20 = scalar_lea.vmem %s2203_s1, %s1739_s17 }
  0x12   : > { %v1765_v2 = vld [vmem:[%s1968_s20 + $0x40] sm:$0xff]   ;;  %v1769_v6 = vld [vmem:[%s1968_s20 + $0x48] sm:$0xff]   ;;  %v1773_v10 = vld [vmem:[%s1968_s20 + $0x50] sm:$0xff]  }
  0x13   : > { %v1766_v3 = vld [vmem:[%s1968_s20 + $0xc0] sm:$0xff]   ;;  %1561 = vmatprep.subr.bf16.mxu0 %v1765_v2  ;;  %v1770_v7 = vld [vmem:[%s1968_s20 + $0xc8] sm:$0xff]   ;;  %v1774_v11 = vld [vmem:[%s1968_s20 + $0xd0] sm:$0xff]  }
  0x14   : > { %v1767_v4 = vld [vmem:[%s1968_s20] sm:$0xff]   ;;  %1601 = vmatprep.subr.bf16.mxu1 %v1766_v3  ;;  %v1771_v8 = vld [vmem:[%s1968_s20 + $0x8] sm:$0xff]   ;;  %v1775_v12 = vld [vmem:[%s1968_s20 + $0x10] sm:$0xff]  }
  0x15   : > { %v1768_v5 = vld [vmem:[%s1968_s20 + $0x80] sm:$0xff]   ;;  %1562 = vmatpush3.bf16.msra.mxu0 %v1767_v4  ;;  %v1772_v9 = vld [vmem:[%s1968_s20 + $0x88] sm:$0xff]   ;;  %v1776_v13 = vld [vmem:[%s1968_s20 + $0x90] sm:$0xff]  }
  0x16   : > { %1602 = vmatpush3.bf16.msra.mxu1 %v1768_v5  ;;  %1563 = vmatprep.subr.bf16.mxu0 %v1769_v6  ;;  %v1777_v14 = vld [vmem:[%s1968_s20 + $0x58] sm:$0xff]   ;;  %v1781_v18 = vld [vmem:[%s1968_s20 + $0x60] sm:$0xff]   ;;  %v1785_v22 = vld [vmem:[%s1968_s20 + $0x68] sm:$0xff]  }
  0x17   : > { %1603 = vmatprep.subr.bf16.mxu1 %v1770_v7  ;;  %v1778_v15 = vld [vmem:[%s1968_s20 + $0xd8] sm:$0xff]   ;;  %v1782_v19 = vld [vmem:[%s1968_s20 + $0xe0] sm:$0xff]   ;;  %v1786_v23 = vld [vmem:[%s1968_s20 + $0xe8] sm:$0xff]  }
  0x18   : > { %v1779_v16 = vld [vmem:[%s1968_s20 + $0x18] sm:$0xff]   ;;  %v1783_v20 = vld [vmem:[%s1968_s20 + $0x20] sm:$0xff]   ;;  %v1787_v24 = vld [vmem:[%s1968_s20 + $0x28] sm:$0xff]  }
  0x19   : > { %1564 = vmatpush3.bf16.msra.mxu0 %v1771_v8  ;;  %v1780_v17 = vld [vmem:[%s1968_s20 + $0x98] sm:$0xff]   ;;  %v1784_v21 = vld [vmem:[%s1968_s20 + $0xa0] sm:$0xff]   ;;  %v1788_v25 = vld [vmem:[%s1968_s20 + $0xa8] sm:$0xff]  }
  0x1a   : > { %1604 = vmatpush3.bf16.msra.mxu1 %v1772_v9  ;;  %1565 = vmatprep.subr.bf16.mxu0 %v1773_v10  ;;  %v1789_v26 = vld [vmem:[%s1968_s20 + $0x70] sm:$0xff]   ;;  %v1793_v30 = vld [vmem:[%s1968_s20 + $0x78] sm:$0xff]   ;;  %v1803_v37 = vld [vmem:[%s1968_s20 + $0x140] sm:$0xff]  }
  0x1b   : > { %1605 = vmatprep.subr.bf16.mxu1 %v1774_v11  ;;  %v1790_v27 = vld [vmem:[%s1968_s20 + $0xf0] sm:$0xff]   ;;  %v1794_v31 = vld [vmem:[%s1968_s20 + $0xf8] sm:$0xff]   ;;  %v1804_v39 = vld [vmem:[%s1968_s20 + $0x1c0] sm:$0xff]  }
  0x1c   : > { %v1791_v28 = vld [vmem:[%s1968_s20 + $0x30] sm:$0xff]   ;;  %v1795_v33 = vld [vmem:[%s1968_s20 + $0x38] sm:$0xff]   ;;  %v1805_v40 = vld [vmem:[%s1968_s20 + $0x100] sm:$0xff]  }
  0x1d   : > { %1566 = vmatpush3.bf16.msra.mxu0 %v1775_v12  ;;  %v1792_v29 = vld [vmem:[%s1968_s20 + $0xb0] sm:$0xff]   ;;  %v1796_v35 = vld [vmem:[%s1968_s20 + $0xb8] sm:$0xff]   ;;  %v1806_v41 = vld [vmem:[%s1968_s20 + $0x180] sm:$0xff]  }
  0x1e   : > { %1606 = vmatpush3.bf16.msra.mxu1 %v1776_v13  ;;  %1567 = vmatprep.subr.bf16.mxu0 %v1777_v14  ;;  %v1807_v42 = vld [vmem:[%s1968_s20 + $0x148] sm:$0xff]   ;;  %v1817_v49 = vld [vmem:[%s1968_s20 + $0x150] sm:$0xff]   ;;  %v1821_v53 = vld [vmem:[%s1968_s20 + $0x158] sm:$0xff]  }
  0x1f   : > { %1607 = vmatprep.subr.bf16.mxu1 %v1778_v15  ;;  %v1808_v43 = vld [vmem:[%s1968_s20 + $0x1c8] sm:$0xff]   ;;  %v1818_v50 = vld [vmem:[%s1968_s20 + $0x1d0] sm:$0xff]   ;;  %v1822_v54 = vld [vmem:[%s1968_s20 + $0x1d8] sm:$0xff]  }
  0x20   : > { %v1809_v45 = vld [vmem:[%s1968_s20 + $0x108] sm:$0xff]   ;;  %v1819_v51 = vld [vmem:[%s1968_s20 + $0x110] sm:$0xff]   ;;  %v1823_v55 = vld [vmem:[%s1968_s20 + $0x118] sm:$0xff]  }
  0x21   : > { %1568 = vmatpush3.bf16.msra.mxu0 %v1779_v16  ;;  %v1810_v47 = vld [vmem:[%s1968_s20 + $0x188] sm:$0xff]   ;;  %v1820_v52 = vld [vmem:[%s1968_s20 + $0x190] sm:$0xff]   ;;  %v1824_v56 = vld [vmem:[%s1968_s20 + $0x198] sm:$0xff]  }
  0x22   : > { %1608 = vmatpush3.bf16.msra.mxu1 %v1780_v17  ;;  %1569 = vmatprep.subr.bf16.mxu0 %v1781_v18  ;;  %v1831_v60 = vld [vmem:[%s1968_s20 + $0x160] sm:$0xff]   ;;  %v1835_v0 = vld [vmem:[%s1968_s20 + $0x168] sm:$0xff]   ;;  %v1839_v4 = vld [vmem:[%s2202_s0 + $0xf4] ss:$40 sps:$4 sm:$0xff]  }
  0x23   : > { %1609 = vmatprep.subr.bf16.mxu1 %v1782_v19  ;;  %v1832_v61 = vld [vmem:[%s1968_s20 + $0x1e0] sm:$0xff]   ;;  %v1836_v1 = vld [vmem:[%s1968_s20 + $0x1e8] sm:$0xff]   ;;  %v1843_v6 = vld [vmem:[%s2202_s0 + $0xf0] ss:$40 sps:$4 sm:$0xff]   ;;  %v1922_v19 = vmov 0  }
  0x24   : > { %v1833_v62 = vld [vmem:[%s1968_s20 + $0x120] sm:$0xff]   ;;  %v1837_v2 = vld [vmem:[%s1968_s20 + $0x128] sm:$0xff]   ;;  %v1845_v8 = vld [vmem:[%s1968_s20 + $0x170] sm:$0xff]  }
  0x25   : > { %1570 = vmatpush3.bf16.msra.mxu0 %v1783_v20  ;;  %v1834_v63 = vld [vmem:[%s1968_s20 + $0x1a0] sm:$0xff]   ;;  %v1838_v3 = vld [vmem:[%s1968_s20 + $0x1a8] sm:$0xff]   ;;  %v1846_v9 = vld [vmem:[%s1968_s20 + $0x1f0] sm:$0xff]  }
  0x26   : > { %1610 = vmatpush3.bf16.msra.mxu1 %v1784_v21  ;;  %1571 = vmatprep.subr.bf16.mxu0 %v1785_v22  ;;  %v1841_v5 = vld [vmem:[%s2202_s0 + $0xfc] ss:$40 sps:$4 sm:$0xff]   ;;  %v1844_v7 = vld [vmem:[%s2202_s0 + $0xf8] ss:$40 sps:$4 sm:$0xff]   ;;  %v1847_v10 = vld [vmem:[%s1968_s20 + $0x130] sm:$0xff]  }
  0x27   : > { %1611 = vmatprep.subr.bf16.mxu1 %v1786_v23  ;;  %v1848_v11 = vld [vmem:[%s1968_s20 + $0x1b0] sm:$0xff]   ;;  %v1849_v12 = vld [vmem:[%s1968_s20 + $0x178] sm:$0xff]   ;;  %v1859_v21 = vld [vmem:[%s1968_s20 + $0x200] sm:$0xff]  }
  0x28   : > { %v1850_v13 = vld [vmem:[%s1968_s20 + $0x1f8] sm:$0xff]   ;;  %v1860_v22 = vld [vmem:[%s1968_s20 + $0x208] sm:$0xff]  }
  0x29   : > { %1572 = vmatpush3.bf16.msra.mxu0 %v1787_v24  ;;  %v1851_v14 = vld [vmem:[%s1968_s20 + $0x138] sm:$0xff]   ;;  %v1861_v23 = vld [vmem:[%s2202_s0 + $0x64] ss:$40 sps:$4 sm:$0xff]   ;;  %v1863_v24 = vld [vmem:[%s2202_s0 + $0x60] ss:$40 sps:$4 sm:$0xff]  }
  0x2a   : > { %1612 = vmatpush3.bf16.msra.mxu1 %v1788_v25  ;;  %1573 = vmatprep.subr.bf16.mxu0 %v1789_v26  ;;  %v1852_v15 = vld [vmem:[%s1968_s20 + $0x1b8] sm:$0xff]   ;;  %v1864_v25 = vld [vmem:[%s2202_s0 + $0x6c] ss:$40 sps:$4 sm:$0xff]   ;;  %v1866_v26 = vld [vmem:[%s2202_s0 + $0x68] ss:$40 sps:$4 sm:$0xff]  }
  0x2b   : > { %1613 = vmatprep.subr.bf16.mxu1 %v1790_v27  ;;  %v1853_v16 = vld [vmem:[%s2202_s0 + $0x10] ss:$40 sps:$4 sm:$0xff]   ;;  %v1855_v17 = vld [vmem:[%s2202_s0 + $0x14] ss:$40 sps:$4 sm:$0xff]  }
  0x2c   : > { %v1856_v18 = vld [vmem:[%s2202_s0 + $0x18] ss:$40 sps:$4 sm:$0xff]   ;;  %v1858_v20 = vld [vmem:[%s2202_s0 + $0x1c] ss:$40 sps:$4 sm:$0xff]   ;;  %v1867_v27 = vld [vmem:[%s1968_s20 + $0x210] sm:$0xff]  }
  0x2d   : > { %1574 = vmatpush3.bf16.msra.mxu0 %v1791_v28  ;;  %v1869_v28 = vld [vmem:[%s2202_s0 + $0xb4] ss:$40 sps:$4 sm:$0xff]  }
  0x2e   : > { %1614 = vmatpush3.bf16.msra.mxu1 %v1792_v29  ;;  %1575 = vmatprep.subr.bf16.mxu0 %v1793_v30  ;;  %v1872_v29 = vld [vmem:[%s2202_s0 + $0xbc] ss:$40 sps:$4 sm:$0xff]  }
  0x2f   : > { %1615 = vmatprep.subr.bf16.mxu1 %v1794_v31  ;;  %v1868_v30 = vld [vmem:[%s1968_s20 + $0x218] sm:$0xff]  }
  0x30   : > { %v1871_v31 = vld [vmem:[%s2202_s0 + $0xb0] ss:$40 sps:$4 sm:$0xff]  }
  0x31   : > { %1576 = vmatpush3.bf16.msra.mxu0 %v1795_v33  ;;  %v1877_v33 = vld [vmem:[%s2202_s0 + $0x104] ss:$40 sps:$4 sm:$0xff]  }
  0x32   : > { %1616 = vmatpush3.bf16.msra.mxu1 %v1796_v35  ;;  %1641 = vmatprep.subr.bf16.mxu0 %v1803_v37  ;;  %v1880_v35 = vld [vmem:[%s2202_s0 + $0x10c] ss:$40 sps:$4 sm:$0xff]   ;;  %v1879_v37 = vld [vmem:[%s2202_s0 + $0x100] ss:$40 sps:$4 sm:$0xff]  }
  0x33   : > { %1681 = vmatprep.subr.bf16.mxu1 %v1804_v39  ;;  %v1882_v39 = vld [vmem:[%s2202_s0 + $0x108] ss:$40 sps:$4 sm:$0xff]  }
  0x34   : > { %1042 = vmatmul.mubr.bf16.vlgmr.msra.gmra.mrb[0].mxu0 %v1797_v32  ;;  %v1874_v32 = vld [vmem:[%s2202_s0 + $0xb8] ss:$40 sps:$4 sm:$0xff]  }
  0x35   : > { %1107 = vmatmul.mubr.bf16.vlgmr.msra.gmra.mrb[0].mxu1 %v1800_v34  ;;  %1642 = vmatpush3.bf16.msra.mxu0 %v1805_v40  ;;  %v1875_v34 = vld [vmem:[%s1968_s20 + $0x220] sm:$0xff]   ;;  %v1883_v40 = vld [vmem:[%s1968_s20 + $0x230] sm:$0xff]  }
  0x36   : > { %1682 = vmatpush3.bf16.msra.mxu1 %v1806_v41  ;;  %1049 = vmatprep.mubr.bf16.mxu0 %v1811_v36  ;;  %v1876_v36 = vld [vmem:[%s1968_s20 + $0x228] sm:$0xff]  }
  0x37   : > { %1643 = vmatprep.subr.bf16.mxu0 %v1807_v42  ;;  %1114 = vmatprep.mubr.bf16.mxu1 %v1813_v38  ;;  %v1888_v38 = vld [vmem:[%s2202_s0 + $0x24] ss:$40 sps:$4 sm:$0xff]   ;;  %v1884_v42 = vld [vmem:[%s1968_s20 + $0x238] sm:$0xff]  }
  0x38   : > { %1683 = vmatprep.subr.bf16.mxu1 %v1808_v43  ;;  %v1891_v41 = vld [vmem:[%s2202_s0 + $0xc4] ss:$40 sps:$4 sm:$0xff]  }
  0x39   : > { %1644 = vmatpush3.bf16.msra.mxu0 %v1809_v45  ;;  %v1885_v43 = vld [vmem:[%s1968_s20 + $0x240] sm:$0xff]  }
  0x3a   : > { %1684 = vmatpush3.bf16.msra.mxu1 %v1810_v47  ;;  %1645 = vmatprep.subr.bf16.mxu0 %v1817_v49  ;;  %v1889_v45 = vld [vmem:[%s2202_s0 + $0xc0] ss:$40 sps:$4 sm:$0xff]   ;;  %v1894_v47 = vld [vmem:[%s2202_s0 + $0x114] ss:$40 sps:$4 sm:$0xff]   ;;  %v1897_v49 = vld [vmem:[%s2202_s0 + $0x110] ss:$40 sps:$4 sm:$0xff]  }
  0x3b   : > { %1685 = vmatprep.subr.bf16.mxu1 %v1818_v50 }
  0x3c   : > { %1050 = vmatmul.mubr.bf16.gmra.mrb[4].mxu0 %v1815_v44  ;;  %v1886_v44 = vld [vmem:[%s2202_s0 + $0x20] ss:$40 sps:$4 sm:$0xff]  }
  0x3d   : > { %1115 = vmatmul.mubr.bf16.gmra.mrb[4].mxu1 %v1816_v46  ;;  %1646 = vmatpush3.bf16.msra.mxu0 %v1819_v51  ;;  %v1892_v46 = vld [vmem:[%s2202_s0 + $0x74] ss:$40 sps:$4 sm:$0xff]  }
  0x3e   : > { %1686 = vmatpush3.bf16.msra.mxu1 %v1820_v52  ;;  %1057 = vmatprep.mubr.bf16.mxu0 %v1825_v48  ;;  %v1896_v48 = vld [vmem:[%s2202_s0 + $0x70] ss:$40 sps:$4 sm:$0xff]  }
  0x3f   : > { %1647 = vmatprep.subr.bf16.mxu0 %v1821_v53  ;;  %1687 = vmatprep.subr.bf16.mxu1 %v1822_v54 }
  0x40   : > { %1122 = vmatprep.mubr.bf16.mxu1 %v1827_v57 }
  0x41   : > { %1648 = vmatpush3.bf16.msra.mxu0 %v1823_v55 }
  0x42   : > { %1688 = vmatpush3.bf16.msra.mxu1 %v1824_v56  ;;  %1649 = vmatprep.subr.bf16.mxu0 %v1831_v60 }
  0x43   : > { %1689 = vmatprep.subr.bf16.mxu1 %v1832_v61 }
  0x44   : > { %1058 = vmatmul.mubr.bf16.gmra.mrb[8].mxu0 %v1829_v58 }
  0x45   : > { %1123 = vmatmul.mubr.bf16.gmra.mrb[8].mxu1 %v1830_v59  ;;  %1650 = vmatpush3.bf16.msra.mxu0 %v1833_v62 }
  0x46   : > { %1690 = vmatpush3.bf16.msra.mxu1 %v1834_v63  ;;  %1651 = vmatprep.subr.bf16.mxu0 %v1835_v0 }
  0x47   : > { %1691 = vmatprep.subr.bf16.mxu1 %v1836_v1  ;;  %1065 = vmatprep.mubr.bf16.mxu0 %v1839_v4 }
  0x48   : > { %1130 = vmatprep.mubr.bf16.mxu1 %v1841_v5 }
  0x49   : > { %1652 = vmatpush3.bf16.msra.mxu0 %v1837_v2 }
  0x4a   : > { %1692 = vmatpush3.bf16.msra.mxu1 %v1838_v3  ;;  %1653 = vmatprep.subr.bf16.mxu0 %v1845_v8 }
  0x4b   : > { %1693 = vmatprep.subr.bf16.mxu1 %v1846_v9 }
  0x4c   : > { %1066 = vmatmul.mubr.bf16.gmra.mrb[12].mxu0 %v1843_v6 }
  0x4d   : > { %1131 = vmatmul.mubr.bf16.gmra.mrb[12].mxu1 %v1844_v7  ;;  %1654 = vmatpush3.bf16.msra.mxu0 %v1847_v10 }
  0x4e   : > { %1694 = vmatpush3.bf16.msra.mxu1 %v1848_v11  ;;  %1655 = vmatprep.subr.bf16.mxu0 %v1849_v12 }
  0x4f   : > { %1695 = vmatprep.subr.bf16.mxu1 %v1850_v13  ;;  %1171 = vmatprep.mubr.bf16.mxu0 %v1855_v17 }
  0x50   : > { %1236 = vmatprep.mubr.bf16.mxu1 %v1858_v20 }
  0x51   : > { %1656 = vmatpush3.bf16.msra.mxu0 %v1851_v14 }
  0x52   : > { %1696 = vmatpush3.bf16.msra.mxu1 %v1852_v15  ;;  %1269 = vmatprep.subr.bf16.mxu0 %v1922_v19 }
  0x53   : > { %1721 = vmatprep.subr.bf16.mxu1 %v1922_v19 }
  0x54   : > { %1172 = vmatmul.mubr.bf16.vlgmr.msra.gmra.mrb[16].mxu0 %v1853_v16 }
  0x55   : > { %1237 = vmatmul.mubr.bf16.vlgmr.msra.gmra.mrb[16].mxu1 %v1856_v18  ;;  %1270 = vmatpush1.bf16.msra.mxu0 %v1859_v21 }
  0x56   : > { %1730 = vmatpush1.bf16.msra.mxu1 %v1859_v21  ;;  %1271 = vmatprep.subr.bf16.mxu0 %v1922_v19 }
  0x57   : > { %1722 = vmatprep.subr.bf16.mxu1 %v1922_v19  ;;  %1179 = vmatprep.mubr.bf16.mxu0 %v1861_v23 }
  0x58   : > { %1244 = vmatprep.mubr.bf16.mxu1 %v1864_v25 }
  0x59   : > { %1272 = vmatpush1.bf16.msra.mxu0 %v1860_v22 }
  0x5a   : > { %1731 = vmatpush1.bf16.msra.mxu1 %v1860_v22  ;;  %1273 = vmatprep.subr.bf16.mxu0 %v1922_v19 }
  0x5b   : > { %1723 = vmatprep.subr.bf16.mxu1 %v1922_v19 }
  0x5c   : > { %1180 = vmatmul.mubr.bf16.gmra.mrb[20].mxu0 %v1863_v24 }
  0x5d   : > { %1187 = vmatprep.mubr.bf16.mxu0 %v1869_v28  ;;  %1245 = vmatmul.mubr.bf16.gmra.mrb[20].mxu1 %v1866_v26 }
  0x5e   : > { %1274 = vmatpush1.bf16.msra.mxu0 %v1867_v27  ;;  %1732 = vmatpush1.bf16.msra.mxu1 %v1867_v27 }
  0x5f   : > { %1275 = vmatprep.subr.bf16.mxu0 %v1922_v19  ;;  %1724 = vmatprep.subr.bf16.mxu1 %v1922_v19 }
  0x60   : > { %1252 = vmatprep.mubr.bf16.mxu1 %v1872_v29 }
  0x62   : > { %1276 = vmatpush1.bf16.msra.mxu0 %v1868_v30  ;;  %1733 = vmatpush1.bf16.msra.mxu1 %v1868_v30 }
  0x63   : > { %1277 = vmatprep.subr.bf16.mxu0 %v1922_v19  ;;  %1725 = vmatprep.subr.bf16.mxu1 %v1922_v19 }
  0x64   : > { %1188 = vmatmul.mubr.bf16.gmra.mrb[24].mxu0 %v1871_v31 }
  0x65   : > { %1195 = vmatprep.mubr.bf16.mxu0 %v1877_v33  ;;  %1253 = vmatmul.mubr.bf16.gmra.mrb[24].mxu1 %v1874_v32 }
  0x66   : > { %1278 = vmatpush1.bf16.msra.mxu0 %v1875_v34  ;;  %1734 = vmatpush1.bf16.msra.mxu1 %v1875_v34 }
  0x67   : > { %1279 = vmatprep.subr.bf16.mxu0 %v1922_v19  ;;  %1726 = vmatprep.subr.bf16.mxu1 %v1922_v19 }
  0x68   : > { %1260 = vmatprep.mubr.bf16.mxu1 %v1880_v35 }
  0x6a   : > { %1280 = vmatpush1.bf16.msra.mxu0 %v1876_v36  ;;  %1735 = vmatpush1.bf16.msra.mxu1 %v1876_v36 }
  0x6b   : > { %1281 = vmatprep.subr.bf16.mxu0 %v1922_v19  ;;  %1727 = vmatprep.subr.bf16.mxu1 %v1922_v19 }
  0x6c   : > { %1196 = vmatmul.mubr.bf16.gmra.mrb[28].mxu0 %v1879_v37 }
  0x6d   : > { %1554 = vmatprep.mubr.msk.bf16.mxu0 %vm996_vm0, %v1888_v38  ;;  %1261 = vmatmul.mubr.bf16.gmra.mrb[28].mxu1 %v1882_v39 }
  0x6e   : > { %1282 = vmatpush1.bf16.msra.mxu0 %v1883_v40  ;;  %1736 = vmatpush1.bf16.msra.mxu1 %v1883_v40 }
  0x6f   : > { %1283 = vmatprep.subr.bf16.mxu0 %v1922_v19  ;;  %1728 = vmatprep.subr.bf16.mxu1 %v1922_v19 }
  0x70   : > { %1556 = vmatprep.mubr.msk.bf16.mxu1 %vm996_vm0, %v1891_v41 }
  0x72   : > { %1284 = vmatpush1.bf16.msra.mxu0 %v1884_v42  ;;  %1737 = vmatpush1.bf16.msra.mxu1 %v1884_v42 }
  0x73   : > { %1285 = vmatprep.subr.bf16.mxu0 %v1922_v19  ;;  %1729 = vmatprep.subr.bf16.mxu1 %v1922_v19 }
  0x76   : > { %1286 = vmatpush1.bf16.msra.mxu0 %v1885_v43  ;;  %1738 = vmatpush1.bf16.msra.mxu1 %v1885_v43 }
  0x79   : > { %1302 = vmatmul.mubr.bf16.vlgmr.msra.gmra.mrb[32].mxu0 %v1886_v44  ;;  %1318 = vmatmul.mubr.bf16.vlgmr.msra.gmra.mrb[32].mxu1 %v1889_v45 }
  0x7a   : > { %1555 = vmatprep.mubr.msk.bf16.mxu0 %vm996_vm0, %v1892_v46  ;;  %1557 = vmatprep.mubr.msk.bf16.mxu1 %vm996_vm0, %v1894_v47 }
  0x81   : > { %1310 = vmatmul.mubr.bf16.gmra.mrb[36].mxu0 %v1896_v48  ;;  %1326 = vmatmul.mubr.bf16.gmra.mrb[36].mxu1 %v1897_v49 }
 0x107   : > { %v1577_v50 = vpop.f32.mrb[0].mxu0 }
 0x108   : > { %v1617_v51 = vpop.f32.mrb[0].mxu1  ;;  %v1578_v52 = vpop.f32.mrb[1].mxu0 }
 0x109   : > { %v1579_v53 = vadd.f32 %v1578_v52, %v1577_v50  ;;  %v1618_v54 = vpop.f32.mrb[1].mxu1  ;;  %v1580_v55 = vpop.f32.mrb[2].mxu0 }
 0x10a   : > { %v1619_v56 = vadd.f32 %v1618_v54, %v1617_v51  ;;  %v1620_v57 = vpop.f32.mrb[2].mxu1  ;;  %v1581_v58 = vpop.f32.mrb[3].mxu0 }
 0x10b   : > { %v1582_v59 = vadd.f32 %v1581_v58, %v1580_v55  ;;  %v1621_v60 = vpop.f32.mrb[3].mxu1 }
 0x10c   : > { %v1109_v61 = vadd.f32 %v1619_v56, %v1579_v53  ;;  %v1622_v62 = vadd.f32 %v1621_v60, %v1620_v57 }
 0x10e   : > { %v1112_v63 = vadd.f32 %v1622_v62, %v1582_v59 }
 0x10f   : > { %v1583_v0 = vpop.f32.mrb[4].mxu0 }
 0x110   : > { %v1623_v1 = vpop.f32.mrb[4].mxu1  ;;  %v1584_v2 = vpop.f32.mrb[5].mxu0 }
 0x111   : > { %v1585_v3 = vadd.f32 %v1584_v2, %v1583_v0  ;;  %v1624_v4 = vpop.f32.mrb[5].mxu1  ;;  %v1586_v5 = vpop.f32.mrb[6].mxu0 }
 0x112   : > { %v1625_v6 = vadd.f32 %v1624_v4, %v1623_v1  ;;  %v1626_v7 = vpop.f32.mrb[6].mxu1  ;;  %v1587_v8 = vpop.f32.mrb[7].mxu0 }
 0x113   : > { %v1588_v9 = vadd.f32 %v1587_v8, %v1586_v5  ;;  %v1627_v10 = vpop.f32.mrb[7].mxu1 }
 0x114   : > { %v1117_v11 = vadd.f32 %v1625_v6, %v1585_v3  ;;  %v1628_v12 = vadd.f32 %v1627_v10, %v1626_v7 }
 0x116   : > { %v1120_v13 = vadd.f32 %v1628_v12, %v1588_v9 }
 0x117   : > { %v1589_v14 = vpop.f32.mrb[8].mxu0 }
 0x118   : > { %v1629_v15 = vpop.f32.mrb[8].mxu1  ;;  %v1590_v16 = vpop.f32.mrb[9].mxu0 }
 0x119   : > { %v1591_v17 = vadd.f32 %v1590_v16, %v1589_v14  ;;  %v1630_v18 = vpop.f32.mrb[9].mxu1  ;;  %v1592_v19 = vpop.f32.mrb[10].mxu0 }
 0x11a   : > { %v1631_v20 = vadd.f32 %v1630_v18, %v1629_v15  ;;  %v1632_v21 = vpop.f32.mrb[10].mxu1  ;;  %v1593_v22 = vpop.f32.mrb[11].mxu0 }
 0x11b   : > { %v1594_v23 = vadd.f32 %v1593_v22, %v1592_v19  ;;  %v1633_v24 = vpop.f32.mrb[11].mxu1 }
 0x11c   : > { %v1125_v25 = vadd.f32 %v1631_v20, %v1591_v17  ;;  %v1634_v26 = vadd.f32 %v1633_v24, %v1632_v21 }
 0x11e   : > { %v1128_v27 = vadd.f32 %v1634_v26, %v1594_v23 }
 0x11f   : > { %v1595_v28 = vpop.f32.mrb[12].mxu0 }
 0x120   : > { %v1635_v29 = vpop.f32.mrb[12].mxu1  ;;  %v1596_v30 = vpop.f32.mrb[13].mxu0 }
 0x121   : > { %v1636_v31 = vpop.f32.mrb[13].mxu1  ;;  %v1597_v32 = vadd.f32 %v1596_v30, %v1595_v28  ;;  %v1598_v34 = vpop.f32.mrb[14].mxu0 }
 0x122   : > { %v1637_v33 = vadd.f32 %v1636_v31, %v1635_v29  ;;  %v1638_v35 = vpop.f32.mrb[14].mxu1  ;;  %v1599_v36 = vpop.f32.mrb[15].mxu0 }
 0x123   : > { %v1639_v37 = vpop.f32.mrb[15].mxu1  ;;  %v1600_v39 = vadd.f32 %v1599_v36, %v1598_v34 }
 0x124   : > { %v1133_v38 = vadd.f32 %v1637_v33, %v1597_v32  ;;  %v1640_v40 = vadd.f32 %v1639_v37, %v1638_v35 }
 0x126   : > { %v1136_v41 = vadd.f32 %v1640_v40, %v1600_v39 }
 0x127   : > { %v1657_v42 = vpop.f32.mrb[16].mxu0 }
 0x128   : > { %v1658_v43 = vpop.f32.mrb[17].mxu0  ;;  %v1697_v44 = vpop.f32.mrb[16].mxu1 }
 0x129   : > { %v1659_v45 = vadd.f32 %v1658_v43, %v1657_v42  ;;  %v1660_v46 = vpop.f32.mrb[18].mxu0  ;;  %v1698_v47 = vpop.f32.mrb[17].mxu1 }
 0x12a   : > { %v1661_v48 = vpop.f32.mrb[19].mxu0  ;;  %v1699_v50 = vadd.f32 %v1698_v47, %v1697_v44  ;;  %v1700_v51 = vpop.f32.mrb[18].mxu1 }
 0x12b   : > { %v1174_v49 = vadd.f32 %v1659_v45, %v1109_v61  ;;  %v1662_v52 = vadd.f32 %v1661_v48, %v1660_v46  ;;  %v1701_v53 = vpop.f32.mrb[19].mxu1 }
 0x12c   : > { %v1702_v55 = vadd.f32 %v1701_v53, %v1700_v51 }
 0x12d   : > { %v1177_v54 = vadd.f32 %v1662_v52, %v1112_v63  ;;  %v1239_v56 = vadd.f32 %v1699_v50, %v1174_v49 }
 0x12f   : > { %v1663_v57 = vpop.f32.mrb[20].mxu0  ;;  %v1242_v58 = vadd.f32 %v1702_v55, %v1177_v54 }
 0x130   : > { %v1664_v59 = vpop.f32.mrb[21].mxu0  ;;  %v1703_v62 = vpop.f32.mrb[20].mxu1 }
 0x131   : > { %v1665_v60 = vadd.f32 %v1664_v59, %v1663_v57  ;;  %v1666_v0 = vpop.f32.mrb[22].mxu0  ;;  %v1704_v1 = vpop.f32.mrb[21].mxu1 }
 0x132   : > { %v1667_v2 = vpop.f32.mrb[23].mxu0  ;;  %v1705_v4 = vadd.f32 %v1704_v1, %v1703_v62  ;;  %v1706_v6 = vpop.f32.mrb[22].mxu1 }
 0x133   : > { %v1182_v3 = vadd.f32 %v1665_v60, %v1117_v11  ;;  %v1668_v5 = vadd.f32 %v1667_v2, %v1666_v0  ;;  %v1707_v61 = vpop.f32.mrb[23].mxu1 }
 0x134   : > { %v1708_v8 = vadd.f32 %v1707_v61, %v1706_v6 }
 0x135   : > { %v1185_v7 = vadd.f32 %v1668_v5, %v1120_v13  ;;  %v1247_v9 = vadd.f32 %v1705_v4, %v1182_v3 }
 0x137   : > { %v1669_v10 = vpop.f32.mrb[24].mxu0  ;;  %v1250_v63 = vadd.f32 %v1708_v8, %v1185_v7 }
 0x138   : > { %v1670_v12 = vpop.f32.mrb[25].mxu0  ;;  %v1709_v15 = vpop.f32.mrb[24].mxu1 }
 0x139   : > { %v1671_v14 = vadd.f32 %v1670_v12, %v1669_v10  ;;  %v1672_v16 = vpop.f32.mrb[26].mxu0  ;;  %v1710_v17 = vpop.f32.mrb[25].mxu1 }
 0x13a   : > { %v1673_v18 = vpop.f32.mrb[27].mxu0  ;;  %v1711_v20 = vadd.f32 %v1710_v17, %v1709_v15  ;;  %v1712_v22 = vpop.f32.mrb[26].mxu1 }
 0x13b   : > { %v1190_v19 = vadd.f32 %v1671_v14, %v1125_v25  ;;  %v1674_v21 = vadd.f32 %v1673_v18, %v1672_v16  ;;  %v1713_v11 = vpop.f32.mrb[27].mxu1 }
 0x13c   : > { %v1714_v24 = vadd.f32 %v1713_v11, %v1712_v22 }
 0x13d   : > { %v1193_v23 = vadd.f32 %v1674_v21, %v1128_v27  ;;  %v1255_v26 = vadd.f32 %v1711_v20, %v1190_v19 }
 0x13f   : > { %v1675_v28 = vpop.f32.mrb[28].mxu0  ;;  %v1258_v13 = vadd.f32 %v1714_v24, %v1193_v23 }
 0x140   : > { %v1676_v29 = vpop.f32.mrb[29].mxu0  ;;  %v1715_v31 = vpop.f32.mrb[28].mxu1 }
 0x141   : > { %v1677_v30 = vadd.f32 %v1676_v29, %v1675_v28  ;;  %v1678_v32 = vpop.f32.mrb[30].mxu0  ;;  %v1716_v33 = vpop.f32.mrb[29].mxu1 }
 0x142   : > { %v1679_v34 = vpop.f32.mrb[31].mxu0  ;;  %v1717_v36 = vadd.f32 %v1716_v33, %v1715_v31  ;;  %v1718_v25 = vpop.f32.mrb[30].mxu1 }
 0x143   : > { %v1198_v35 = vadd.f32 %v1677_v30, %v1133_v38  ;;  %v1680_v37 = vadd.f32 %v1679_v34, %v1678_v32  ;;  %v1719_v39 = vpop.f32.mrb[31].mxu1 }
 0x144   : > { %v1720_v42 = vadd.f32 %v1719_v39, %v1718_v25 }
 0x145   : > { %v1201_v40 = vadd.f32 %v1680_v37, %v1136_v41  ;;  %v1263_v43 = vadd.f32 %v1717_v36, %v1198_v35 }
 0x147   : > { %v1266_v27 = vadd.f32 %v1720_v42, %v1201_v40 }
 0x14c   : > { %v1303_v44 = vpop.f32.mrb[32].mxu0  ;;  %v1319_v46 = vpop.f32.mrb[32].mxu1 }
 0x14d   : > { %v1304_v45 = vadd.f32 %v1303_v44, %v1239_v56  ;;  %v1305_v47 = vpop.f32.mrb[33].mxu0  ;;  %v1320_v38 = vadd.f32 %v1319_v46, %v1255_v26  ;;  %v1321_v48 = vpop.f32.mrb[33].mxu1 }
 0x14e   : > { %v1306_v41 = vpop.f32.mrb[34].mxu0  ;;  %v1322_v51 = vpop.f32.mrb[34].mxu1 }
 0x14f   : > { %v1334_v49 = vmax.f32 %v1304_v45, 0.0  ;;  %v1307_v50 = vadd.f32 %v1306_v41, %v1242_v58  ;;  %v1308_v52 = vpop.f32.mrb[35].mxu0  ;;  %v1338_v53 = vmax.f32 %v1320_v38, 0.0  ;;  %v1323_v54 = vadd.f32 %v1322_v51, %v1258_v13  ;;  %v1324_v55 = vpop.f32.mrb[35].mxu1 }
 0x151   : > { %1342 = vst [vmem:[%s2183_s30] sm:$0xff] %v1334_v49  ;;  %v1335_v56 = vmax.f32 %v1307_v50, 0.0  ;;  %1346 = vst [vmem:[%s2183_s30 + $0x20] sm:$0xff] %v1338_v53  ;;  %v1339_v57 = vmax.f32 %v1323_v54, 0.0 }
 0x153   : > { %1343 = vst [vmem:[%s2183_s30 + $0x8] sm:$0xff] %v1335_v56  ;;  %1347 = vst [vmem:[%s2183_s30 + $0x28] sm:$0xff] %v1339_v57 }
 0x154   : > { %v1311_v59 = vpop.f32.mrb[36].mxu0  ;;  %v1327_v62 = vpop.f32.mrb[36].mxu1 }
 0x155   : > { %v1312_v60 = vadd.f32 %v1311_v59, %v1247_v9  ;;  %v1313_v0 = vpop.f32.mrb[37].mxu0  ;;  %v1328_v58 = vadd.f32 %v1327_v62, %v1263_v43  ;;  %v1329_v1 = vpop.f32.mrb[37].mxu1 }
 0x156   : > { %v1314_v2 = vpop.f32.mrb[38].mxu0  ;;  %v1330_v5 = vpop.f32.mrb[38].mxu1 }
 0x157   : > { %v1336_v3 = vmax.f32 %v1312_v60, 0.0  ;;  %v1315_v4 = vadd.f32 %v1314_v2, %v1250_v63  ;;  %v1316_v6 = vpop.f32.mrb[39].mxu0  ;;  %v1340_v61 = vmax.f32 %v1328_v58, 0.0  ;;  %v1331_v7 = vadd.f32 %v1330_v5, %v1266_v27  ;;  %v1332_v8 = vpop.f32.mrb[39].mxu1 }
 0x159   : > { %1344 = vst [vmem:[%s2183_s30 + $0x10] sm:$0xff] %v1336_v3  ;;  %v1337_v10 = vmax.f32 %v1315_v4, 0.0  ;;  %1348 = vst [vmem:[%s2183_s30 + $0x30] sm:$0xff] %v1340_v61  ;;  %v1341_v12 = vmax.f32 %v1331_v7, 0.0 }
 0x15b   : > { %1345 = vst [vmem:[%s2183_s30 + $0x18] sm:$0xff] %v1337_v10  ;;  %1349 = vst [vmem:[%s2183_s30 + $0x38] sm:$0xff] %v1341_v12 }
 0x15c PF: > { %s12_s11 = sadd.s32 1, %s1920_s11   ;;  %s2205_s9 = smov %s1916_s10 }
 0x15d   : > { %p9_p5 = scmp.ge.s32.totalorder %s12_s11, 4   ;;  %s2206_s10 = smov %s2208_s12 }
 0x15f   :  { %11 = sbr.rel (!%p9_p5) target bundleno = 2 (0x2), region = 58 }

// kernel: _lambda_.12
= control target key start
LH: loop header
LB: loop body
LE: loop exit
PB: predicated region body
PF: predicated region fallthrough
CT: control target
= control target key end

     0   :  { %s929_s9 = smov 0   ;;  %s931_s10 = smov 0   ;;  %s1026_s0 = inlined_call_operand.vmem [shape: bf16[8,592], index: 0, kind: input, shape index: {}]   ;;  %s1027_s1 = inlined_call_operand.vmem [shape: bf16[2,592,128], index: 1, kind: input, shape index: {}]   ;;  %s1028_s2 = inlined_call_operand.vmem [shape: f32[2,2,128], index: 2, kind: output, shape index: {}]  }
   0x1   :  { %s933_s11 = smov 0  }
   0x2 LB: > { %s21_s12 = sadd.s32 1, %s906_s10  ;;  %p702_p0 = scmp.ge.s32.totalorder %s910_s11, 1  ;;  %s910_s11 = sphi %s933_s11, %s12_s11   ;;  %s906_s10 = sphi %s931_s10, %s1030_s10   ;;  %s902_s9 = sphi %s929_s9, %s1029_s9  }
   0x3   : > { %p22_p1 = scmp.ge.s32.totalorder %s21_s12, 2  ;;  %p131_p2 = scmp.lt.s32.totalorder %s910_s11, 3 }
   0x5   : > { %s1032_s12 = smov (%p22_p1, %s21_s12), 0  ;;  %p132_p3 = pnand %p702_p0, %p131_p2 }
   0x6   : > { %p158_p4 = scmp.lt.s32.totalorder (!%p132_p3), %s902_s9, 1  ;;  %v950_v0 = vld [vmem:[%s1026_s0] sm:$0xff] (!%p132_p3)  ;;  %v955_v1 = vld [vmem:[%s1026_s0 + $0x8] sm:$0xff] (!%p132_p3)  ;;  %v912_v39 = vmov (!%p132_p3), 0.0   ;;  %vm913_vm0 = vmmov (!%p132_p3), 0   ;;  %vm490_vm1 = vcmask (!%p132_p3), 654336  }
   0x7   : > { %135 = sbr.rel (%p132_p3) target bundleno = 313 (0x139), region = 28  ;;  %v706_v2 = vcombine.high (!%p132_p3), %v950_v0, %v950_v0  ;;  %v708_v3 = vcombine.high (!%p132_p3), %v955_v1, %v955_v1  ;;  %v705_v36 = vcombine.low (!%p132_p3), %v950_v0, %v950_v0  ;;  %v707_v37 = vcombine.low (!%p132_p3), %v955_v1, %v955_v1  ;;  %v883_v44 = vld [vmem:[%s1026_s0 + $0x10] ss:$0 sps:$4 sm:$0xff] (!%p132_p3)  }
   0x9   : > { %526 = vmatprep.mubr.bf16.mxu0 (!%p132_p3), %v706_v2  ;;  %566 = vmatprep.mubr.bf16.mxu1 (!%p132_p3), %v708_v3 }
   0xe   : > { %s1034_s9 = smov (!%p158_p4, %s902_s9), 1 }
   0xf   : > { %s815_s17 = smul.u32 296, %s1034_s9  ;;  %s704_s23 = sshll.u32 %s1034_s9, 1 }
  0x10   : > { %s172_s26 = scalar_lea.vmem %s1028_s2, %s704_s23 }
  0x11   : > { %s967_s20 = scalar_lea.vmem %s1027_s1, %s815_s17 }
  0x12   : > { %v842_v4 = vld [vmem:[%s967_s20 + $0x40] sm:$0xff]   ;;  %v846_v8 = vld [vmem:[%s967_s20 + $0x48] sm:$0xff]   ;;  %v850_v12 = vld [vmem:[%s967_s20 + $0x50] sm:$0xff]  }
  0x13   : > { %v843_v5 = vld [vmem:[%s967_s20 + $0xc0] sm:$0xff]   ;;  %751 = vmatprep.subr.bf16.mxu0 %v842_v4  ;;  %v847_v9 = vld [vmem:[%s967_s20 + $0xc8] sm:$0xff]   ;;  %v851_v13 = vld [vmem:[%s967_s20 + $0xd0] sm:$0xff]  }
  0x14   : > { %v844_v6 = vld [vmem:[%s967_s20] sm:$0xff]   ;;  %773 = vmatprep.subr.bf16.mxu1 %v843_v5  ;;  %v848_v10 = vld [vmem:[%s967_s20 + $0x8] sm:$0xff]   ;;  %v852_v14 = vld [vmem:[%s967_s20 + $0x10] sm:$0xff]  }
  0x15   : > { %v845_v7 = vld [vmem:[%s967_s20 + $0x80] sm:$0xff]   ;;  %752 = vmatpush3.bf16.msra.mxu0 %v844_v6  ;;  %v849_v11 = vld [vmem:[%s967_s20 + $0x88] sm:$0xff]   ;;  %v853_v15 = vld [vmem:[%s967_s20 + $0x90] sm:$0xff]  }
  0x16   : > { %774 = vmatpush3.bf16.msra.mxu1 %v845_v7  ;;  %753 = vmatprep.subr.bf16.mxu0 %v846_v8  ;;  %v854_v16 = vld [vmem:[%s967_s20 + $0x58] sm:$0xff]   ;;  %v858_v20 = vld [vmem:[%s967_s20 + $0x60] sm:$0xff]   ;;  %v862_v24 = vld [vmem:[%s967_s20 + $0x68] sm:$0xff]  }
  0x17   : > { %775 = vmatprep.subr.bf16.mxu1 %v847_v9  ;;  %v855_v17 = vld [vmem:[%s967_s20 + $0xd8] sm:$0xff]   ;;  %v859_v21 = vld [vmem:[%s967_s20 + $0xe0] sm:$0xff]   ;;  %v863_v25 = vld [vmem:[%s967_s20 + $0xe8] sm:$0xff]  }
  0x18   : > { %v856_v18 = vld [vmem:[%s967_s20 + $0x18] sm:$0xff]   ;;  %v860_v22 = vld [vmem:[%s967_s20 + $0x20] sm:$0xff]   ;;  %v864_v26 = vld [vmem:[%s967_s20 + $0x28] sm:$0xff]  }
  0x19   : > { %754 = vmatpush3.bf16.msra.mxu0 %v848_v10  ;;  %v857_v19 = vld [vmem:[%s967_s20 + $0x98] sm:$0xff]   ;;  %v861_v23 = vld [vmem:[%s967_s20 + $0xa0] sm:$0xff]   ;;  %v865_v27 = vld [vmem:[%s967_s20 + $0xa8] sm:$0xff]  }
  0x1a   : > { %776 = vmatpush3.bf16.msra.mxu1 %v849_v11  ;;  %755 = vmatprep.subr.bf16.mxu0 %v850_v12  ;;  %v866_v28 = vld [vmem:[%s967_s20 + $0x70] sm:$0xff]   ;;  %v870_v32 = vld [vmem:[%s967_s20 + $0x78] sm:$0xff]   ;;  %v878_v38 = vld [vmem:[%s967_s20 + $0x100] sm:$0xff]  }
  0x1b   : > { %777 = vmatprep.subr.bf16.mxu1 %v851_v13  ;;  %v867_v29 = vld [vmem:[%s967_s20 + $0xf0] sm:$0xff]   ;;  %v871_v33 = vld [vmem:[%s967_s20 + $0xf8] sm:$0xff]   ;;  %v879_v40 = vld [vmem:[%s967_s20 + $0x108] sm:$0xff]  }
  0x1c   : > { %v868_v30 = vld [vmem:[%s967_s20 + $0x30] sm:$0xff]   ;;  %v872_v34 = vld [vmem:[%s967_s20 + $0x38] sm:$0xff]   ;;  %v882_v43 = vld [vmem:[%s967_s20 + $0x120] sm:$0xff]  }
  0x1d   : > { %756 = vmatpush3.bf16.msra.mxu0 %v852_v14  ;;  %v869_v31 = vld [vmem:[%s967_s20 + $0xb0] sm:$0xff]   ;;  %v873_v35 = vld [vmem:[%s967_s20 + $0xb8] sm:$0xff]  }
  0x1e   : > { %778 = vmatpush3.bf16.msra.mxu1 %v853_v15  ;;  %757 = vmatprep.subr.bf16.mxu0 %v854_v16  ;;  %v880_v41 = vld [vmem:[%s967_s20 + $0x110] sm:$0xff]   ;;  %v881_v42 = vld [vmem:[%s967_s20 + $0x118] sm:$0xff]  }
  0x1f   : > { %779 = vmatprep.subr.bf16.mxu1 %v855_v17 }
  0x21   : > { %758 = vmatpush3.bf16.msra.mxu0 %v856_v18 }
  0x22   : > { %780 = vmatpush3.bf16.msra.mxu1 %v857_v19  ;;  %759 = vmatprep.subr.bf16.mxu0 %v858_v20 }
  0x23   : > { %781 = vmatprep.subr.bf16.mxu1 %v859_v21 }
  0x25   : > { %760 = vmatpush3.bf16.msra.mxu0 %v860_v22 }
  0x26   : > { %782 = vmatpush3.bf16.msra.mxu1 %v861_v23  ;;  %761 = vmatprep.subr.bf16.mxu0 %v862_v24 }
  0x27   : > { %783 = vmatprep.subr.bf16.mxu1 %v863_v25 }
  0x29   : > { %762 = vmatpush3.bf16.msra.mxu0 %v864_v26 }
  0x2a   : > { %784 = vmatpush3.bf16.msra.mxu1 %v865_v27  ;;  %763 = vmatprep.subr.bf16.mxu0 %v866_v28 }
  0x2b   : > { %785 = vmatprep.subr.bf16.mxu1 %v867_v29 }
  0x2d   : > { %764 = vmatpush3.bf16.msra.mxu0 %v868_v30 }
  0x2e   : > { %786 = vmatpush3.bf16.msra.mxu1 %v869_v31  ;;  %765 = vmatprep.subr.bf16.mxu0 %v870_v32 }
  0x2f   : > { %787 = vmatprep.subr.bf16.mxu1 %v871_v33 }
  0x31   : > { %766 = vmatpush3.bf16.msra.mxu0 %v872_v34 }
  0x32   : > { %788 = vmatpush3.bf16.msra.mxu1 %v873_v35  ;;  %801 = vmatprep.subr.bf16.mxu0 %v912_v39 }
  0x34   : > { %527 = vmatmul.mubr.bf16.vlgmr.msra.gmra.mrb[0].mxu0 %v705_v36 }
  0x35   : > { %567 = vmatmul.mubr.bf16.vlgmr.msra.gmra.mrb[0].mxu1 %v707_v37  ;;  %802 = vmatpush3.bf16.msra.mxu0 %v878_v38 }
  0x36   : > { %803 = vmatprep.subr.bf16.mxu0 %v912_v39  ;;  %811 = vmatprep.mubr.msk.bf16.mxu0 %vm913_vm0, %v912_v39 }
  0x39   : > { %804 = vmatpush3.bf16.msra.mxu0 %v879_v40 }
  0x3a   : > { %805 = vmatprep.subr.bf16.mxu0 %v912_v39 }
  0x3d   : > { %806 = vmatpush3.bf16.msra.mxu0 %v880_v41 }
  0x3e   : > { %807 = vmatprep.subr.bf16.mxu0 %v912_v39 }
  0x41   : > { %808 = vmatpush3.bf16.msra.mxu0 %v881_v42 }
  0x42   : > { %809 = vmatprep.subr.bf16.mxu0 %v912_v39 }
  0x45   : > { %810 = vmatpush3.bf16.msra.mxu0 %v882_v43 }
  0x48   : > { %812 = vmatmul.mubr.msk.bf16.vlgmr.msra.gmra.mrb[4].mxu0 %vm490_vm1, %v883_v44 }
 0x107   : > { %v767_v45 = vpop.f32.mrb[0].mxu0 }
 0x108   : > { %v789_v46 = vpop.f32.mrb[0].mxu1  ;;  %v768_v47 = vpop.f32.mrb[1].mxu0 }
 0x109   : > { %v769_v48 = vadd.f32 %v768_v47, %v767_v45  ;;  %v790_v49 = vpop.f32.mrb[1].mxu1  ;;  %v770_v50 = vpop.f32.mrb[2].mxu0 }
 0x10a   : > { %v791_v51 = vadd.f32 %v790_v49, %v789_v46  ;;  %v771_v52 = vpop.f32.mrb[3].mxu0  ;;  %v792_v53 = vpop.f32.mrb[2].mxu1 }
 0x10b   : > { %v793_v54 = vpop.f32.mrb[3].mxu1 }
 0x10c   : > { %v569_v55 = vadd.f32 %v791_v51, %v769_v48 }
 0x11b   : > { %v608_v56 = vpop.f32.mrb[4].mxu0 }
 0x11c   : > { %v609_v57 = vadd.f32 %v608_v56, %v569_v55  ;;  %v813_v58 = vpop.f32.mrb[5].mxu0 }
 0x11d   : > { %v611_v59 = vpop.f32.mrb[6].mxu0 }
 0x11e   : > { %v748_v60 = vmul.f32 -1.442695, %v609_v57  ;;  %v814_v61 = vpop.f32.mrb[7].mxu0 }
 0x120   : > { %884 = vpow2.f32 %v748_v60 }
 0x12a   : > { %v885_v62 = vpop.eup %884 }
 0x12b   : > { %v617_v63 = vadd.f32 1.0, %v885_v62 }
 0x12d   : > { %886 = vrcp.f32 %v617_v63 }
 0x137   : > { %v887_v0 = vpop.eup %886 }
 0x138   : > { %620 = vst [vmem:[%s172_s26] sm:$0x3] %v887_v0 }
 0x139 PF: > { %s12_s11 = sadd.s32 1, %s910_s11   ;;  %s1029_s9 = smov %s906_s10 }
 0x13a   : > { %p9_p5 = scmp.ge.s32.totalorder %s12_s11, 4   ;;  %s1030_s10 = smov %s1032_s12 }
 0x13c   :  { %11 = sbr.rel (!%p9_p5) target bundleno = 2 (0x2), region = 58 }

// kernel: squeeze.20
= control target key start
LH: loop header
LB: loop body
LE: loop exit
PB: predicated region body
PF: predicated region fallthrough
CT: control target
= control target key end

     0   :  { %s10_s10 = smov 3  ;;  %vm12_vm0 = vcmask 23552   ;;  %s22_s11 = smov 3  ;;  %vm19_vm1 = vcmask 72752   ;;  %vm26_vm2 = vcmask 48152   ;;  %s58_s0 = inlined_call_operand.vmem [shape: f32[2,1,3,3], index: 0, kind: input, shape index: {}]   ;;  %s59_s1 = inlined_call_operand.vmem [shape: f32[2,9], index: 1, kind: output, shape index: {}]  }
   0x1   :  { %v34_v0 = vld [vmem:[%s58_s0 + $0x4] sm:$0xf]  ;;  %v8_v1 = vld [vmem:[%s58_s0] sm:$0xf]  ;;  %s15_s0 = smov 3  ;;  %s37_s12 = smov 6  }
   0x2   :  { %7 = vst [vmem:[#allocation1 + $0x8] sm:$0xf] %v34_v0  ;;  %9 = vst [vmem:[#allocation1] sm:$0xf] %v8_v1  ;;  %s38_s13 = smov 3  }
   0x9   :  { %v16_v2 = vld [vmem:[#allocation1 + $0x2] ss:$8 sm:%s15_s0]   ;;  %v11_v3 = vld [vmem:[#allocation1] ss:$8 sm:%s10_s10]   ;;  %v23_v4 = vld [vmem:[#allocation1 + $0x1] ss:$8 sm:%s22_s11]  }
   0xa   :  { %17 = vrot.lane.b32.xlu0 %v16_v2, %s37_s12  ;;  %13 = vst.msk [vmem:[#allocation0] sm:$0x3] %vm12_vm0, %v11_v3  }
   0xe   :  { %24 = vrot.lane.b32.xlu0 %v23_v4, %s38_s13 }
  0x7c   :  { %v18_v5 = vpop.permute.xlu0 %17  }
  0x7d   :  { %20 = vst.msk [vmem:[#allocation0] sm:$0x3] %vm19_vm1, %v18_v5  }
  0x80   :  { %v25_v6 = vpop.permute.xlu0 %24  }
  0x81   :  { %27 = vst.msk [vmem:[#allocation0] sm:$0x3] %vm26_vm2, %v25_v6  }
  0x88   :  { %v31_v7 = vld [vmem:[#allocation0] sm:$0x3] }
  0x89   :  { %33 = vst [vmem:[%s59_s1] sm:$0x3] %v31_v7 }

// kernel: tile.7
= control target key start
LH: loop header
LB: loop body
LE: loop exit
PB: predicated region body
PF: predicated region fallthrough
CT: control target
= control target key end

     0   :  { %s864_s0 = inlined_call_operand.vmem [shape: f32[4,4,4,256], index: 0, kind: input, shape index: {}]   ;;  %s865_s1 = inlined_call_operand.vmem [shape: f32[4,4,1024], index: 1, kind: output, shape index: {}]  }
   0x1   :  { %v600_v0 = vld [vmem:[%s864_s0 + $0x7c] sm:$0xf]  ;;  %v601_v1 = vld [vmem:[%s864_s0 + $0x78] sm:$0xf]  ;;  %v602_v2 = vld [vmem:[%s864_s0 + $0x74] sm:$0xf] }
   0x2   :  { %8 = vst [vmem:[#allocation1 + $0xf8] sm:$0xf] %v600_v0  ;;  %13 = vst [vmem:[#allocation1 + $0xf0] sm:$0xf] %v601_v1  ;;  %v603_v3 = vld [vmem:[%s864_s0 + $0x70] sm:$0xf] }
   0x3   :  { %18 = vst [vmem:[#allocation1 + $0xe8] sm:$0xf] %v602_v2  ;;  %v604_v4 = vld [vmem:[%s864_s0 + $0x6c] sm:$0xf]  ;;  %v605_v5 = vld [vmem:[%s864_s0 + $0x68] sm:$0xf] }
   0x4   :  { %23 = vst [vmem:[#allocation1 + $0xe0] sm:$0xf] %v603_v3  ;;  %28 = vst [vmem:[#allocation1 + $0xd8] sm:$0xf] %v604_v4  ;;  %v606_v6 = vld [vmem:[%s864_s0 + $0x64] sm:$0xf] }
   0x5   :  { %33 = vst [vmem:[#allocation1 + $0xd0] sm:$0xf] %v605_v5  ;;  %v607_v7 = vld [vmem:[%s864_s0 + $0x60] sm:$0xf]  ;;  %v608_v8 = vld [vmem:[%s864_s0 + $0x5c] sm:$0xf] }
   0x6   :  { %38 = vst [vmem:[#allocation1 + $0xc8] sm:$0xf] %v606_v6  ;;  %43 = vst [vmem:[#allocation1 + $0xc0] sm:$0xf] %v607_v7  ;;  %v609_v9 = vld [vmem:[%s864_s0 + $0x58] sm:$0xf] }
   0x7   :  { %48 = vst [vmem:[#allocation1 + $0xb8] sm:$0xf] %v608_v8  ;;  %v610_v10 = vld [vmem:[%s864_s0 + $0x54] sm:$0xf]  ;;  %v611_v11 = vld [vmem:[%s864_s0 + $0x50] sm:$0xf] }
   0x8   :  { %53 = vst [vmem:[#allocation1 + $0xb0] sm:$0xf] %v609_v9  ;;  %58 = vst [vmem:[#allocation1 + $0xa8] sm:$0xf] %v610_v10  ;;  %v612_v12 = vld [vmem:[%s864_s0 + $0x4c] sm:$0xf] }
   0x9   :  { %63 = vst [vmem:[#allocation1 + $0xa0] sm:$0xf] %v611_v11  ;;  %v613_v13 = vld [vmem:[%s864_s0 + $0x48] sm:$0xf]  ;;  %v614_v14 = vld [vmem:[%s864_s0 + $0x44] sm:$0xf] }
   0xa   :  { %68 = vst [vmem:[#allocation1 + $0x98] sm:$0xf] %v612_v12  ;;  %73 = vst [vmem:[#allocation1 + $0x90] sm:$0xf] %v613_v13  ;;  %v615_v15 = vld [vmem:[%s864_s0 + $0x40] sm:$0xf] }
   0xb   :  { %78 = vst [vmem:[#allocation1 + $0x88] sm:$0xf] %v614_v14  ;;  %v616_v16 = vld [vmem:[%s864_s0 + $0x3c] sm:$0xf]  ;;  %v617_v17 = vld [vmem:[%s864_s0 + $0x38] sm:$0xf] }
   0xc   :  { %83 = vst [vmem:[#allocation1 + $0x80] sm:$0xf] %v615_v15  ;;  %88 = vst [vmem:[#allocation1 + $0x78] sm:$0xf] %v616_v16  ;;  %v618_v18 = vld [vmem:[%s864_s0 + $0x34] sm:$0xf] }
   0xd   :  { %93 = vst [vmem:[#allocation1 + $0x70] sm:$0xf] %v617_v17  ;;  %v619_v19 = vld [vmem:[%s864_s0 + $0x30] sm:$0xf]  ;;  %v620_v20 = vld [vmem:[%s864_s0 + $0x2c] sm:$0xf] }
   0xe   :  { %98 = vst [vmem:[#allocation1 + $0x68] sm:$0xf] %v618_v18  ;;  %103 = vst [vmem:[#allocation1 + $0x60] sm:$0xf] %v619_v19  ;;  %v621_v21 = vld [vmem:[%s864_s0 + $0x28] sm:$0xf] }
   0xf   :  { %108 = vst [vmem:[#allocation1 + $0x58] sm:$0xf] %v620_v20  ;;  %v622_v22 = vld [vmem:[%s864_s0 + $0x24] sm:$0xf]  ;;  %v623_v23 = vld [vmem:[%s864_s0 + $0x20] sm:$0xf] }
  0x10   :  { %113 = vst [vmem:[#allocation1 + $0x50] sm:$0xf] %v621_v21  ;;  %118 = vst [vmem:[#allocation1 + $0x48] sm:$0xf] %v622_v22  ;;  %v624_v24 = vld [vmem:[%s864_s0 + $0x1c] sm:$0xf] }
  0x11   :  { %123 = vst [vmem:[#allocation1 + $0x40] sm:$0xf] %v623_v23  ;;  %v625_v25 = vld [vmem:[%s864_s0 + $0x18] sm:$0xf]  ;;  %v626_v26 = vld [vmem:[%s864_s0 + $0x14] sm:$0xf] }
  0x12   :  { %128 = vst [vmem:[#allocation1 + $0x38] sm:$0xf] %v624_v24  ;;  %133 = vst [vmem:[#allocation1 + $0x30] sm:$0xf] %v625_v25  ;;  %v627_v27 = vld [vmem:[%s864_s0 + $0x10] sm:$0xf] }
  0x13   :  { %138 = vst [vmem:[#allocation1 + $0x28] sm:$0xf] %v626_v26  ;;  %v628_v28 = vld [vmem:[%s864_s0 + $0xc] sm:$0xf]  ;;  %v629_v29 = vld [vmem:[%s864_s0 + $0x8] sm:$0xf] }
  0x14   :  { %143 = vst [vmem:[#allocation1 + $0x20] sm:$0xf] %v627_v27  ;;  %148 = vst [vmem:[#allocation1 + $0x18] sm:$0xf] %v628_v28  ;;  %v630_v30 = vld [vmem:[%s864_s0 + $0x4] sm:$0xf] }
  0x15   :  { %153 = vst [vmem:[#allocation1 + $0x10] sm:$0xf] %v629_v29  ;;  %v158_v31 = vld [vmem:[%s864_s0] sm:$0xf]  ;;  %v296_v32 = vld [vmem:[#allocation1 + $0xb8] sm:$0xf]  }
  0x16   :  { %157 = vst [vmem:[#allocation1 + $0x8] sm:$0xf] %v630_v30  ;;  %159 = vst [vmem:[#allocation1] sm:$0xf] %v158_v31  ;;  %v278_v33 = vld [vmem:[#allocation1 + $0xa0] sm:$0xf]  }
  0x17   :  { %v284_v34 = vld [vmem:[#allocation1 + $0xa8] sm:$0xf]   ;;  %v290_v35 = vld [vmem:[#allocation1 + $0xb0] sm:$0xf]   ;;  %v272_v38 = vld [vmem:[#allocation1 + $0x98] sm:$0xf]  }
  0x18   :  { %298 = vst [vmem:[#allocation0 + $0x8b] ss:$16 sm:$0x3] %v296_v32   ;;  %300 = vst [vmem:[#allocation0 + $0x8b] ss:$16 sm:$0xc] %v296_v32  }
  0x19   :  { %v260_v36 = vld [vmem:[#allocation1 + $0x88] sm:$0xf]   ;;  %v266_v37 = vld [vmem:[#allocation1 + $0x90] sm:$0xf]   ;;  %v248_v40 = vld [vmem:[#allocation1 + $0x78] sm:$0xf]  }
  0x1a   :  { %280 = vst [vmem:[#allocation0 + $0x82] ss:$16 sm:$0x3] %v278_v33   ;;  %282 = vst [vmem:[#allocation0 + $0x82] ss:$16 sm:$0xc] %v278_v33  }
  0x1b   :  { %286 = vst [vmem:[#allocation0 + $0x8a] ss:$16 sm:$0x3] %v284_v34   ;;  %288 = vst [vmem:[#allocation0 + $0x8a] ss:$16 sm:$0xc] %v284_v34  }
  0x1c   :  { %292 = vst [vmem:[#allocation0 + $0x83] ss:$16 sm:$0x3] %v290_v35   ;;  %294 = vst [vmem:[#allocation0 + $0x83] ss:$16 sm:$0xc] %v290_v35  }
  0x1d   :  { %v242_v39 = vld [vmem:[#allocation1 + $0x70] sm:$0xf]   ;;  %v254_v41 = vld [vmem:[#allocation1 + $0x80] sm:$0xf]   ;;  %v224_v42 = vld [vmem:[#allocation1 + $0x58] sm:$0xf]  }
  0x1e   :  { %262 = vst [vmem:[#allocation0 + $0x88] ss:$16 sm:$0x3] %v260_v36   ;;  %264 = vst [vmem:[#allocation0 + $0x88] ss:$16 sm:$0xc] %v260_v36  }
  0x1f   :  { %268 = vst [vmem:[#allocation0 + $0x81] ss:$16 sm:$0x3] %v266_v37   ;;  %270 = vst [vmem:[#allocation0 + $0x81] ss:$16 sm:$0xc] %v266_v37  }
  0x20   :  { %274 = vst [vmem:[#allocation0 + $0x89] ss:$16 sm:$0x3] %v272_v38   ;;  %276 = vst [vmem:[#allocation0 + $0x89] ss:$16 sm:$0xc] %v272_v38  }
  0x21   :  { %v230_v43 = vld [vmem:[#allocation1 + $0x60] sm:$0xf]   ;;  %v236_v44 = vld [vmem:[#allocation1 + $0x68] sm:$0xf]   ;;  %v218_v47 = vld [vmem:[#allocation1 + $0x50] sm:$0xf]  }
  0x22   :  { %244 = vst [vmem:[#allocation0 + $0x43] ss:$16 sm:$0x3] %v242_v39   ;;  %246 = vst [vmem:[#allocation0 + $0x43] ss:$16 sm:$0xc] %v242_v39  }
  0x23   :  { %250 = vst [vmem:[#allocation0 + $0x4b] ss:$16 sm:$0x3] %v248_v40   ;;  %252 = vst [vmem:[#allocation0 + $0x4b] ss:$16 sm:$0xc] %v248_v40  }
  0x24   :  { %256 = vst [vmem:[#allocation0 + $0x80] ss:$16 sm:$0x3] %v254_v41   ;;  %258 = vst [vmem:[#allocation0 + $0x80] ss:$16 sm:$0xc] %v254_v41  }
  0x25   :  { %v206_v45 = vld [vmem:[#allocation1 + $0x40] sm:$0xf]   ;;  %v212_v46 = vld [vmem:[#allocation1 + $0x48] sm:$0xf]   ;;  %v194_v49 = vld [vmem:[#allocation1 + $0x30] sm:$0xf]  }
  0x26   :  { %226 = vst [vmem:[#allocation0 + $0x49] ss:$16 sm:$0x3] %v224_v42   ;;  %228 = vst [vmem:[#allocation0 + $0x49] ss:$16 sm:$0xc] %v224_v42  }
  0x27   :  { %232 = vst [vmem:[#allocation0 + $0x42] ss:$16 sm:$0x3] %v230_v43   ;;  %234 = vst [vmem:[#allocation0 + $0x42] ss:$16 sm:$0xc] %v230_v43  }
  0x28   :  { %238 = vst [vmem:[#allocation0 + $0x4a] ss:$16 sm:$0x3] %v236_v44   ;;  %240 = vst [vmem:[#allocation0 + $0x4a] ss:$16 sm:$0xc] %v236_v44  }
  0x29   :  { %v188_v48 = vld [vmem:[#allocation1 + $0x28] sm:$0xf]   ;;  %v200_v50 = vld [vmem:[#allocation1 + $0x38] sm:$0xf]   ;;  %v170_v51 = vld [vmem:[#allocation1 + $0x10] sm:$0xf]  }
  0x2a   :  { %208 = vst [vmem:[#allocation0 + $0x40] ss:$16 sm:$0x3] %v206_v45   ;;  %210 = vst [vmem:[#allocation0 + $0x40] ss:$16 sm:$0xc] %v206_v45  }
  0x2b   :  { %214 = vst [vmem:[#allocation0 + $0x48] ss:$16 sm:$0x3] %v212_v46   ;;  %216 = vst [vmem:[#allocation0 + $0x48] ss:$16 sm:$0xc] %v212_v46  }
  0x2c   :  { %220 = vst [vmem:[#allocation0 + $0x41] ss:$16 sm:$0x3] %v218_v47   ;;  %222 = vst [vmem:[#allocation0 + $0x41] ss:$16 sm:$0xc] %v218_v47  }
  0x2d   :  { %v176_v52 = vld [vmem:[#allocation1 + $0x18] sm:$0xf]   ;;  %v182_v53 = vld [vmem:[#allocation1 + $0x20] sm:$0xf]   ;;  %v164_v55 = vld [vmem:[#allocation1 + $0x8] sm:$0xf]  }
  0x2e   :  { %190 = vst [vmem:[#allocation0 + $0xa] ss:$16 sm:$0x3] %v188_v48   ;;  %192 = vst [vmem:[#allocation0 + $0xa] ss:$16 sm:$0xc] %v188_v48  }
  0x2f   :  { %196 = vst [vmem:[#allocation0 + $0x3] ss:$16 sm:$0x3] %v194_v49   ;;  %198 = vst [vmem:[#allocation0 + $0x3] ss:$16 sm:$0xc] %v194_v49  }
  0x30   :  { %202 = vst [vmem:[#allocation0 + $0xb] ss:$16 sm:$0x3] %v200_v50   ;;  %204 = vst [vmem:[#allocation0 + $0xb] ss:$16 sm:$0xc] %v200_v50  }
  0x31   :  { %v160_v54 = vld [vmem:[#allocation1] sm:$0xf]   ;;  %172 = vst [vmem:[#allocation0 + $0x1] ss:$16 sm:$0x3] %v170_v51  }
  0x32   :  { %174 = vst [vmem:[#allocation0 + $0x1] ss:$16 sm:$0xc] %v170_v51   ;;  %178 = vst [vmem:[#allocation0 + $0x9] ss:$16 sm:$0x3] %v176_v52  }
  0x33   :  { %180 = vst [vmem:[#allocation0 + $0x9] ss:$16 sm:$0xc] %v176_v52   ;;  %184 = vst [vmem:[#allocation0 + $0x2] ss:$16 sm:$0x3] %v182_v53  }
  0x34   :  { %186 = vst [vmem:[#allocation0 + $0x2] ss:$16 sm:$0xc] %v182_v53   ;;  %v302_v56 = vld [vmem:[#allocation1 + $0xc0] sm:$0xf]  }
  0x35   :  { %161 = vst [vmem:[#allocation0] ss:$16 sm:$0x3] %v160_v54   ;;  %162 = vst [vmem:[#allocation0] ss:$16 sm:$0xc] %v160_v54  }
  0x36   :  { %166 = vst [vmem:[#allocation0 + $0x8] ss:$16 sm:$0x3] %v164_v55   ;;  %168 = vst [vmem:[#allocation0 + $0x8] ss:$16 sm:$0xc] %v164_v55  }
  0x37   :  { %304 = vst [vmem:[#allocation0 + $0xc0] ss:$16 sm:$0x3] %v302_v56   ;;  %306 = vst [vmem:[#allocation0 + $0xc0] ss:$16 sm:$0xc] %v302_v56  }
  0x38   :  { %v308_v57 = vld [vmem:[#allocation1 + $0xc8] sm:$0xf]   ;;  %v314_v58 = vld [vmem:[#allocation1 + $0xd0] sm:$0xf]   ;;  %v320_v59 = vld [vmem:[#allocation1 + $0xd8] sm:$0xf]  }
  0x39   :  { %310 = vst [vmem:[#allocation0 + $0xc8] ss:$16 sm:$0x3] %v308_v57   ;;  %312 = vst [vmem:[#allocation0 + $0xc8] ss:$16 sm:$0xc] %v308_v57  }
  0x3a   :  { %316 = vst [vmem:[#allocation0 + $0xc1] ss:$16 sm:$0x3] %v314_v58   ;;  %318 = vst [vmem:[#allocation0 + $0xc1] ss:$16 sm:$0xc] %v314_v58  }
  0x3b   :  { %322 = vst [vmem:[#allocation0 + $0xc9] ss:$16 sm:$0x3] %v320_v59   ;;  %324 = vst [vmem:[#allocation0 + $0xc9] ss:$16 sm:$0xc] %v320_v59  }
  0x3c   :  { %v326_v60 = vld [vmem:[#allocation1 + $0xe0] sm:$0xf]   ;;  %v332_v61 = vld [vmem:[#allocation1 + $0xe8] sm:$0xf]   ;;  %v338_v62 = vld [vmem:[#allocation1 + $0xf0] sm:$0xf]  }
  0x3d   :  { %328 = vst [vmem:[#allocation0 + $0xc2] ss:$16 sm:$0x3] %v326_v60   ;;  %330 = vst [vmem:[#allocation0 + $0xc2] ss:$16 sm:$0xc] %v326_v60  }
  0x3e   :  { %334 = vst [vmem:[#allocation0 + $0xca] ss:$16 sm:$0x3] %v332_v61   ;;  %336 = vst [vmem:[#allocation0 + $0xca] ss:$16 sm:$0xc] %v332_v61  }
  0x3f   :  { %340 = vst [vmem:[#allocation0 + $0xc3] ss:$16 sm:$0x3] %v338_v62   ;;  %342 = vst [vmem:[#allocation0 + $0xc3] ss:$16 sm:$0xc] %v338_v62  }
  0x40   :  { %v344_v63 = vld [vmem:[#allocation1 + $0xf8] sm:$0xf]   ;;  %v445_v0 = vld [vmem:[#allocation0 + $0x80] sm:$0xf]  ;;  %v451_v1 = vld [vmem:[#allocation0 + $0x88] sm:$0xf] }
  0x41   :  { %346 = vst [vmem:[#allocation0 + $0xcb] ss:$16 sm:$0x3] %v344_v63   ;;  %348 = vst [vmem:[#allocation0 + $0xcb] ss:$16 sm:$0xc] %v344_v63  }
  0x42   :  { %646 = vst [vmem:[%s865_s1 + $0x40] sm:$0xf] %v445_v0  ;;  %647 = vst [vmem:[%s865_s1 + $0x44] sm:$0xf] %v451_v1  ;;  %v457_v2 = vld [vmem:[#allocation0 + $0x90] sm:$0xf] }
  0x43   :  { %v463_v3 = vld [vmem:[#allocation0 + $0x98] sm:$0xf]  ;;  %v469_v4 = vld [vmem:[#allocation0 + $0xa0] sm:$0xf]  ;;  %v403_v6 = vld [vmem:[#allocation0 + $0x48] sm:$0xf] }
  0x44   :  { %v397_v5 = vld [vmem:[#allocation0 + $0x40] sm:$0xf]  ;;  %v409_v7 = vld [vmem:[#allocation0 + $0x50] sm:$0xf]  ;;  %648 = vst [vmem:[%s865_s1 + $0x48] sm:$0xf] %v457_v2 }
  0x45   :  { %649 = vst [vmem:[%s865_s1 + $0x4c] sm:$0xf] %v463_v3  ;;  %650 = vst [vmem:[%s865_s1 + $0x50] sm:$0xf] %v469_v4  ;;  %v415_v8 = vld [vmem:[#allocation0 + $0x58] sm:$0xf] }
  0x46   :  { %638 = vst [vmem:[%s865_s1 + $0x20] sm:$0xf] %v397_v5  ;;  %639 = vst [vmem:[%s865_s1 + $0x24] sm:$0xf] %v403_v6  ;;  %v421_v9 = vld [vmem:[#allocation0 + $0x60] sm:$0xf] }
  0x47   :  { %640 = vst [vmem:[%s865_s1 + $0x28] sm:$0xf] %v409_v7  ;;  %v427_v10 = vld [vmem:[#allocation0 + $0x68] sm:$0xf]  ;;  %641 = vst [vmem:[%s865_s1 + $0x2c] sm:$0xf] %v415_v8 }
  0x48   :  { %642 = vst [vmem:[%s865_s1 + $0x30] sm:$0xf] %v421_v9  ;;  %643 = vst [vmem:[%s865_s1 + $0x34] sm:$0xf] %v427_v10  ;;  %v433_v11 = vld [vmem:[#allocation0 + $0x70] sm:$0xf] }
  0x49   :  { %v439_v12 = vld [vmem:[#allocation0 + $0x78] sm:$0xf]  ;;  %v475_v13 = vld [vmem:[#allocation0 + $0xa8] sm:$0xf]  ;;  %v352_v14 = vld [vmem:[#allocation0] sm:$0xf] }
  0x4a   :  { %v356_v15 = vld [vmem:[#allocation0 + $0x8] sm:$0xf]  ;;  %v361_v16 = vld [vmem:[#allocation0 + $0x10] sm:$0xf]  ;;  %644 = vst [vmem:[%s865_s1 + $0x38] sm:$0xf] %v433_v11 }
  0x4b   :  { %645 = vst [vmem:[%s865_s1 + $0x3c] sm:$0xf] %v439_v12  ;;  %651 = vst [vmem:[%s865_s1 + $0x54] sm:$0xf] %v475_v13  ;;  %v367_v17 = vld [vmem:[#allocation0 + $0x18] sm:$0xf] }
  0x4c   :  { %354 = vst [vmem:[%s865_s1] sm:$0xf] %v352_v14  ;;  %631 = vst [vmem:[%s865_s1 + $0x4] sm:$0xf] %v356_v15  ;;  %v373_v18 = vld [vmem:[#allocation0 + $0x20] sm:$0xf] }
  0x4d   :  { %632 = vst [vmem:[%s865_s1 + $0x8] sm:$0xf] %v361_v16  ;;  %v379_v19 = vld [vmem:[#allocation0 + $0x28] sm:$0xf]  ;;  %633 = vst [vmem:[%s865_s1 + $0xc] sm:$0xf] %v367_v17 }
  0x4e   :  { %634 = vst [vmem:[%s865_s1 + $0x10] sm:$0xf] %v373_v18  ;;  %635 = vst [vmem:[%s865_s1 + $0x14] sm:$0xf] %v379_v19  ;;  %v385_v20 = vld [vmem:[#allocation0 + $0x30] sm:$0xf] }
  0x4f   :  { %v391_v21 = vld [vmem:[#allocation0 + $0x38] sm:$0xf]  ;;  %v481_v22 = vld [vmem:[#allocation0 + $0xb0] sm:$0xf]  ;;  %636 = vst [vmem:[%s865_s1 + $0x18] sm:$0xf] %v385_v20 }
  0x50   :  { %637 = vst [vmem:[%s865_s1 + $0x1c] sm:$0xf] %v391_v21  ;;  %652 = vst [vmem:[%s865_s1 + $0x58] sm:$0xf] %v481_v22  ;;  %v487_v23 = vld [vmem:[#allocation0 + $0xb8] sm:$0xf] }
  0x51   :  { %v493_v24 = vld [vmem:[#allocation0 + $0xc0] sm:$0xf]  ;;  %v499_v25 = vld [vmem:[#allocation0 + $0xc8] sm:$0xf]  ;;  %653 = vst [vmem:[%s865_s1 + $0x5c] sm:$0xf] %v487_v23 }
  0x52   :  { %654 = vst [vmem:[%s865_s1 + $0x60] sm:$0xf] %v493_v24  ;;  %655 = vst [vmem:[%s865_s1 + $0x64] sm:$0xf] %v499_v25  ;;  %v505_v26 = vld [vmem:[#allocation0 + $0xd0] sm:$0xf] }
  0x53   :  { %v511_v27 = vld [vmem:[#allocation0 + $0xd8] sm:$0xf]  ;;  %v517_v28 = vld [vmem:[#allocation0 + $0xe0] sm:$0xf]  ;;  %656 = vst [vmem:[%s865_s1 + $0x68] sm:$0xf] %v505_v26 }
  0x54   :  { %657 = vst [vmem:[%s865_s1 + $0x6c] sm:$0xf] %v511_v27  ;;  %658 = vst [vmem:[%s865_s1 + $0x70] sm:$0xf] %v517_v28  ;;  %v523_v29 = vld [vmem:[#allocation0 + $0xe8] sm:$0xf] }
  0x55   :  { %v529_v30 = vld [vmem:[#allocation0 + $0xf0] sm:$0xf]  ;;  %v535_v31 = vld [vmem:[#allocation0 + $0xf8] sm:$0xf]  ;;  %659 = vst [vmem:[%s865_s1 + $0x74] sm:$0xf] %v523_v29 }
  0x56   :  { %660 = vst [vmem:[%s865_s1 + $0x78] sm:$0xf] %v529_v30  ;;  %661 = vst [vmem:[%s865_s1 + $0x7c] sm:$0xf] %v535_v31 }

// kernel: _lambda_.9
= control target key start
LH: loop header
LB: loop body
LE: loop exit
PB: predicated region body
PF: predicated region fallthrough
CT: control target
= control target key end

     0   :  { %vm43_vm0 = vcmask 1042432   ;;  %s263_s0 = inlined_call_operand.vmem [shape: f32[4,4,256], index: 0, kind: input, shape index: {}]   ;;  %s264_s1 = inlined_call_operand.vmem [shape: f32[4,3,256], index: 1, kind: input, shape index: {}]   ;;  %s265_s2 = inlined_call_operand.<no memory space> [shape: f32[1], index: 2, kind: input, shape index: {}]   ;;  %s266_s3 = inlined_call_operand.vmem [shape: f32[4,4,256], index: 3, kind: output, shape index: {}]  }
   0x1   :  { %v193_v0 = vld [vmem:[%s263_s0] sm:$0xff]  ;;  %v201_v2 = vld [vmem:[%s263_s0 + $0x8] sm:$0xff]  ;;  %v210_v5 = vld [vmem:[%s263_s0 + $0x10] sm:$0xff]  ;;  %v230_v17 = vstv %s265_s2 }
   0x2   :  { %v19_v1 = vld [vmem:[%s264_s1] sm:$0x77]  ;;  %v20_v4 = vld [vmem:[%s264_s1 + $0x8] sm:$0x77]  ;;  %v21_v6 = vld [vmem:[%s264_s1 + $0x10] sm:$0x77] }
   0x3   :  { %v23_v3 = vsub.f32 %v193_v0, %v19_v1  ;;  %v24_v7 = vsub.f32 %v201_v2, %v20_v4  ;;  %v25_v8 = vsub.f32 %v210_v5, %v21_v6  ;;  %v220_v9 = vld [vmem:[%s263_s0 + $0x18] sm:$0xff] }
   0x4   :  { %v22_v10 = vld [vmem:[%s264_s1 + $0x18] sm:$0x77] }
   0x5   :  { %v27_v11 = vand.u32 2147483647, %v23_v3  ;;  %v26_v12 = vsub.f32 %v220_v9, %v22_v10  ;;  %v28_v13 = vand.u32 2147483647, %v24_v7  ;;  %v29_v14 = vand.u32 2147483647, %v25_v8 }
   0x7   :  { %v35_v15 = vcombine.high %v27_v11, %v27_v11  ;;  %v44_v16 = vsel %vm43_vm0, %v27_v11, 0.0  ;;  %v30_v18 = vand.u32 2147483647, %v26_v12  ;;  %v36_v20 = vcombine.high %v28_v13, %v28_v13 }
   0x8   :  { %v45_v19 = vrot.slane %v44_v16, 4  ;;  %v58_v21 = vsel %vm43_vm0, %v28_v13, 0.0  ;;  %v37_v22 = vcombine.high %v29_v14, %v29_v14  ;;  %v72_v25 = vsel %vm43_vm0, %v29_v14, 0.0 }
   0x9   :  { %v51_v23 = vsel %vm43_vm0, %v35_v15, 0.0  ;;  %v59_v24 = vrot.slane %v58_v21, 4  ;;  %v38_v26 = vcombine.high %v30_v18, %v30_v18  ;;  %v65_v29 = vsel %vm43_vm0, %v36_v20, 0.0 }
   0xa   :  { %v46_v27 = vadd.f32 %v45_v19, %v44_v16  ;;  %v52_v28 = vrot.slane %v51_v23, 4  ;;  %v73_v30 = vrot.slane %v72_v25, 4  ;;  %v66_v32 = vrot.slane %v65_v29, 4 }
   0xb   :  { %v60_v31 = vadd.f32 %v59_v24, %v58_v21  ;;  %v79_v33 = vsel %vm43_vm0, %v37_v22, 0.0  ;;  %v86_v34 = vsel %vm43_vm0, %v30_v18, 0.0  ;;  %v93_v42 = vsel %vm43_vm0, %v38_v26, 0.0 }
   0xc   :  { %v47_v35 = vrot.slane %v46_v27, 2  ;;  %v53_v36 = vadd.f32 %v52_v28, %v51_v23  ;;  %v74_v37 = vadd.f32 %v73_v30, %v72_v25  ;;  %v80_v38 = vrot.slane %v79_v33, 4 }
   0xd   :  { %v61_v39 = vrot.slane %v60_v31, 2  ;;  %v67_v40 = vadd.f32 %v66_v32, %v65_v29  ;;  %v87_v41 = vrot.slane %v86_v34, 4  ;;  %v94_v50 = vrot.slane %v93_v42, 4 }
   0xe   :  { %v48_v43 = vadd.f32 %v47_v35, %v46_v27  ;;  %v54_v44 = vrot.slane %v53_v36, 2  ;;  %v75_v45 = vrot.slane %v74_v37, 2  ;;  %v81_v46 = vadd.f32 %v80_v38, %v79_v33 }
   0xf   :  { %v62_v47 = vadd.f32 %v61_v39, %v60_v31  ;;  %v68_v48 = vrot.slane %v67_v40, 2  ;;  %v88_v49 = vadd.f32 %v87_v41, %v86_v34  ;;  %v95_v58 = vadd.f32 %v94_v50, %v93_v42 }
  0x10   :  { %v49_v51 = vrot.slane %v48_v43, 1  ;;  %v55_v52 = vadd.f32 %v54_v44, %v53_v36  ;;  %v76_v53 = vadd.f32 %v75_v45, %v74_v37  ;;  %v82_v54 = vrot.slane %v81_v46, 2 }
  0x11   :  { %v63_v55 = vrot.slane %v62_v47, 1  ;;  %v69_v56 = vadd.f32 %v68_v48, %v67_v40  ;;  %v89_v57 = vrot.slane %v88_v49, 2  ;;  %v96_v4 = vrot.slane %v95_v58, 2 }
  0x12   :  { %v50_v59 = vadd.f32 %v49_v51, %v48_v43  ;;  %v56_v60 = vrot.slane %v55_v52, 1  ;;  %v77_v61 = vrot.slane %v76_v53, 1  ;;  %v83_v62 = vadd.f32 %v82_v54, %v81_v46 }
  0x13   :  { %v64_v63 = vadd.f32 %v63_v55, %v62_v47  ;;  %v70_v1 = vrot.slane %v69_v56, 1  ;;  %v90_v3 = vadd.f32 %v89_v57, %v88_v49  ;;  %v97_v14 = vadd.f32 %v96_v4, %v95_v58 }
  0x14   :  { %v57_v6 = vadd.f32 %v56_v60, %v55_v52  ;;  %v102_v7 = vmul.f32 %v230_v17, %v50_v59  ;;  %v78_v8 = vadd.f32 %v77_v61, %v76_v53  ;;  %v84_v10 = vrot.slane %v83_v62, 1 }
  0x15   :  { %v71_v11 = vadd.f32 %v70_v1, %v69_v56  ;;  %v104_v12 = vmul.f32 %v230_v17, %v64_v63  ;;  %v91_v13 = vrot.slane %v90_v3, 1  ;;  %v98_v23 = vrot.slane %v97_v14, 1 }
  0x16   :  { %v103_v15 = vmul.f32 %v230_v17, %v57_v6  ;;  %v110_v16 = vmul.f32 1.442695, %v102_v7  ;;  %v85_v18 = vadd.f32 %v84_v10, %v83_v62  ;;  %v106_v19 = vmul.f32 %v230_v17, %v78_v8 }
  0x17   :  { %v105_v20 = vmul.f32 %v230_v17, %v71_v11  ;;  %v114_v21 = vmul.f32 1.442695, %v104_v12  ;;  %v92_v22 = vadd.f32 %v91_v13, %v90_v3  ;;  %v99_v28 = vadd.f32 %v98_v23, %v97_v14 }
  0x18   :  { %154 = vpow2.f32 %v110_v16  ;;  %v112_v24 = vmul.f32 1.442695, %v103_v15  ;;  %v107_v25 = vmul.f32 %v230_v17, %v85_v18  ;;  %v118_v26 = vmul.f32 1.442695, %v106_v19 }
  0x19   :  { %156 = vpow2.f32 %v114_v21  ;;  %v116_v27 = vmul.f32 1.442695, %v105_v20  ;;  %v108_v29 = vmul.f32 %v230_v17, %v92_v22  ;;  %v109_v31 = vmul.f32 %v230_v17, %v99_v28 }
  0x1a   :  { %158 = vpow2.f32 %v112_v24  ;;  %v120_v30 = vmul.f32 1.442695, %v107_v25 }
  0x1b   :  { %160 = vpow2.f32 %v116_v27  ;;  %v122_v32 = vmul.f32 1.442695, %v108_v29  ;;  %v124_v33 = vmul.f32 1.442695, %v109_v31 }
  0x1c   :  { %162 = vpow2.f32 %v118_v26 }
  0x1d   :  { %164 = vpow2.f32 %v120_v30 }
  0x1e   :  { %166 = vpow2.f32 %v122_v32 }
  0x1f   :  { %168 = vpow2.f32 %v124_v33 }
  0x22   :  { %v155_v34 = vpop.eup %154 }
  0x23   :  { %v157_v35 = vpop.eup %156 }
  0x24   :  { %v159_v36 = vpop.eup %158 }
  0x25   :  { %v161_v37 = vpop.eup %160  ;;  %v134_v38 = vcombine.low %v155_v34, %v159_v36 }
  0x26   :  { %v163_v39 = vpop.eup %162  ;;  %v135_v40 = vcombine.low %v157_v35, %v161_v37 }
  0x27   :  { %v165_v41 = vpop.eup %164  ;;  %v142_v42 = vmul.f32 %v134_v38, %v193_v0 }
  0x28   :  { %v167_v43 = vpop.eup %166  ;;  %v143_v44 = vmul.f32 %v135_v40, %v201_v2  ;;  %v136_v17 = vcombine.low %v163_v39, %v165_v41 }
  0x29   :  { %v169_v45 = vpop.eup %168  ;;  %146 = vst [vmem:[%s266_s3] sm:$0xff] %v142_v42 }
  0x2a   :  { %147 = vst [vmem:[%s266_s3 + $0x8] sm:$0xff] %v143_v44  ;;  %v144_v46 = vmul.f32 %v136_v17, %v210_v5  ;;  %v137_v47 = vcombine.low %v167_v43, %v169_v45 }
  0x2c   :  { %148 = vst [vmem:[%s266_s3 + $0x10] sm:$0xff] %v144_v46  ;;  %v145_v0 = vmul.f32 %v137_v47, %v220_v9 }
  0x2e   :  { %149 = vst [vmem:[%s266_s3 + $0x18] sm:$0xff] %v145_v0 }

// kernel: _lambda_.13
= control target key start
LH: loop header
LB: loop body
LE: loop exit
PB: predicated region body
PF: predicated region fallthrough
CT: control target
= control target key end

     0   :  { %s513_s9 = smov 0   ;;  %s515_s10 = smov 0   ;;  %s568_s0 = inlined_call_operand.vmem [shape: bf16[8,208], index: 0, kind: input, shape index: {}]   ;;  %s569_s1 = inlined_call_operand.vmem [shape: bf16[18,208,128], index: 1, kind: input, shape index: {}]   ;;  %s570_s2 = inlined_call_operand.vmem [shape: f32[18,4,128], index: 2, kind: output, shape index: {}]  }
   0x1   :  { %s517_s11 = smov 0  }
   0x2 LB: > { %s21_s12 = sadd.s32 1, %s491_s10  ;;  %p411_p0 = scmp.ge.s32.totalorder %s495_s11, 1  ;;  %s495_s11 = sphi %s517_s11, %s12_s11   ;;  %s491_s10 = sphi %s515_s10, %s572_s10   ;;  %s487_s9 = sphi %s513_s9, %s571_s9  }
   0x3   : > { %p22_p1 = scmp.ge.s32.totalorder %s21_s12, 18  ;;  %p131_p2 = scmp.lt.s32.totalorder %s495_s11, 19 }
   0x5   : > { %s574_s12 = smov (%p22_p1, %s21_s12), 0  ;;  %p132_p3 = pnand %p411_p0, %p131_p2 }
   0x6   : > { %p158_p4 = scmp.lt.s32.totalorder (!%p132_p3), %s487_s9, 17  ;;  %v174_v0 = vld [vmem:[%s568_s0] sm:$0xff] (!%p132_p3)  ;;  %vm285_vm0 = vcmask (!%p132_p3), 654336   ;;  %v497_v1 = vmov (!%p132_p3), 0  }
   0x7   : > { %135 = sbr.rel (%p132_p3) target bundleno = 285 (0x11d), region = 28  ;;  %289 = vmatprep.subr.bf16.mxu0 (!%p132_p3), %v497_v1  ;;  %v415_v2 = vcombine.high (!%p132_p3), %v174_v0, %v174_v0  ;;  %v414_v16 = vcombine.low (!%p132_p3), %v174_v0, %v174_v0 }
   0x9   : > { %429 = vmatprep.mubr.msk.bf16.mxu0 (!%p132_p3), %vm285_vm0, %v415_v2 }
   0xe   : > { %s576_s9 = smov (!%p158_p4, %s487_s9), 17 }
   0xf   : > { %s432_s15 = smul.u32 104, %s576_s9  ;;  %s413_s19 = sshll.u32 %s576_s9, 2 }
  0x10   : > { %s172_s22 = scalar_lea.vmem %s570_s2, %s413_s19 }
  0x11   : > { %s540_s18 = scalar_lea.vmem %s569_s1, %s432_s15 }
  0x12   : > { %v458_v3 = vld [vmem:[%s540_s18] sm:$0xff]   ;;  %v459_v4 = vld [vmem:[%s540_s18 + $0x8] sm:$0xff]   ;;  %v460_v5 = vld [vmem:[%s540_s18 + $0x10] sm:$0xff]  }
  0x13   : > { %290 = vmatpush1.bf16.msra.mxu0 %v458_v3  ;;  %v461_v6 = vld [vmem:[%s540_s18 + $0x18] sm:$0xff]   ;;  %v462_v7 = vld [vmem:[%s540_s18 + $0x20] sm:$0xff]   ;;  %v463_v8 = vld [vmem:[%s540_s18 + $0x28] sm:$0xff]  }
  0x14   : > { %291 = vmatprep.subr.bf16.mxu0 %v497_v1  ;;  %v464_v9 = vld [vmem:[%s540_s18 + $0x30] sm:$0xff]   ;;  %v465_v10 = vld [vmem:[%s540_s18 + $0x38] sm:$0xff]   ;;  %v466_v11 = vld [vmem:[%s540_s18 + $0x40] sm:$0xff]  }
  0x15   : > { %v467_v12 = vld [vmem:[%s540_s18 + $0x48] sm:$0xff]   ;;  %v468_v13 = vld [vmem:[%s540_s18 + $0x50] sm:$0xff]   ;;  %v469_v14 = vld [vmem:[%s540_s18 + $0x58] sm:$0xff]  }
  0x16   : > { %v470_v15 = vld [vmem:[%s540_s18 + $0x60] sm:$0xff]  }
  0x17   : > { %292 = vmatpush1.bf16.msra.mxu0 %v459_v4 }
  0x18   : > { %293 = vmatprep.subr.bf16.mxu0 %v497_v1 }
  0x1b   : > { %294 = vmatpush1.bf16.msra.mxu0 %v460_v5 }
  0x1c   : > { %295 = vmatprep.subr.bf16.mxu0 %v497_v1 }
  0x1f   : > { %296 = vmatpush1.bf16.msra.mxu0 %v461_v6 }
  0x20   : > { %297 = vmatprep.subr.bf16.mxu0 %v497_v1 }
  0x23   : > { %298 = vmatpush1.bf16.msra.mxu0 %v462_v7 }
  0x24   : > { %299 = vmatprep.subr.bf16.mxu0 %v497_v1 }
  0x27   : > { %300 = vmatpush1.bf16.msra.mxu0 %v463_v8 }
  0x28   : > { %301 = vmatprep.subr.bf16.mxu0 %v497_v1 }
  0x2b   : > { %302 = vmatpush1.bf16.msra.mxu0 %v464_v9 }
  0x2c   : > { %303 = vmatprep.subr.bf16.mxu0 %v497_v1 }
  0x2f   : > { %304 = vmatpush1.bf16.msra.mxu0 %v465_v10 }
  0x30   : > { %305 = vmatprep.subr.bf16.mxu0 %v497_v1 }
  0x33   : > { %306 = vmatpush1.bf16.msra.mxu0 %v466_v11 }
  0x34   : > { %307 = vmatprep.subr.bf16.mxu0 %v497_v1 }
  0x37   : > { %308 = vmatpush1.bf16.msra.mxu0 %v467_v12 }
  0x38   : > { %309 = vmatprep.subr.bf16.mxu0 %v497_v1 }
  0x3b   : > { %310 = vmatpush1.bf16.msra.mxu0 %v468_v13 }
  0x3c   : > { %311 = vmatprep.subr.bf16.mxu0 %v497_v1 }
  0x3f   : > { %312 = vmatpush1.bf16.msra.mxu0 %v469_v14 }
  0x40   : > { %313 = vmatprep.subr.bf16.mxu0 %v497_v1 }
  0x43   : > { %314 = vmatpush1.bf16.msra.mxu0 %v470_v15 }
  0x46   : > { %322 = vmatmul.mubr.bf16.vlgmr.msra.gmra.mrb[0].mxu0 %v414_v16 }
 0x119   : > { %v323_v17 = vpop.f32.mrb[0].mxu0 }
 0x11a   : > { %329 = vst [vmem:[%s172_s22] sm:$0xf] %v323_v17  ;;  %v325_v18 = vpop.f32.mrb[1].mxu0 }
 0x11b   : > { %v326_v19 = vpop.f32.mrb[2].mxu0 }
 0x11c   : > { %v327_v20 = vpop.f32.mrb[3].mxu0 }
 0x11d PF: > { %s12_s11 = sadd.s32 1, %s495_s11   ;;  %s571_s9 = smov %s491_s10 }
 0x11e   : > { %p9_p5 = scmp.ge.s32.totalorder %s12_s11, 20   ;;  %s572_s10 = smov %s574_s12 }
 0x120   :  { %11 = sbr.rel (!%p9_p5) target bundleno = 2 (0x2), region = 58 }

// kernel: _lambda_.14
= control target key start
LH: loop header
LB: loop body
LE: loop exit
PB: predicated region body
PF: predicated region fallthrough
CT: control target
= control target key end

     0   :  { %s830_s9 = smov 0   ;;  %s832_s10 = smov 0   ;;  %s920_s0 = inlined_call_operand.vmem [shape: bf16[16,336], index: 0, kind: input, shape index: {}]   ;;  %s921_s1 = inlined_call_operand.vmem [shape: bf16[2,336,256], index: 1, kind: input, shape index: {}]   ;;  %s922_s2 = inlined_call_operand.vmem [shape: f32[2,9,256], index: 2, kind: output, shape index: {}]  }
   0x1   :  { %s834_s11 = smov 0  }
   0x2 LB: > { %s21_s12 = sadd.s32 1, %s808_s10  ;;  %p640_p0 = scmp.ge.s32.totalorder %s812_s11, 1  ;;  %s812_s11 = sphi %s834_s11, %s12_s11   ;;  %s808_s10 = sphi %s832_s10, %s924_s10   ;;  %s804_s9 = sphi %s830_s9, %s923_s9  }
   0x3   : > { %p22_p1 = scmp.ge.s32.totalorder %s21_s12, 2  ;;  %p133_p2 = scmp.lt.s32.totalorder %s812_s11, 3 }
   0x5   : > { %s926_s12 = smov (%p22_p1, %s21_s12), 0  ;;  %p134_p3 = pnand %p640_p0, %p133_p2 }
   0x6   : > { %p164_p4 = scmp.lt.s32.totalorder (!%p134_p3), %s804_s9, 1  ;;  %v814_v0 = vmov (!%p134_p3), 0   ;;  %v789_v1 = vld [vmem:[%s920_s0 + $0x4] ss:$12 sps:$4 sm:$0xff] (!%p134_p3)   ;;  %v786_v31 = vld [vmem:[%s920_s0 + $0x8] ss:$12 sps:$4 sm:$0xff] (!%p134_p3)  }
   0x7   : > { %137 = sbr.rel (%p134_p3) target bundleno = 301 (0x12d), region = 28  ;;  %534 = vmatprep.mubr.bf16.mxu0 (!%p134_p3), %v814_v0  ;;  %491 = vmatprep.mubr.bf16.mxu1 (!%p134_p3), %v789_v1  ;;  %vm455_vm0 = vcmask (!%p134_p3), 654336   ;;  %v787_v45 = vld [vmem:[%s920_s0] ss:$12 sps:$4 sm:$0xff] (!%p134_p3)  }
   0xe   : > { %s928_s9 = smov (!%p164_p4, %s804_s9), 1 }
   0xf   : > { %s697_s15 = smul.u32 336, %s928_s9  ;;  %s692_s23 = sshll.u32 %s928_s9, 5 }
  0x10   : > { %s181_s26 = scalar_lea.vmem %s922_s2, %s692_s23 }
  0x11   : > { %s857_s18 = scalar_lea.vmem %s921_s1, %s697_s15 }
  0x12   : > { %v723_v2 = vld [vmem:[%s857_s18 + $0x4] ss:$8 sps:$4 sm:$0xff]   ;;  %v725_v3 = vld [vmem:[%s857_s18] ss:$8 sps:$4 sm:$0xff]   ;;  %v726_v4 = vld [vmem:[%s857_s18 + $0x14] ss:$8 sps:$4 sm:$0xff]  }
  0x13   : > { %459 = vmatprep.subr.bf16.mxu1 %v723_v2  ;;  %v728_v5 = vld [vmem:[%s857_s18 + $0x10] ss:$8 sps:$4 sm:$0xff]   ;;  %v729_v6 = vld [vmem:[%s857_s18 + $0x24] ss:$8 sps:$4 sm:$0xff]   ;;  %v731_v7 = vld [vmem:[%s857_s18 + $0x20] ss:$8 sps:$4 sm:$0xff]  }
  0x14   : > { %460 = vmatpush1.bf16.msra.mxu1 %v725_v3  ;;  %v732_v8 = vld [vmem:[%s857_s18 + $0x34] ss:$8 sps:$4 sm:$0xff]   ;;  %v734_v9 = vld [vmem:[%s857_s18 + $0x30] ss:$8 sps:$4 sm:$0xff]   ;;  %v735_v10 = vld [vmem:[%s857_s18 + $0x44] ss:$8 sps:$4 sm:$0xff]  }
  0x15   : > { %461 = vmatprep.subr.bf16.mxu1 %v726_v4  ;;  %v737_v11 = vld [vmem:[%s857_s18 + $0x40] ss:$8 sps:$4 sm:$0xff]   ;;  %v756_v12 = vld [vmem:[%s857_s18 + $0x104] ss:$8 sps:$4 sm:$0xff]   ;;  %v738_v14 = vld [vmem:[%s857_s18 + $0x54] ss:$8 sps:$4 sm:$0xff]  }
  0x16   : > { %v758_v13 = vld [vmem:[%s857_s18 + $0x100] ss:$8 sps:$4 sm:$0xff]   ;;  %502 = vmatprep.subr.bf16.mxu0 %v756_v12  ;;  %v762_v15 = vld [vmem:[%s857_s18 + $0x114] ss:$8 sps:$4 sm:$0xff]   ;;  %v764_v16 = vld [vmem:[%s857_s18 + $0x110] ss:$8 sps:$4 sm:$0xff]  }
  0x17   : > { %503 = vmatpush1.bf16.msra.mxu0 %v758_v13  ;;  %v740_v17 = vld [vmem:[%s857_s18 + $0x50] ss:$8 sps:$4 sm:$0xff]   ;;  %v741_v18 = vld [vmem:[%s857_s18 + $0x64] ss:$8 sps:$4 sm:$0xff]   ;;  %v770_v20 = vld [vmem:[%s857_s18 + $0x120] ss:$8 sps:$4 sm:$0xff]  }
  0x18   : > { %462 = vmatpush1.bf16.msra.mxu1 %v728_v5  ;;  %504 = vmatprep.subr.bf16.mxu0 %v762_v15  ;;  %v768_v19 = vld [vmem:[%s857_s18 + $0x124] ss:$8 sps:$4 sm:$0xff]   ;;  %v743_v21 = vld [vmem:[%s857_s18 + $0x60] ss:$8 sps:$4 sm:$0xff]   ;;  %v774_v22 = vld [vmem:[%s857_s18 + $0x134] ss:$8 sps:$4 sm:$0xff]  }
  0x19   : > { %463 = vmatprep.subr.bf16.mxu1 %v729_v6  ;;  %v744_v23 = vld [vmem:[%s857_s18 + $0x74] ss:$8 sps:$4 sm:$0xff]   ;;  %v776_v24 = vld [vmem:[%s857_s18 + $0x130] ss:$8 sps:$4 sm:$0xff]   ;;  %v780_v26 = vld [vmem:[%s857_s18 + $0x144] ss:$8 sps:$4 sm:$0xff]  }
  0x1a   : > { %v746_v25 = vld [vmem:[%s857_s18 + $0x70] ss:$8 sps:$4 sm:$0xff]   ;;  %v747_v27 = vld [vmem:[%s857_s18 + $0x84] ss:$8 sps:$4 sm:$0xff]   ;;  %v782_v28 = vld [vmem:[%s857_s18 + $0x140] ss:$8 sps:$4 sm:$0xff]  }
  0x1b   : > { %505 = vmatpush1.bf16.msra.mxu0 %v764_v16  ;;  %v749_v29 = vld [vmem:[%s857_s18 + $0x80] ss:$8 sps:$4 sm:$0xff]   ;;  %v750_v30 = vld [vmem:[%s857_s18 + $0x94] ss:$8 sps:$4 sm:$0xff]   ;;  %v752_v32 = vld [vmem:[%s857_s18 + $0x90] ss:$8 sps:$4 sm:$0xff]  }
  0x1c   : > { %464 = vmatpush1.bf16.msra.mxu1 %v731_v7  ;;  %506 = vmatprep.subr.bf16.mxu0 %v768_v19  ;;  %v753_v33 = vld [vmem:[%s857_s18 + $0xa4] ss:$8 sps:$4 sm:$0xff]   ;;  %v755_v34 = vld [vmem:[%s857_s18 + $0xa0] ss:$8 sps:$4 sm:$0xff]   ;;  %v759_v35 = vld [vmem:[%s857_s18 + $0xb4] ss:$8 sps:$4 sm:$0xff]  }
  0x1d   : > { %465 = vmatprep.subr.bf16.mxu1 %v732_v8  ;;  %v761_v36 = vld [vmem:[%s857_s18 + $0xb0] ss:$8 sps:$4 sm:$0xff]   ;;  %v765_v37 = vld [vmem:[%s857_s18 + $0xc4] ss:$8 sps:$4 sm:$0xff]   ;;  %v767_v38 = vld [vmem:[%s857_s18 + $0xc0] ss:$8 sps:$4 sm:$0xff]  }
  0x1e   : > { %v771_v39 = vld [vmem:[%s857_s18 + $0xd4] ss:$8 sps:$4 sm:$0xff]   ;;  %v773_v40 = vld [vmem:[%s857_s18 + $0xd0] ss:$8 sps:$4 sm:$0xff]   ;;  %v777_v41 = vld [vmem:[%s857_s18 + $0xe4] ss:$8 sps:$4 sm:$0xff]  }
  0x1f   : > { %507 = vmatpush1.bf16.msra.mxu0 %v770_v20  ;;  %v779_v42 = vld [vmem:[%s857_s18 + $0xe0] ss:$8 sps:$4 sm:$0xff]   ;;  %v783_v43 = vld [vmem:[%s857_s18 + $0xf4] ss:$8 sps:$4 sm:$0xff]   ;;  %v785_v44 = vld [vmem:[%s857_s18 + $0xf0] ss:$8 sps:$4 sm:$0xff]  }
  0x20   : > { %466 = vmatpush1.bf16.msra.mxu1 %v734_v9  ;;  %508 = vmatprep.subr.bf16.mxu0 %v774_v22 }
  0x21   : > { %467 = vmatprep.subr.bf16.mxu1 %v735_v10 }
  0x23   : > { %509 = vmatpush1.bf16.msra.mxu0 %v776_v24 }
  0x24   : > { %468 = vmatpush1.bf16.msra.mxu1 %v737_v11  ;;  %510 = vmatprep.subr.bf16.mxu0 %v780_v26 }
  0x25   : > { %469 = vmatprep.subr.bf16.mxu1 %v738_v14 }
  0x27   : > { %511 = vmatpush1.bf16.msra.mxu0 %v782_v28 }
  0x28   : > { %470 = vmatpush1.bf16.msra.mxu1 %v740_v17 }
  0x29   : > { %471 = vmatprep.subr.bf16.mxu1 %v741_v18 }
  0x2a   : > { %689 = vmatmul.mubr.msk.bf16.vlgmr.msra.gmra.mrb[0].mxu0 %vm455_vm0, %v786_v31 }
  0x2c   : > { %472 = vmatpush1.bf16.msra.mxu1 %v743_v21 }
  0x2d   : > { %473 = vmatprep.subr.bf16.mxu1 %v744_v23 }
  0x30   : > { %474 = vmatpush1.bf16.msra.mxu1 %v746_v25 }
  0x31   : > { %475 = vmatprep.subr.bf16.mxu1 %v747_v27 }
  0x34   : > { %476 = vmatpush1.bf16.msra.mxu1 %v749_v29 }
  0x35   : > { %477 = vmatprep.subr.bf16.mxu1 %v750_v30 }
  0x38   : > { %478 = vmatpush1.bf16.msra.mxu1 %v752_v32 }
  0x39   : > { %479 = vmatprep.subr.bf16.mxu1 %v753_v33 }
  0x3c   : > { %480 = vmatpush1.bf16.msra.mxu1 %v755_v34 }
  0x3d   : > { %481 = vmatprep.subr.bf16.mxu1 %v759_v35 }
  0x40   : > { %482 = vmatpush1.bf16.msra.mxu1 %v761_v36 }
  0x41   : > { %483 = vmatprep.subr.bf16.mxu1 %v765_v37 }
  0x44   : > { %484 = vmatpush1.bf16.msra.mxu1 %v767_v38 }
  0x45   : > { %485 = vmatprep.subr.bf16.mxu1 %v771_v39 }
  0x48   : > { %486 = vmatpush1.bf16.msra.mxu1 %v773_v40 }
  0x49   : > { %487 = vmatprep.subr.bf16.mxu1 %v777_v41 }
  0x4c   : > { %488 = vmatpush1.bf16.msra.mxu1 %v779_v42 }
  0x4d   : > { %489 = vmatprep.subr.bf16.mxu1 %v783_v43 }
  0x50   : > { %490 = vmatpush1.bf16.msra.mxu1 %v785_v44 }
  0x53   : > { %492 = vmatmul.mubr.bf16.vlgmr.msra.gmra.mrb[0].mxu1 %v787_v45 }
  0xfd   : > { %v536_v46 = vpop.f32.mrb[0].mxu0 }
  0xfe   : > { %v538_v47 = vpop.f32.mrb[1].mxu0 }
  0xff   : > { %v540_v48 = vpop.f32.mrb[2].mxu0 }
 0x100   : > { %v542_v49 = vpop.f32.mrb[3].mxu0 }
 0x126   : > { %v493_v50 = vpop.f32.mrb[0].mxu1 }
 0x127   : > { %v537_v51 = vadd.f32 %v536_v46, %v493_v50  ;;  %v495_v52 = vpop.f32.mrb[1].mxu1 }
 0x128   : > { %v539_v53 = vadd.f32 %v538_v47, %v495_v52  ;;  %v497_v54 = vpop.f32.mrb[2].mxu1 }
 0x129   : > { %545 = vst [vmem:[%s181_s26] sm:$0xff] %v537_v51  ;;  %v541_v55 = vadd.f32 %v540_v48, %v497_v54  ;;  %v499_v56 = vpop.f32.mrb[3].mxu1 }
 0x12a   : > { %546 = vst [vmem:[%s181_s26 + $0x8] sm:$0xff] %v539_v53  ;;  %v543_v57 = vadd.f32 %v542_v49, %v499_v56 }
 0x12b   : > { %547 = vst [vmem:[%s181_s26 + $0x10] sm:$0x1] %v541_v55 }
 0x12c   : > { %548 = vst [vmem:[%s181_s26 + $0x18] sm:$0x1] %v543_v57 }
 0x12d PF: > { %s12_s11 = sadd.s32 1, %s812_s11   ;;  %s923_s9 = smov %s808_s10 }
 0x12e   : > { %p9_p5 = scmp.ge.s32.totalorder %s12_s11, 4   ;;  %s924_s10 = smov %s926_s12 }
 0x130   :  { %11 = sbr.rel (!%p9_p5) target bundleno = 2 (0x2), region = 58 }

// kernel: _lambda_.15
= control target key start
LH: loop header
LB: loop body
LE: loop exit
PB: predicated region body
PF: predicated region fallthrough
CT: control target
= control target key end

     0   :  { %vm39_vm0 = vcmask 1040384   ;;  %v128_v53 = vlaneseq  ;;  %s655_s0 = inlined_call_operand.vmem [shape: f32[2,9,256], index: 0, kind: input, shape index: {}]   ;;  %s656_s1 = inlined_call_operand.vmem [shape: f32[2,36,256], index: 1, kind: input, shape index: {}]   ;;  %s657_s2 = inlined_call_operand.vmem [shape: f32[2,4,256], index: 2, kind: output, shape index: {}]  }
   0x1   :  { %v11_v0 = vld [vmem:[%s655_s0] sm:$0xff]  ;;  %v12_v1 = vld [vmem:[%s655_s0 + $0x8] sm:$0xff]  ;;  %v13_v2 = vld [vmem:[%s655_s0 + $0x10] sm:$0x1] }
   0x2   :  { %v14_v3 = vld [vmem:[%s655_s0 + $0x18] sm:$0x1]  ;;  %v15_v4 = vld [vmem:[%s655_s0 + $0x20] sm:$0xff]  ;;  %v16_v5 = vld [vmem:[%s655_s0 + $0x28] sm:$0xff]  ;;  %v40_v6 = vsel %vm39_vm0, %v13_v2, -inf  ;;  %v477_v57 = vshrl.u32 %v128_v53, 7 }
   0x3   :  { %v17_v7 = vld [vmem:[%s655_s0 + $0x30] sm:$0x1]  ;;  %v18_v8 = vld [vmem:[%s655_s0 + $0x38] sm:$0x1]  ;;  %v41_v9 = vmax.f32 %v11_v0, %v40_v6  ;;  %v48_v10 = vsel %vm39_vm0, %v14_v3, -inf }
   0x4   :  { %v49_v11 = vmax.f32 %v12_v1, %v48_v10  ;;  %v56_v12 = vsel %vm39_vm0, %v17_v7, -inf  ;;  %v64_v13 = vsel %vm39_vm0, %v18_v8, -inf  ;;  %v150_v58 = vsub.s32 1, %v477_v57 }
   0x5   :  { %v42_v14 = vrot.slane %v41_v9, 4  ;;  %v57_v15 = vmax.f32 %v15_v4, %v56_v12  ;;  %v65_v16 = vmax.f32 %v16_v5, %v64_v13  ;;  %v487_v62 = vsub.s32 0, %v477_v57 }
   0x6   :  { %v50_v17 = vrot.slane %v49_v11, 4  ;;  %v186_v12 = vsub.s32 2, %v477_v57  ;;  %v210_v13 = vsub.s32 3, %v477_v57 }
   0x7   :  { %v43_v18 = vmax.f32 %v41_v9, %v42_v14  ;;  %v58_v19 = vrot.slane %v57_v15, 4  ;;  %v66_v20 = vrot.slane %v65_v16, 4  ;;  %v29_v9 = vld [vmem:[%s656_s1 + $0x50] sm:$0xff] }
   0x8   :  { %v51_v21 = vmax.f32 %v49_v11, %v50_v17 }
   0x9   :  { %v44_v22 = vrot.slane %v43_v18, 2  ;;  %v59_v23 = vmax.f32 %v57_v15, %v58_v19  ;;  %v67_v24 = vmax.f32 %v65_v16, %v66_v20  ;;  %v30_v15 = vld [vmem:[%s656_s1 + $0x58] sm:$0xff] }
   0xa   :  { %v52_v25 = vrot.slane %v51_v21, 2 }
   0xb   :  { %v45_v26 = vmax.f32 %v43_v18, %v44_v22  ;;  %v60_v27 = vrot.slane %v59_v23, 2  ;;  %v68_v28 = vrot.slane %v67_v24, 2 }
   0xc   :  { %v53_v29 = vmax.f32 %v51_v21, %v52_v25 }
   0xd   :  { %v46_v30 = vrot.slane %v45_v26, 1  ;;  %v61_v31 = vmax.f32 %v59_v23, %v60_v27  ;;  %v69_v32 = vmax.f32 %v67_v24, %v68_v28 }
   0xe   :  { %v54_v33 = vrot.slane %v53_v29, 1 }
   0xf   :  { %v47_v34 = vmax.f32 %v45_v26, %v46_v30  ;;  %v62_v35 = vrot.slane %v61_v31, 1  ;;  %v70_v36 = vrot.slane %v69_v32, 1 }
  0x10   :  { %v55_v37 = vmax.f32 %v53_v29, %v54_v33 }
  0x11   :  { %v63_v38 = vmax.f32 %v61_v31, %v62_v35  ;;  %v71_v39 = vmax.f32 %v69_v32, %v70_v36  ;;  %v72_v40 = vsub.f32 %v11_v0, %v47_v34  ;;  %v74_v41 = vsub.f32 %v13_v2, %v47_v34 }
  0x12   :  { %v73_v42 = vsub.f32 %v12_v1, %v55_v37  ;;  %v75_v43 = vsub.f32 %v14_v3, %v55_v37  ;;  %v19_v1 = vld [vmem:[%s656_s1] sm:$0xff]  ;;  %v538_v32 = vsub.s32 4, %v477_v57 }
  0x13   :  { %v76_v44 = vsub.f32 %v15_v4, %v63_v38  ;;  %v77_v45 = vsub.f32 %v16_v5, %v71_v39  ;;  %v78_v46 = vsub.f32 %v17_v7, %v63_v38  ;;  %v80_v47 = vmul.f32 1.442695, %v72_v40  ;;  %v20_v5 = vld [vmem:[%s656_s1 + $0x8] sm:$0xff] }
  0x14   :  { %v82_v48 = vmul.f32 1.442695, %v73_v42  ;;  %v84_v49 = vmul.f32 1.442695, %v74_v41  ;;  %v79_v50 = vsub.f32 %v18_v8, %v71_v39  ;;  %v86_v51 = vmul.f32 1.442695, %v75_v43 }
  0x15   :  { %410 = vpow2.f32 %v80_v47  ;;  %v88_v52 = vmul.f32 1.442695, %v76_v44  ;;  %v90_v54 = vmul.f32 1.442695, %v77_v45  ;;  %v92_v55 = vmul.f32 1.442695, %v78_v46 }
  0x16   :  { %412 = vpow2.f32 %v82_v48  ;;  %v94_v56 = vmul.f32 1.442695, %v79_v50  ;;  %v21_v41 = vld [vmem:[%s656_s1 + $0x10] sm:$0xff]  ;;  %v22_v46 = vld [vmem:[%s656_s1 + $0x18] sm:$0xff]  ;;  %v549_v50 = vsub.s32 5, %v477_v57 }
  0x17   :  { %414 = vpow2.f32 %v84_v49 }
  0x18   :  { %416 = vpow2.f32 %v86_v51 }
  0x19   :  { %418 = vpow2.f32 %v88_v52 }
  0x1a   :  { %420 = vpow2.f32 %v90_v54 }
  0x1b   :  { %422 = vpow2.f32 %v92_v55  ;;  %v31_v55 = vld [vmem:[%s656_s1 + $0x60] sm:$0xff] }
  0x1c   :  { %424 = vpow2.f32 %v94_v56  ;;  %v32_v56 = vld [vmem:[%s656_s1 + $0x68] sm:$0xff] }
  0x1f   :  { %v480_v59 = vpop.eup %410 }
  0x20   :  { %v482_v60 = vpop.eup %412  ;;  %v151_v63 = vrot.slane %v480_v59, %v150_v58  ;;  %v131_v16 = vrot.slane %v480_v59, %v487_v62  ;;  %v187_v35 = vrot.slane %v480_v59, %v186_v12  ;;  %v211_v53 = vrot.slane %v480_v59, %v210_v13 }
  0x21   :  { %v484_v61 = vpop.eup %414  ;;  %v155_v3 = vrot.slane %v482_v60, %v150_v58  ;;  %v135_v17 = vrot.slane %v482_v60, %v487_v62  ;;  %v191_v36 = vrot.slane %v482_v60, %v186_v12  ;;  %v215_v54 = vrot.slane %v482_v60, %v210_v13 }
  0x22   :  { %v490_v0 = vpop.eup %416  ;;  %v96_v2 = vsel %vm39_vm0, %v484_v61, 0.0  ;;  %v164_v19 = vmul.f32 %v151_v63, %v19_v1  ;;  %v144_v34 = vmul.f32 %v131_v16, %v19_v1 }
  0x23   :  { %v498_v4 = vpop.eup %418  ;;  %v97_v6 = vadd.f32 %v480_v59, %v96_v2  ;;  %v104_v7 = vsel %vm39_vm0, %v490_v0, 0.0  ;;  %v165_v24 = vmul.f32 %v155_v3, %v20_v5  ;;  %v145_v38 = vmul.f32 %v135_v17, %v20_v5 }
  0x24   :  { %v506_v8 = vpop.eup %420  ;;  %v105_v10 = vadd.f32 %v482_v60, %v104_v7  ;;  %v159_v11 = vrot.slane %v498_v4, %v150_v58  ;;  %v139_v23 = vrot.slane %v498_v4, %v487_v62  ;;  %v172_v39 = vrot.slane %v164_v19, 4 }
  0x25   :  { %v515_v14 = vpop.eup %422  ;;  %v163_v18 = vrot.slane %v506_v8, %v150_v58  ;;  %v98_v21 = vrot.slane %v97_v6, 4  ;;  %v143_v30 = vrot.slane %v506_v8, %v487_v62  ;;  %v173_v40 = vrot.slane %v165_v24, 4 }
  0x26   :  { %v525_v20 = vpop.eup %424  ;;  %v112_v22 = vsel %vm39_vm0, %v515_v14, 0.0  ;;  %v106_v25 = vrot.slane %v105_v10, 4  ;;  %v166_v28 = vmul.f32 %v159_v11, %v29_v9  ;;  %v146_v44 = vmul.f32 %v139_v23, %v29_v9 }
  0x27   :  { %v113_v26 = vadd.f32 %v498_v4, %v112_v22  ;;  %v120_v27 = vsel %vm39_vm0, %v525_v20, 0.0  ;;  %v167_v31 = vmul.f32 %v163_v18, %v30_v15  ;;  %v99_v37 = vadd.f32 %v98_v21, %v97_v6 }
  0x28   :  { %v121_v29 = vadd.f32 %v506_v8, %v120_v27  ;;  %v107_v42 = vadd.f32 %v106_v25, %v105_v10  ;;  %v174_v45 = vrot.slane %v166_v28, 4  ;;  %v147_v48 = vmul.f32 %v143_v30, %v30_v15 }
  0x29   :  { %v114_v33 = vrot.slane %v113_v26, 4  ;;  %v175_v49 = vrot.slane %v167_v31, 4  ;;  %v195_v51 = vrot.slane %v498_v4, %v186_v12  ;;  %v199_v52 = vrot.slane %v506_v8, %v186_v12  ;;  %v23_v31 = vld [vmem:[%s656_s1 + $0x20] sm:$0xff] }
  0x2a   :  { %v122_v43 = vrot.slane %v121_v29, 4  ;;  %v100_v58 = vrot.slane %v99_v37, 2  ;;  %v180_v63 = vadd.f32 %v172_v39, %v144_v34  ;;  %v181_v1 = vadd.f32 %v173_v40, %v145_v38 }
  0x2b   :  { %v115_v47 = vadd.f32 %v114_v33, %v113_v26  ;;  %v200_v2 = vmul.f32 %v187_v35, %v21_v41  ;;  %v108_v3 = vrot.slane %v107_v42, 2  ;;  %v182_v6 = vadd.f32 %v174_v45, %v146_v44 }
  0x2c   :  { %v123_v5 = vadd.f32 %v122_v43, %v121_v29  ;;  %v201_v7 = vmul.f32 %v191_v36, %v22_v46  ;;  %v183_v10 = vadd.f32 %v175_v49, %v147_v48  ;;  %v219_v11 = vrot.slane %v498_v4, %v210_v13 }
  0x2d   :  { %v116_v9 = vrot.slane %v115_v47, 2  ;;  %v223_v12 = vrot.slane %v506_v8, %v210_v13  ;;  %v202_v15 = vmul.f32 %v195_v51, %v31_v55  ;;  %v203_v16 = vmul.f32 %v199_v52, %v32_v56 }
  0x2e   :  { %v224_v17 = vmul.f32 %v211_v53, %v21_v41  ;;  %v225_v18 = vmul.f32 %v215_v54, %v22_v46  ;;  %v226_v19 = vmul.f32 %v219_v11, %v31_v55  ;;  %v564_v22 = vsub.s32 6, %v477_v57  ;;  %v33_v41 = vld [vmem:[%s656_s1 + $0x70] sm:$0xff]  ;;  %v34_v46 = vld [vmem:[%s656_s1 + $0x78] sm:$0xff] }
  0x2f   :  { %v227_v21 = vmul.f32 %v223_v12, %v32_v56  ;;  %v567_v23 = vsub.s32 7, %v477_v57  ;;  %v204_v24 = vadd.f32 %v200_v2, %v180_v63  ;;  %v205_v25 = vadd.f32 %v201_v7, %v181_v1  ;;  %v24_v57 = vld [vmem:[%s656_s1 + $0x28] sm:$0xff] }
  0x30   :  { %v232_v26 = vrot.slane %v224_v17, 4  ;;  %v233_v27 = vrot.slane %v225_v18, 4  ;;  %v101_v28 = vadd.f32 %v100_v58, %v99_v37  ;;  %v569_v29 = vadd.f32 %v108_v3, %v107_v42  ;;  %v26_v17 = vld [vmem:[%s656_s1 + $0x38] sm:$0xff] }
  0x31   :  { %v247_v13 = vrot.slane %v480_v59, %v538_v32  ;;  %v251_v30 = vrot.slane %v482_v60, %v538_v32  ;;  %v117_v33 = vadd.f32 %v116_v9, %v115_v47  ;;  %v124_v34 = vrot.slane %v123_v5, 2 }
  0x32   :  { %v206_v35 = vadd.f32 %v202_v15, %v182_v6  ;;  %v207_v36 = vadd.f32 %v203_v16, %v183_v10  ;;  %v234_v37 = vrot.slane %v226_v19, 4  ;;  %v235_v38 = vrot.slane %v227_v21, 4 }
  0x33   :  { %v255_v39 = vrot.slane %v498_v4, %v538_v32  ;;  %v259_v40 = vrot.slane %v506_v8, %v538_v32  ;;  %v240_v42 = vadd.f32 %v232_v26, %v204_v24  ;;  %v241_v43 = vadd.f32 %v233_v27, %v205_v25  ;;  %v35_v25 = vld [vmem:[%s656_s1 + $0x80] sm:$0xff] }
  0x34   :  { %v271_v44 = vrot.slane %v480_v59, %v549_v50  ;;  %v275_v45 = vrot.slane %v482_v60, %v549_v50  ;;  %v260_v47 = vmul.f32 %v247_v13, %v23_v31  ;;  %v261_v48 = vmul.f32 %v251_v30, %v24_v57  ;;  %v36_v13 = vld [vmem:[%s656_s1 + $0x88] sm:$0xff] }
  0x35   :  { %v279_v32 = vrot.slane %v498_v4, %v549_v50  ;;  %v283_v49 = vrot.slane %v506_v8, %v549_v50  ;;  %v102_v51 = vrot.slane %v101_v28, 1  ;;  %v110_v52 = vrot.slane %v569_v29, 1  ;;  %v25_v50 = vld [vmem:[%s656_s1 + $0x30] sm:$0xff] }
  0x36   :  { %v284_v53 = vmul.f32 %v271_v44, %v23_v31  ;;  %v285_v54 = vmul.f32 %v275_v45, %v24_v57  ;;  %v125_v55 = vadd.f32 %v124_v34, %v123_v5  ;;  %v242_v56 = vadd.f32 %v234_v37, %v206_v35 }
  0x37   :  { %v262_v58 = vmul.f32 %v255_v39, %v33_v41  ;;  %v286_v63 = vmul.f32 %v279_v32, %v33_v41  ;;  %v118_v1 = vrot.slane %v117_v33, 1  ;;  %v243_v2 = vadd.f32 %v235_v38, %v207_v36 }
  0x38   :  { %v263_v3 = vmul.f32 %v259_v40, %v34_v46  ;;  %v287_v6 = vmul.f32 %v283_v49, %v34_v46  ;;  %v264_v7 = vadd.f32 %v260_v47, %v240_v42  ;;  %v265_v9 = vadd.f32 %v261_v48, %v241_v43 }
  0x39   :  { %v292_v10 = vrot.slane %v284_v53, 4  ;;  %v307_v11 = vrot.slane %v480_v59, %v564_v22  ;;  %v293_v12 = vrot.slane %v285_v54, 4  ;;  %v311_v5 = vrot.slane %v482_v60, %v564_v22  ;;  %v38_v54 = vld [vmem:[%s656_s1 + $0x98] sm:$0xf] }
  0x3a   :  { %v331_v15 = vrot.slane %v480_v59, %v567_v23  ;;  %v335_v16 = vrot.slane %v482_v60, %v567_v23  ;;  %v266_v18 = vadd.f32 %v262_v58, %v242_v56  ;;  %v294_v19 = vrot.slane %v286_v63, 4 }
  0x3b   :  { %v315_v21 = vrot.slane %v498_v4, %v564_v22  ;;  %v339_v24 = vrot.slane %v498_v4, %v567_v23  ;;  %v267_v59 = vadd.f32 %v263_v3, %v243_v2  ;;  %v295_v26 = vrot.slane %v287_v6, 4 }
  0x3c   :  { %v319_v60 = vrot.slane %v506_v8, %v564_v22  ;;  %v343_v27 = vrot.slane %v506_v8, %v567_v23  ;;  %v126_v30 = vrot.slane %v125_v55, 1  ;;  %v300_v31 = vadd.f32 %v292_v10, %v264_v7 }
  0x3d   :  { %v320_v57 = vmul.f32 %v307_v11, %v25_v50  ;;  %v344_v4 = vmul.f32 %v331_v15, %v25_v50  ;;  %v103_v34 = vadd.f32 %v102_v51, %v101_v28  ;;  %v301_v35 = vadd.f32 %v293_v12, %v265_v9  ;;  %v27_v28 = vld [vmem:[%s656_s1 + $0x40] sm:$0xf] }
  0x3e   :  { %v321_v36 = vmul.f32 %v311_v5, %v26_v17  ;;  %v345_v37 = vmul.f32 %v335_v16, %v26_v17  ;;  %v111_v38 = vadd.f32 %v110_v52, %v569_v29  ;;  %v302_v39 = vadd.f32 %v294_v19, %v266_v18 }
  0x3f   :  { %v322_v40 = vmul.f32 %v315_v21, %v35_v25  ;;  %v346_v22 = vmul.f32 %v339_v24, %v35_v25  ;;  %v119_v41 = vadd.f32 %v118_v1, %v117_v33  ;;  %v303_v42 = vadd.f32 %v295_v26, %v267_v59  ;;  %v28_v33 = vld [vmem:[%s656_s1 + $0x48] sm:$0xf] }
  0x40   :  { %v323_v8 = vmul.f32 %v319_v60, %v36_v13  ;;  %v347_v23 = vmul.f32 %v343_v27, %v36_v13  ;;  %v127_v43 = vadd.f32 %v126_v30, %v125_v55  ;;  %v324_v44 = vadd.f32 %v320_v57, %v300_v31 }
  0x41   :  { %v352_v45 = vrot.slane %v344_v4, 4  ;;  %v367_v46 = vrot.slane %v484_v61, %v487_v62  ;;  %v325_v47 = vadd.f32 %v321_v36, %v301_v35  ;;  %v353_v48 = vrot.slane %v345_v37, 4  ;;  %v37_v61 = vld [vmem:[%s656_s1 + $0x90] sm:$0xf] }
  0x42   :  { %v371_v29 = vrot.slane %v490_v0, %v487_v62  ;;  %426 = vrcp.f32 %v103_v34  ;;  %v326_v32 = vadd.f32 %v322_v40, %v302_v39  ;;  %v354_v49 = vrot.slane %v346_v22, 4 }
  0x43   :  { %v375_v51 = vrot.slane %v515_v14, %v487_v62  ;;  %428 = vrcp.f32 %v111_v38  ;;  %v327_v52 = vadd.f32 %v323_v8, %v303_v42  ;;  %v355_v53 = vrot.slane %v347_v23, 4 }
  0x44   :  { %v379_v0 = vrot.slane %v525_v20, %v487_v62  ;;  %430 = vrcp.f32 %v119_v41  ;;  %v360_v55 = vadd.f32 %v352_v45, %v324_v44  ;;  %v380_v56 = vmul.f32 %v367_v46, %v27_v28 }
  0x45   :  { %432 = vrcp.f32 %v127_v43  ;;  %v361_v58 = vadd.f32 %v353_v48, %v325_v47  ;;  %v381_v14 = vmul.f32 %v371_v29, %v28_v33  ;;  %v362_v63 = vadd.f32 %v354_v49, %v326_v32 }
  0x46   :  { %v382_v1 = vmul.f32 %v375_v51, %v37_v61  ;;  %v363_v2 = vadd.f32 %v355_v53, %v327_v52  ;;  %v383_v3 = vmul.f32 %v379_v0, %v38_v54  ;;  %v384_v6 = vadd.f32 %v380_v56, %v360_v55 }
  0x47   :  { %v385_v7 = vadd.f32 %v381_v14, %v361_v58 }
  0x48   :  { %v386_v9 = vadd.f32 %v382_v1, %v362_v63  ;;  %v387_v11 = vadd.f32 %v383_v3, %v363_v2 }
  0x4c   :  { %v427_v10 = vpop.eup %426 }
  0x4d   :  { %v429_v62 = vpop.eup %428  ;;  %v392_v20 = vmul.f32 %v427_v10, %v384_v6 }
  0x4e   :  { %v431_v50 = vpop.eup %430  ;;  %v393_v12 = vmul.f32 %v429_v62, %v385_v7 }
  0x4f   :  { %v433_v5 = vpop.eup %432  ;;  %v394_v15 = vmul.f32 %v431_v50, %v386_v9 }
  0x50   :  { %v395_v16 = vmul.f32 %v433_v5, %v387_v11  ;;  %v400_v17 = vcombine.low %v392_v20, %v393_v12 }
  0x52   :  { %v401_v18 = vcombine.low %v394_v15, %v395_v16  ;;  %404 = vst [vmem:[%s657_s2] sm:$0xff] %v400_v17 }
  0x54   :  { %405 = vst [vmem:[%s657_s2 + $0x8] sm:$0xff] %v401_v18 }

</bundles_post_ra>
